<compile_context>
chip_gen: v7x
topology: tpu7x:2x2x1
jax: 0.10.0
libtpu: 0.0.40
codegen_flags: <defaults>
</compile_context>

<pallas_src>
import jax
import jax.numpy as jnp
from jax import lax
from jax.experimental import pallas as pl
from jax.experimental.pallas import tpu as pltpu

EPS = 1e-5    # PyTorch BatchNorm2d default eps
LANE = 128    # TPU lane width
COL0 = 8      # sublane-aligned column offset of the valid region in the scratch


def _round_up(n, m):
    return ((n + m - 1) // m) * m


def _bottleneck_kernel(x_ref, w1s_ref, b1s_ref, w2_ref, b2_ref, w3_ref, b3_ref,
                       out_ref, pad_ref):
    _, H, W, Cin_p = x_ref.shape
    P_p = w3_ref.shape[0]
    Cout_p = w3_ref.shape[1]
    W_pad = pad_ref.shape[1]

    # ---- fused conv1 (1x1) + shortcut conv (1x1): one MXU matmul -------------
    xf = x_ref[0].reshape(H * W, Cin_p)                        # bf16 (H*W, Cin_p)
    y = jnp.dot(xf, w1s_ref[...], preferred_element_type=jnp.float32)
    y = y + b1s_ref[...]                                       # f32 (H*W, P_p+Cout_p)
    h1 = jnp.maximum(y[:, :P_p], 0.0)                          # BN1 + ReLU
    sc = y[:, P_p:]                                            # shortcut conv + BN

    # ---- conv2 (3x3, stride 1, pad 1) ----------------------------------------
    # Zero only the guard cells that the shifted windows read (top/bottom rows
    # plus one column on each side of the valid region).  Done every step so the
    # kernel stays correct when the batch axis is sharded across cores.
    pad_ref[0:1, :, :] = jnp.zeros((1, W_pad, P_p), jnp.float32)
    pad_ref[H + 1:H + 2, :, :] = jnp.zeros((1, W_pad, P_p), jnp.float32)
    pad_ref[1:H + 1, COL0 - 1:COL0, :] = jnp.zeros((H, 1, P_p), jnp.float32)
    pad_ref[1:H + 1, COL0 + W:COL0 + W + 1, :] = jnp.zeros((H, 1, P_p), jnp.float32)

    # Interior store: sublane-aligned (offset COL0 = 8, length W), full 128 lanes.
    pad_ref[1:H + 1, COL0:COL0 + W, :] = h1.reshape(H, W, P_p)

    # Three matmuls (one per dy), each with K = 3*P_p: the dx = 0/1/2 windows are
    # concatenated along the lane dim and hit w2 stored as (3, 3*P_p, P_p).
    acc = jnp.zeros((H * W, P_p), jnp.float32)
    for dy in range(3):
        left = pad_ref[dy:dy + H, COL0 - 1:COL0 - 1 + W, :]    # dx = 0
        center = pad_ref[dy:dy + H, COL0:COL0 + W, :]          # dx = 1
        right = pad_ref[dy:dy + H, COL0 + 1:COL0 + 1 + W, :]   # dx = 2
        patch = jnp.concatenate([left, center, right], axis=-1)   # (H, W, 3*P_p)
        patch = patch.reshape(H * W, 3 * P_p).astype(jnp.bfloat16)
        acc = acc + jnp.dot(patch, w2_ref[dy],
                            preferred_element_type=jnp.float32)
    h2 = jnp.maximum(acc + b2_ref[...], 0.0)                   # BN2 + ReLU (f32)

    # ---- conv3 (1x1) + BN3, residual add, final ReLU -------------------------
    h3 = jnp.dot(h2.astype(jnp.bfloat16), w3_ref[...],
                 preferred_element_type=jnp.float32) + b3_ref[...]
    out_ref[0] = jnp.maximum(h3 + sc, 0.0).reshape(H, W, Cout_p)


def res_bottleneck_pallas(x_nhwc, params):
    """x_nhwc: (N, H, W, Cin) float32. params: BN-folded (unpadded) weights/biases."""
    w1, b1, w2, b2, w3, b3, ws, bs = params
    N, H, W, Cin = x_nhwc.shape
    P = w1.shape[1]
    Cout = w3.shape[1]

    Cin_p, P_p, Cout_p = (_round_up(c, LANE) for c in (Cin, P, Cout))
    W_pad = _round_up(COL0 + W + 1, 8)

    def padc(a, tgt_shape):
        return jnp.pad(a, [(0, t - s) for s, t in zip(a.shape, tgt_shape)])

    # Fused conv1 | shortcut weight (bf16) and bias (f32), channel-padded with
    # zeros so the padded lanes stay identically zero through ReLU / residual.
    w1s = jnp.concatenate([padc(w1, (Cin_p, P_p)), padc(ws, (Cin_p, Cout_p))],
                          axis=1).astype(jnp.bfloat16)
    b1s = jnp.concatenate([padc(b1, (1, P_p)), padc(bs, (1, Cout_p))], axis=1)

    # conv2 weight as 3 contiguous K-slabs of shape (3*P_p, P_p), bf16.
    w2r = padc(w2, (3, 3, P_p, P_p)).reshape(3, 3 * P_p, P_p).astype(jnp.bfloat16)
    b2p = padc(b2, (1, P_p))
    w3p = padc(w3, (P_p, Cout_p)).astype(jnp.bfloat16)
    b3p = padc(b3, (1, Cout_p))

    x_p = padc(x_nhwc, (N, H, W, Cin_p)).astype(jnp.bfloat16)

    grid_spec = pltpu.PrefetchScalarGridSpec(
        num_scalar_prefetch=0,
        grid=(N,),
        in_specs=[
            pl.BlockSpec((1, H, W, Cin_p), lambda b: (b, 0, 0, 0)),
            pl.BlockSpec((Cin_p, P_p + Cout_p), lambda b: (0, 0)),
            pl.BlockSpec((1, P_p + Cout_p), lambda b: (0, 0)),
            pl.BlockSpec((3, 3 * P_p, P_p), lambda b: (0, 0, 0)),
            pl.BlockSpec((1, P_p), lambda b: (0, 0)),
            pl.BlockSpec((P_p, Cout_p), lambda b: (0, 0)),
            pl.BlockSpec((1, Cout_p), lambda b: (0, 0)),
        ],
        out_specs=pl.BlockSpec((1, H, W, Cout_p), lambda b: (b, 0, 0, 0)),
        scratch_shapes=[pltpu.VMEM((H + 2, W_pad, P_p), jnp.float32)],
    )
    out_p = pl.pallas_call(
        _bottleneck_kernel,
        out_shape=jax.ShapeDtypeStruct((N, H, W, Cout_p), jnp.float32),
        grid_spec=grid_spec,
        compiler_params=pltpu.CompilerParams(
            dimension_semantics=("parallel",)),
    )(x_p, w1s, b1s, w2r, b2p, w3p, b3p)
    return out_p[..., :Cout]


def fold_bn(w, gamma, beta, mean, var):
    """Fold eval-mode BatchNorm following a bias-free conv into (W*scale, bias)."""
    scale = gamma / jnp.sqrt(var + EPS)
    return w * scale, (beta - mean * scale)[None, :]


def reference_nhwc(x, raw):
    """Pure-JAX f32 reference of the PyTorch forward (eval-mode BN), NHWC."""
    (w1, g1, be1, m1, v1, w2, g2, be2, m2, v2,
     w3, g3, be3, m3, v3, ws, gs, bes, ms, vs) = raw

    def bn(y, g, b, m, v):
        return (y - m) / jnp.sqrt(v + EPS) * g + b

    h = jnp.einsum('nhwc,cd->nhwd', x, w1)
    h = jax.nn.relu(bn(h, g1, be1, m1, v1))
    h = lax.conv_general_dilated(h, w2, (1, 1), ((1, 1), (1, 1)),
                                 dimension_numbers=('NHWC', 'HWIO', 'NHWC'))
    h = jax.nn.relu(bn(h, g2, be2, m2, v2))
    h = bn(jnp.einsum('nhwc,cd->nhwd', h, w3), g3, be3, m3, v3)
    s = bn(jnp.einsum('nhwc,cd->nhwd', x, ws), gs, bes, ms, vs)
    return jax.nn.relu(h + s)


if __name__ == "__main__":
    # Small shapes: batch=2, in_planes=8, planes=4 (expansion=4 -> 16 out), 16x16.
    N, Cin, H, W = 2, 8, 16, 16
    planes = 4
    Cout = 4 * planes
    key = jax.random.PRNGKey(0)
    keys = jax.random.split(key, 21)

    def nrm(k, shape, s=0.1):
        return jax.random.normal(k, shape, jnp.float32) * s

    def pos(k, shape):
        return jax.random.uniform(k, shape, jnp.float32, minval=0.5, maxval=1.5)

    # Deterministic synthetic parameters (PyTorch conv weights (O,I,kh,kw) stored
    # directly in the equivalent (I,O) / HWIO forms).
    w1 = nrm(keys[0], (Cin, planes))
    g1, be1, m1, v1 = pos(keys[1], (planes,)), nrm(keys[2], (planes,)), nrm(keys[3], (planes,)), pos(keys[4], (planes,))
    w2 = nrm(keys[5], (3, 3, planes, planes))
    g2, be2, m2, v2 = pos(keys[6], (planes,)), nrm(keys[7], (planes,)), nrm(keys[8], (planes,)), pos(keys[9], (planes,))
    w3 = nrm(keys[10], (planes, Cout))
    g3, be3, m3, v3 = pos(keys[11], (Cout,)), nrm(keys[12], (Cout,)), nrm(keys[13], (Cout,)), pos(keys[14], (Cout,))
    ws = nrm(keys[15], (Cin, Cout))
    gs, bes, ms, vs = pos(keys[16], (Cout,)), nrm(keys[17], (Cout,)), nrm(keys[18], (Cout,)), pos(keys[19], (Cout,))

    # Input in PyTorch NCHW convention, converted to NHWC for the kernel.
    x_nchw = jax.random.normal(keys[20], (N, Cin, H, W), jnp.float32)
    x_nhwc = jnp.transpose(x_nchw, (0, 2, 3, 1))

    # Fold BN (eval mode) into per-channel scale/bias (on real, unpadded shapes).
    w1f, b1f = fold_bn(w1, g1, be1, m1, v1)
    w2f, b2f = fold_bn(w2, g2, be2, m2, v2)
    w3f, b3f = fold_bn(w3, g3, be3, m3, v3)
    wsf, bsf = fold_bn(ws, gs, bes, ms, vs)

    out_nhwc = res_bottleneck_pallas(
        x_nhwc, (w1f, b1f, w2f, b2f, w3f, b3f, wsf, bsf))
    out_nchw = jnp.transpose(out_nhwc, (0, 3, 1, 2))
    jax.block_until_ready(out_nchw)

    ref = reference_nhwc(x_nhwc, (w1, g1, be1, m1, v1, w2, g2, be2, m2, v2,
                                  w3, g3, be3, m3, v3, ws, gs, bes, ms, vs))
    assert out_nchw.shape == (N, Cout, H, W)
    max_err = float(jnp.max(jnp.abs(out_nhwc - ref)))
    # bf16 MXU operands (f32 accumulation) -> tolerance loosened accordingly.
    assert jnp.allclose(out_nhwc, ref, atol=5e-2, rtol=5e-2), max_err
    print("KERNEL_OK")
</pallas_src>

<mosaic_0001>
module attributes {stable_mosaic.version = 11 : i64} {
  func.func @_bottleneck_kernel(%arg0: i32, %arg1: memref<1x16x16x128xbf16, #tpu.memory_space<vmem>>, %arg2: memref<128x256xbf16, #tpu.memory_space<vmem>>, %arg3: memref<1x256xf32, #tpu.memory_space<vmem>>, %arg4: memref<3x384x128xbf16, #tpu.memory_space<vmem>>, %arg5: memref<1x128xf32, #tpu.memory_space<vmem>>, %arg6: memref<128x128xbf16, #tpu.memory_space<vmem>>, %arg7: memref<1x128xf32, #tpu.memory_space<vmem>>, %arg8: memref<1x16x16x128xf32, #tpu.memory_space<vmem>>, %arg9: memref<18x32x128xf32, #tpu.memory_space<vmem>>) attributes {dimension_semantics = [#tpu.dimension_semantics<parallel>], iteration_bounds = array<i64: 2>, scalar_prefetch = 0 : i64, scratch_operands = 1 : i64, tpu.core_type = #tpu.core_type<tc>, window_params = [{transform_indices = @transform_0, window_bounds = array<i64: 1, 16, 16, 128>}, {pipeline_mode = #tpu.pipeline_mode<synchronous>, transform_indices = @transform_1, window_bounds = array<i64: 128, 256>}, {pipeline_mode = #tpu.pipeline_mode<synchronous>, transform_indices = @transform_2, window_bounds = array<i64: 1, 256>}, {pipeline_mode = #tpu.pipeline_mode<synchronous>, transform_indices = @transform_3, window_bounds = array<i64: 3, 384, 128>}, {pipeline_mode = #tpu.pipeline_mode<synchronous>, transform_indices = @transform_4, window_bounds = array<i64: 1, 128>}, {pipeline_mode = #tpu.pipeline_mode<synchronous>, transform_indices = @transform_5, window_bounds = array<i64: 128, 128>}, {pipeline_mode = #tpu.pipeline_mode<synchronous>, transform_indices = @transform_6, window_bounds = array<i64: 1, 128>}, {transform_indices = @transform_7, window_bounds = array<i64: 1, 16, 16, 128>}]} {
    %c0 = arith.constant 0 : index
    %c0_0 = arith.constant 0 : index
    %c0_1 = arith.constant 0 : index
    %c0_2 = arith.constant 0 : index
    %0 = vector.load %arg1[%c0, %c0_0, %c0_1, %c0_2] : memref<1x16x16x128xbf16, #tpu.memory_space<vmem>>, vector<1x16x16x128xbf16>
    %1 = vector.shape_cast %0 : vector<1x16x16x128xbf16> to vector<16x16x128xbf16>
    %2 = vector.shape_cast %1 : vector<16x16x128xbf16> to vector<256x128xbf16>
    %c0_3 = arith.constant 0 : index
    %c0_4 = arith.constant 0 : index
    %3 = vector.load %arg2[%c0_3, %c0_4] : memref<128x256xbf16, #tpu.memory_space<vmem>>, vector<128x256xbf16>
    %cst = arith.constant dense<0.000000e+00> : vector<256x256xf32>
    %4 = tpu.matmul %2, %3, %cst {dimension_numbers = #tpu.dot_dimension_numbers<[1], [0], [0], [1], [0, 0, 1, 1], [], []>} : vector<256x128xbf16>, vector<128x256xbf16>, vector<256x256xf32> -> vector<256x256xf32>
    %c0_5 = arith.constant 0 : index
    %c0_6 = arith.constant 0 : index
    %5 = vector.load %arg3[%c0_5, %c0_6] : memref<1x256xf32, #tpu.memory_space<vmem>>, vector<1x256xf32>
    %6 = vector.broadcast %5 : vector<1x256xf32> to vector<256x256xf32>
    %7 = arith.addf %4, %6 : vector<256x256xf32>
    %8 = vector.extract_strided_slice %7 {offsets = [0, 0], sizes = [256, 128], strides = [1, 1]} : vector<256x256xf32> to vector<256x128xf32>
    %cst_7 = arith.constant 0.000000e+00 : f32
    %9 = vector.broadcast %cst_7 : f32 to vector<256x128xf32>
    %10 = arith.maximumf %8, %9 : vector<256x128xf32>
    %11 = vector.extract_strided_slice %7 {offsets = [0, 128], sizes = [256, 128], strides = [1, 1]} : vector<256x256xf32> to vector<256x128xf32>
    %cst_8 = arith.constant 0.000000e+00 : f32
    %12 = vector.broadcast %cst_8 : f32 to vector<1x32x128xf32>
    %c0_9 = arith.constant 0 : index
    %c0_10 = arith.constant 0 : index
    %c0_11 = arith.constant 0 : index
    %13 = vector.load %arg9[%c0_9, %c0_10, %c0_11] : memref<18x32x128xf32, #tpu.memory_space<vmem>>, vector<1x32x128xf32>
    tpu.vector_store %arg9[%c0_9, %c0_10, %c0_11], %12 {strides = array<i32>} : memref<18x32x128xf32, #tpu.memory_space<vmem>>, vector<1x32x128xf32>,
    %cst_12 = arith.constant 0.000000e+00 : f32
    %14 = vector.broadcast %cst_12 : f32 to vector<1x32x128xf32>
    %c17 = arith.constant 17 : index
    %c0_13 = arith.constant 0 : index
    %c0_14 = arith.constant 0 : index
    %15 = vector.load %arg9[%c17, %c0_13, %c0_14] : memref<18x32x128xf32, #tpu.memory_space<vmem>>, vector<1x32x128xf32>
    tpu.vector_store %arg9[%c17, %c0_13, %c0_14], %14 {strides = array<i32>} : memref<18x32x128xf32, #tpu.memory_space<vmem>>, vector<1x32x128xf32>,
    %cst_15 = arith.constant 0.000000e+00 : f32
    %16 = vector.broadcast %cst_15 : f32 to vector<16x1x128xf32>
    %c1 = arith.constant 1 : index
    %c7 = arith.constant 7 : index
    %c0_16 = arith.constant 0 : index
    %17 = vector.load %arg9[%c1, %c7, %c0_16] : memref<18x32x128xf32, #tpu.memory_space<vmem>>, vector<16x1x128xf32>
    tpu.vector_store %arg9[%c1, %c7, %c0_16], %16 {strides = array<i32>} : memref<18x32x128xf32, #tpu.memory_space<vmem>>, vector<16x1x128xf32>,
    %cst_17 = arith.constant 0.000000e+00 : f32
    %18 = vector.broadcast %cst_17 : f32 to vector<16x1x128xf32>
    %c1_18 = arith.constant 1 : index
    %c24 = arith.constant 24 : index
    %c0_19 = arith.constant 0 : index
    %19 = vector.load %arg9[%c1_18, %c24, %c0_19] : memref<18x32x128xf32, #tpu.memory_space<vmem>>, vector<16x1x128xf32>
    tpu.vector_store %arg9[%c1_18, %c24, %c0_19], %18 {strides = array<i32>} : memref<18x32x128xf32, #tpu.memory_space<vmem>>, vector<16x1x128xf32>,
    %20 = vector.shape_cast %10 : vector<256x128xf32> to vector<16x16x128xf32>
    %c1_20 = arith.constant 1 : index
    %c8 = arith.constant 8 : index
    %c0_21 = arith.constant 0 : index
    %21 = vector.load %arg9[%c1_20, %c8, %c0_21] : memref<18x32x128xf32, #tpu.memory_space<vmem>>, vector<16x16x128xf32>
    tpu.vector_store %arg9[%c1_20, %c8, %c0_21], %20 {strides = array<i32>} : memref<18x32x128xf32, #tpu.memory_space<vmem>>, vector<16x16x128xf32>,
    %cst_22 = arith.constant 0.000000e+00 : f32
    %22 = vector.broadcast %cst_22 : f32 to vector<256x128xf32>
    %c0_23 = arith.constant 0 : index
    %c7_24 = arith.constant 7 : index
    %c0_25 = arith.constant 0 : index
    %23 = vector.load %arg9[%c0_23, %c7_24, %c0_25] : memref<18x32x128xf32, #tpu.memory_space<vmem>>, vector<16x16x128xf32>
    %c0_26 = arith.constant 0 : index
    %c8_27 = arith.constant 8 : index
    %c0_28 = arith.constant 0 : index
    %24 = vector.load %arg9[%c0_26, %c8_27, %c0_28] : memref<18x32x128xf32, #tpu.memory_space<vmem>>, vector<16x16x128xf32>
    %c0_29 = arith.constant 0 : index
    %c9 = arith.constant 9 : index
    %c0_30 = arith.constant 0 : index
    %25 = vector.load %arg9[%c0_29, %c9, %c0_30] : memref<18x32x128xf32, #tpu.memory_space<vmem>>, vector<16x16x128xf32>
    %26 = tpu.concatenate %23, %24, %25 in 2 : vector<16x16x128xf32>, vector<16x16x128xf32>, vector<16x16x128xf32> -> vector<16x16x384xf32>
    %27 = vector.shape_cast %26 : vector<16x16x384xf32> to vector<256x384xf32>
    %28 = arith.truncf %27 : vector<256x384xf32> to vector<256x384xbf16>
    %c0_31 = arith.constant 0 : index
    %c0_32 = arith.constant 0 : index
    %c0_33 = arith.constant 0 : index
    %29 = vector.load %arg4[%c0_31, %c0_32, %c0_33] : memref<3x384x128xbf16, #tpu.memory_space<vmem>>, vector<1x384x128xbf16>
    %30 = vector.shape_cast %29 : vector<1x384x128xbf16> to vector<384x128xbf16>
    %cst_34 = arith.constant dense<0.000000e+00> : vector<256x128xf32>
    %31 = tpu.matmul %28, %30, %cst_34 {dimension_numbers = #tpu.dot_dimension_numbers<[1], [0], [0], [1], [0, 0, 1, 1], [], []>} : vector<256x384xbf16>, vector<384x128xbf16>, vector<256x128xf32> -> vector<256x128xf32>
    %32 = arith.addf %22, %31 : vector<256x128xf32>
    %c1_35 = arith.constant 1 : index
    %c7_36 = arith.constant 7 : index
    %c0_37 = arith.constant 0 : index
    %33 = vector.load %arg9[%c1_35, %c7_36, %c0_37] : memref<18x32x128xf32, #tpu.memory_space<vmem>>, vector<16x16x128xf32>
    %c1_38 = arith.constant 1 : index
    %c8_39 = arith.constant 8 : index
    %c0_40 = arith.constant 0 : index
    %34 = vector.load %arg9[%c1_38, %c8_39, %c0_40] : memref<18x32x128xf32, #tpu.memory_space<vmem>>, vector<16x16x128xf32>
    %c1_41 = arith.constant 1 : index
    %c9_42 = arith.constant 9 : index
    %c0_43 = arith.constant 0 : index
    %35 = vector.load %arg9[%c1_41, %c9_42, %c0_43] : memref<18x32x128xf32, #tpu.memory_space<vmem>>, vector<16x16x128xf32>
    %36 = tpu.concatenate %33, %34, %35 in 2 : vector<16x16x128xf32>, vector<16x16x128xf32>, vector<16x16x128xf32> -> vector<16x16x384xf32>
    %37 = vector.shape_cast %36 : vector<16x16x384xf32> to vector<256x384xf32>
    %38 = arith.truncf %37 : vector<256x384xf32> to vector<256x384xbf16>
    %c1_44 = arith.constant 1 : index
    %c0_45 = arith.constant 0 : index
    %c0_46 = arith.constant 0 : index
    %39 = vector.load %arg4[%c1_44, %c0_45, %c0_46] : memref<3x384x128xbf16, #tpu.memory_space<vmem>>, vector<1x384x128xbf16>
    %40 = vector.shape_cast %39 : vector<1x384x128xbf16> to vector<384x128xbf16>
    %cst_47 = arith.constant dense<0.000000e+00> : vector<256x128xf32>
    %41 = tpu.matmul %38, %40, %cst_47 {dimension_numbers = #tpu.dot_dimension_numbers<[1], [0], [0], [1], [0, 0, 1, 1], [], []>} : vector<256x384xbf16>, vector<384x128xbf16>, vector<256x128xf32> -> vector<256x128xf32>
    %42 = arith.addf %32, %41 : vector<256x128xf32>
    %c2 = arith.constant 2 : index
    %c7_48 = arith.constant 7 : index
    %c0_49 = arith.constant 0 : index
    %43 = vector.load %arg9[%c2, %c7_48, %c0_49] : memref<18x32x128xf32, #tpu.memory_space<vmem>>, vector<16x16x128xf32>
    %c2_50 = arith.constant 2 : index
    %c8_51 = arith.constant 8 : index
    %c0_52 = arith.constant 0 : index
    %44 = vector.load %arg9[%c2_50, %c8_51, %c0_52] : memref<18x32x128xf32, #tpu.memory_space<vmem>>, vector<16x16x128xf32>
    %c2_53 = arith.constant 2 : index
    %c9_54 = arith.constant 9 : index
    %c0_55 = arith.constant 0 : index
    %45 = vector.load %arg9[%c2_53, %c9_54, %c0_55] : memref<18x32x128xf32, #tpu.memory_space<vmem>>, vector<16x16x128xf32>
    %46 = tpu.concatenate %43, %44, %45 in 2 : vector<16x16x128xf32>, vector<16x16x128xf32>, vector<16x16x128xf32> -> vector<16x16x384xf32>
    %47 = vector.shape_cast %46 : vector<16x16x384xf32> to vector<256x384xf32>
    %48 = arith.truncf %47 : vector<256x384xf32> to vector<256x384xbf16>
    %c2_56 = arith.constant 2 : index
    %c0_57 = arith.constant 0 : index
    %c0_58 = arith.constant 0 : index
    %49 = vector.load %arg4[%c2_56, %c0_57, %c0_58] : memref<3x384x128xbf16, #tpu.memory_space<vmem>>, vector<1x384x128xbf16>
    %50 = vector.shape_cast %49 : vector<1x384x128xbf16> to vector<384x128xbf16>
    %cst_59 = arith.constant dense<0.000000e+00> : vector<256x128xf32>
    %51 = tpu.matmul %48, %50, %cst_59 {dimension_numbers = #tpu.dot_dimension_numbers<[1], [0], [0], [1], [0, 0, 1, 1], [], []>} : vector<256x384xbf16>, vector<384x128xbf16>, vector<256x128xf32> -> vector<256x128xf32>
    %52 = arith.addf %42, %51 : vector<256x128xf32>
    %c0_60 = arith.constant 0 : index
    %c0_61 = arith.constant 0 : index
    %53 = vector.load %arg5[%c0_60, %c0_61] : memref<1x128xf32, #tpu.memory_space<vmem>>, vector<1x128xf32>
    %54 = vector.broadcast %53 : vector<1x128xf32> to vector<256x128xf32>
    %55 = arith.addf %52, %54 : vector<256x128xf32>
    %cst_62 = arith.constant 0.000000e+00 : f32
    %56 = vector.broadcast %cst_62 : f32 to vector<256x128xf32>
    %57 = arith.maximumf %55, %56 : vector<256x128xf32>
    %58 = arith.truncf %57 : vector<256x128xf32> to vector<256x128xbf16>
    %c0_63 = arith.constant 0 : index
    %c0_64 = arith.constant 0 : index
    %59 = vector.load %arg6[%c0_63, %c0_64] : memref<128x128xbf16, #tpu.memory_space<vmem>>, vector<128x128xbf16>
    %cst_65 = arith.constant dense<0.000000e+00> : vector<256x128xf32>
    %60 = tpu.matmul %58, %59, %cst_65 {dimension_numbers = #tpu.dot_dimension_numbers<[1], [0], [0], [1], [0, 0, 1, 1], [], []>} : vector<256x128xbf16>, vector<128x128xbf16>, vector<256x128xf32> -> vector<256x128xf32>
    %c0_66 = arith.constant 0 : index
    %c0_67 = arith.constant 0 : index
    %61 = vector.load %arg7[%c0_66, %c0_67] : memref<1x128xf32, #tpu.memory_space<vmem>>, vector<1x128xf32>
    %62 = vector.broadcast %61 : vector<1x128xf32> to vector<256x128xf32>
    %63 = arith.addf %60, %62 : vector<256x128xf32>
    %64 = arith.addf %63, %11 : vector<256x128xf32>
    %cst_68 = arith.constant 0.000000e+00 : f32
    %65 = vector.broadcast %cst_68 : f32 to vector<256x128xf32>
    %66 = arith.maximumf %64, %65 : vector<256x128xf32>
    %67 = vector.shape_cast %66 : vector<256x128xf32> to vector<16x16x128xf32>
    %c0_69 = arith.constant 0 : index
    %c0_70 = arith.constant 0 : index
    %c0_71 = arith.constant 0 : index
    %c0_72 = arith.constant 0 : index
    %68 = vector.load %arg8[%c0_69, %c0_70, %c0_71, %c0_72] : memref<1x16x16x128xf32, #tpu.memory_space<vmem>>, vector<1x16x16x128xf32>
    %69 = vector.shape_cast %68 : vector<1x16x16x128xf32> to vector<16x16x128xf32>
    %70 = vector.shape_cast %67 : vector<16x16x128xf32> to vector<1x16x16x128xf32>
    tpu.vector_store %arg8[%c0_69, %c0_70, %c0_71, %c0_72], %70 {strides = array<i32>} : memref<1x16x16x128xf32, #tpu.memory_space<vmem>>, vector<1x16x16x128xf32>,
    return
  }
  func.func @transform_0(%arg0: i32) -> (i32, i32, i32, i32) {
    %c0_i32 = arith.constant 0 : i32
    %c0_i32_0 = arith.constant 0 : i32
    %c0_i32_1 = arith.constant 0 : i32
    %c0_i32_2 = arith.constant 0 : i32
    return %arg0, %c0_i32, %c0_i32_0, %c0_i32_1 : i32, i32, i32, i32
  }
  func.func @transform_1(%arg0: i32) -> (i32, i32) {
    %c0_i32 = arith.constant 0 : i32
    %c0_i32_0 = arith.constant 0 : i32
    %c0_i32_1 = arith.constant 0 : i32
    return %c0_i32, %c0_i32_0 : i32, i32
  }
  func.func @transform_2(%arg0: i32) -> (i32, i32) {
    %c0_i32 = arith.constant 0 : i32
    %c0_i32_0 = arith.constant 0 : i32
    %c0_i32_1 = arith.constant 0 : i32
    return %c0_i32, %c0_i32_0 : i32, i32
  }
  func.func @transform_3(%arg0: i32) -> (i32, i32, i32) {
    %c0_i32 = arith.constant 0 : i32
    %c0_i32_0 = arith.constant 0 : i32
    %c0_i32_1 = arith.constant 0 : i32
    %c0_i32_2 = arith.constant 0 : i32
    return %c0_i32, %c0_i32_0, %c0_i32_1 : i32, i32, i32
  }
  func.func @transform_4(%arg0: i32) -> (i32, i32) {
    %c0_i32 = arith.constant 0 : i32
    %c0_i32_0 = arith.constant 0 : i32
    %c0_i32_1 = arith.constant 0 : i32
    return %c0_i32, %c0_i32_0 : i32, i32
  }
  func.func @transform_5(%arg0: i32) -> (i32, i32) {
    %c0_i32 = arith.constant 0 : i32
    %c0_i32_0 = arith.constant 0 : i32
    %c0_i32_1 = arith.constant 0 : i32
    return %c0_i32, %c0_i32_0 : i32, i32
  }
  func.func @transform_6(%arg0: i32) -> (i32, i32) {
    %c0_i32 = arith.constant 0 : i32
    %c0_i32_0 = arith.constant 0 : i32
    %c0_i32_1 = arith.constant 0 : i32
    return %c0_i32, %c0_i32_0 : i32, i32
  }
  func.func @transform_7(%arg0: i32) -> (i32, i32, i32, i32) {
    %c0_i32 = arith.constant 0 : i32
    %c0_i32_0 = arith.constant 0 : i32
    %c0_i32_1 = arith.constant 0 : i32
    %c0_i32_2 = arith.constant 0 : i32
    return %arg0, %c0_i32, %c0_i32_0, %c0_i32_1 : i32, i32, i32, i32
  }
}

</mosaic_0001>

<bundles_post_ra>
// kernel: tpu_custom_call.1
= control target key start
LH: loop header
LB: loop body
LE: loop exit
PB: predicated region body
PF: predicated region fallthrough
CT: control target
= control target key end

     0   :  { %s5784_s0 = inlined_call_operand.hbm [shape: bf16[2,16,16,128], index: 0, kind: input, shape index: {}]   ;;  %s5785_s1 = inlined_call_operand.hbm [shape: bf16[128,256], index: 1, kind: input, shape index: {}]   ;;  %s5786_s2 = inlined_call_operand.vmem [shape: f32[1,256], index: 2, kind: input, shape index: {}]   ;;  %s5787_s3 = inlined_call_operand.hbm [shape: bf16[3,384,128], index: 3, kind: input, shape index: {}]   ;;  %s5788_s4 = inlined_call_operand.vmem [shape: f32[1,128], index: 4, kind: input, shape index: {}]   ;;  %s5789_s5 = inlined_call_operand.hbm [shape: bf16[128,128], index: 5, kind: input, shape index: {}]   ;;  %s5790_s6 = inlined_call_operand.vmem [shape: f32[1,128], index: 6, kind: input, shape index: {}]   ;;  %s5791_s7 = inlined_call_operand.hbm [shape: f32[2,16,16,128], index: 7, kind: output, shape index: {}]  }
   0x1   :  { %5796 = sst [smem:[#allocation39_spill]] %s5785_s1 }
   0x2   :  { %12 = vsyncpa [#allocation4], 0 }
   0x3   :  { %14 = vsyncpa [#allocation4 + $0x1], 0 }
   0x4   :  { %15 = vsyncpa [#allocation7], 0 }
   0x5   :  { %16 = vsyncpa [#allocation10], 0 }
   0x6   :  { %17 = vsyncpa [#allocation5], 0 }
   0x7   :  { %19 = vsyncpa [#allocation5 + $0x1], 0  ;;  %s4803_s24 = smov 0   ;;  %s4805_s25 = smov 0  }
   0x8   :  { %s4807_s26 = smov 0   ;;  %s4809_s27 = smov 0  }
   0x9 LB: > { %s4824_s28 = sadd.s32 4294967295, %s4747_s27   ;;  %s3417_s29 = sadd.s32 4294967294, %s4747_s27   ;;  %s4747_s27 = sphi %s4809_s27, %s5863_s27   ;;  %s4743_s26 = sphi %s4807_s26, %s5862_s26   ;;  %s4739_s25 = sphi %s4805_s25, %s5861_s25   ;;  %s4735_s24 = sphi %s4803_s24, %s5860_s24  }
   0xa   : > { %p45_p0 = scmp.ne.s32.totalorder %s4739_s25, %s4735_s24  ;;  %p5792_p1 = scmp.eq.s32.totalorder %s4824_s28, 0 }
   0xb   : > { %p201_p3 = scmp.eq.s32.totalorder %s3417_s29, 1  ;;  %p3418_p5 = scmp.ge.s32.totalorder %s4747_s27, 1 }
   0xc   : > { %p4833_p4 = por %p5792_p1, %p45_p0  ;;  %p208_p7 = scmp.lt.s32.totalorder %s4747_s27, 3 }
   0xd   : > { %p4838_p6 = por %p201_p3, %p45_p0  ;;  %s4749_s10 = smov [#allocation6]  }
   0xe   : > { %s5797_s30 = scalar_select %p4833_p4, 1, 0 }
   0xf   : > { %s5798_s8 = scalar_select %p4838_p6, 1, 0 }
  0x10   : > { %p4843_p8 = pnand %p3418_p5, %p208_p7  ;;  %s220_s11 = sshll.u32 %s4749_s10, 4  ;;  %s4847_s11 = int_to_ptr.vmem [resolvable:$true] %s220_s11 }
  0x11   : > { %5799 = sst [smem:[#allocation16_spill]] %s5798_s8  ;;  %s4750_s13 = smov [#allocation8]  }
  0x12   : > { %s5800_s9 = scalar_select %p4843_p8, 1, 0 }
  0x13   : > { %p4369_p9 = pneg %p4843_p8  ;;  %s236_s14 = sshll.u32 %s4750_s13, 4  ;;  %s4858_s14 = int_to_ptr.vmem [resolvable:$true] %s236_s14 }
  0x14   : > { %s5802_s1 = sld [smem:[#allocation39_spill]] }
  0x15   : > { %p4854_p11 = pnand %p4369_p9, %p5792_p1 }
  0x17   : > { %p4868_p13 = pneg %p4854_p11 }
  0x1a   : > { %s4559_s17 = scalar_lea.hbm %s5802_s1, 2048 }
  0x1b   : > { %p4560_p12 = scmp.ne.s32.totalorder %s5802_s1, %s4559_s17  ;;  %p4566_p5 = scmp.lt.u32.totalorder %s4559_s17, %s5802_s1 }
  0x1d   : > { %p4562_p0 = pnand %p4868_p13, %p4560_p12 }
  0x1f   : > { %p4563_p3 = pneg %p4562_p0 }
  0x21   : > { %p4568_p7 = pnand %p4566_p5, %p4563_p3 }
  0x23   : > { %4571 = shalt.err (!%p4568_p7)
}
  0x24   : > { %s4572_s23 = scalar_lea.vmem %s4847_s11, 2048  ;;  %p4580_p2 = scmp.lt.s32.totalorder %s4847_s11, %s4847_s11 }
  0x25   : > { %p4573_p9 = scmp.ne.s32.totalorder %s4847_s11, %s4572_s23  ;;  %p4581_p6 = scmp.lt.s32.totalorder %s4572_s23, %s4572_s23 }
  0x27   : > { %p4575_p10 = pnand %p4573_p9, %p4868_p13  ;;  %p4582_p12 = por %p4581_p6, %p4580_p2 }
  0x29   : > { %p4576_p1 = pneg %p4575_p10 }
  0x2b   : > { %p4583_p0 = pnand %p4582_p12, %p4576_p1 }
  0x2d   : > { %4586 = shalt.err (!%p4583_p0)
}
  0x2e   : > { %s4751_s29 = smov 128   ;;  %s4752_s10 = smov 8  }
  0x2f   : > { %4372 = dma.hbm_to_vmem [thread:$0]  (!%p4854_p11), %s5802_s1, 2048, %s4847_s11, [#allocation7], %s4751_s29, %s4751_s29, %s4752_s10  }
  0x30   : > { %s4587_s18 = scalar_lea.hbm %s5787_s3, 9216 }
  0x31   : > { %p4588_p2 = scmp.ne.s32.totalorder %s5787_s3, %s4587_s18  ;;  %p4594_p10 = scmp.lt.u32.totalorder %s4587_s18, %s5787_s3 }
  0x33   : > { %p4590_p1 = pnand %p4588_p2, %p4868_p13 }
  0x35   : > { %p4591_p6 = pneg %p4590_p1 }
  0x37   : > { %p4596_p3 = pnand %p4594_p10, %p4591_p6 }
  0x39   : > { %4599 = shalt.err (!%p4596_p3)
}
  0x3a   : > { %s4600_s11 = scalar_lea.vmem %s4858_s14, 9216  ;;  %p4608_p12 = scmp.lt.s32.totalorder %s4858_s14, %s4858_s14 }
  0x3b   : > { %p4601_p5 = scmp.ne.s32.totalorder %s4858_s14, %s4600_s11  ;;  %p4609_p0 = scmp.lt.s32.totalorder %s4600_s11, %s4600_s11 }
  0x3d   : > { %p4603_p7 = pnand %p4601_p5, %p4868_p13  ;;  %p4610_p2 = por %p4609_p0, %p4608_p12 }
  0x3f   : > { %p4604_p9 = pneg %p4603_p7 }
  0x41   : > { %p4611_p1 = pnand %p4610_p2, %p4604_p9 }
  0x43   : > { %4614 = shalt.err (!%p4611_p1)
}
  0x44   : > { %s4753_s29 = smov 64   ;;  %s4754_s10 = smov 4  }
  0x45   : > { %4375 = dma.hbm_to_vmem [thread:$0]  (!%p4854_p11), %s5787_s3, 9216, %s4858_s14, [#allocation7], %s4753_s29, %s4753_s29, %s4754_s10  }
  0x46   : > { %s4755_s16 = smov [#allocation9]   ;;  %s4916_s18 = sadd.s32 1, %s4747_s27  }
  0x47   : > { %s252_s17 = sshll.u32 %s4755_s16, 4  ;;  %s4615_s22 = scalar_lea.hbm %s5789_s5, 1024  ;;  %s253_s17 = int_to_ptr.vmem [resolvable:$true] %s252_s17 }
  0x48   : > { %p4616_p6 = scmp.ne.s32.totalorder %s5789_s5, %s4615_s22  ;;  %p4622_p5 = scmp.lt.u32.totalorder %s4615_s22, %s5789_s5 }
  0x4a   : > { %p4618_p10 = pnand %p4616_p6, %p4868_p13 }
  0x4c   : > { %p4619_p3 = pneg %p4618_p10 }
  0x4e   : > { %p4624_p7 = pnand %p4622_p5, %p4619_p3 }
  0x50   : > { %4627 = shalt.err (!%p4624_p7)
}
  0x51   : > { %s4628_s14 = scalar_lea.vmem %s253_s17, 1024  ;;  %p4636_p2 = scmp.lt.s32.totalorder %s253_s17, %s253_s17 }
  0x52   : > { %p4629_p9 = scmp.ne.s32.totalorder %s253_s17, %s4628_s14  ;;  %p4637_p1 = scmp.lt.s32.totalorder %s4628_s14, %s4628_s14 }
  0x54   : > { %p4631_p12 = pnand %p4629_p9, %p4868_p13  ;;  %p4638_p4 = por %p4637_p1, %p4636_p2 }
  0x56   : > { %p4632_p0 = pneg %p4631_p12 }
  0x58   : > { %p4639_p8 = pnand %p4638_p4, %p4632_p0 }
  0x5a   : > { %4642 = shalt.err (!%p4639_p8)
}
  0x5b   : > { %4378 = dma.hbm_to_vmem [thread:$0]  (!%p4854_p11), %s5789_s5, 1024, %s253_s17, [#allocation10], %s4753_s29, %s4753_s29, %s4754_s10  }
  0x5c   : > { %s29_s20 = ssub.s32 %s4747_s27, %s4916_s18  ;;  %s32_s12 = sadd.s32 1, %s4743_s26 }
  0x5d   : > { %p30_p4 = scmp.eq.s32.totalorder %s29_s20, 0  ;;  %p39_p8 = scmp.ne.s32.totalorder %s4743_s26, %s4739_s25 }
  0x5e   : > { %p40_p13 = scmp.eq.s32.totalorder %s4747_s27, 0  ;;  %p4390_p6 = scmp.lt.s32.totalorder %s4747_s27, 2 }
  0x5f   : > { %s4947_s13 = scalar_select %p30_p4, %s4743_s26, %s32_s12  }
  0x60   : > { %p41_p10 = por %p40_p13, %p39_p8  ;;  %p5804_p3 = scmp.eq.s32.totalorder %s4824_s28, 1 }
  0x61   : > { %s269_s16 = sand.u32 1, %s4743_s26   ;;  %s3551_s19 = sshll.u32 %s4747_s27, 11 }
  0x62   : > { %p4951_p5 = por %p5804_p3, %p39_p8  ;;  %s3423_s21 = sshll.u32 %s269_s16, 7 }
  0x63   : > { %s4960_s17 = scalar_lea.hbm %s5784_s0, %s3551_s19  ;;  %s273_s11 = scalar_lea.vmem [#allocation3], %s3423_s21 }
  0x64   : > { %s280_s14 = sshll.u32 %s273_s11, 4  ;;  %p4962_p11 = pnand %p4390_p6, %p41_p10  ;;  %s4966_s14 = int_to_ptr.vmem [resolvable:$true] %s280_s14 }
  0x65   : > { %s4968_s8 = scalar_lea.sflag [#allocation4], %s269_s16  ;;  %s4643_s20 = scalar_lea.hbm %s4960_s17, 2048 }
  0x66   : > { %p4644_p7 = scmp.ne.s32.totalorder %s4960_s17, %s4643_s20  ;;  %p4645_p9 = pneg %p4962_p11 }
  0x67   : > { %s4648_s21 = scalar_lea.hbm %s5784_s0, 4096  ;;  %p4649_p2 = scmp.lt.u32.totalorder %s4960_s17, %s5784_s0 }
  0x68   : > { %p4646_p12 = pnand %p4645_p9, %p4644_p7  ;;  %p4650_p1 = scmp.lt.u32.totalorder %s4648_s21, %s4643_s20 }
  0x69   : > { %p4652_p8 = scmp.lt.u32.totalorder %s4643_s20, %s4960_s17 }
  0x6a   : > { %p4647_p0 = pneg %p4646_p12  ;;  %p4651_p4 = por %p4650_p1, %p4649_p2 }
  0x6c   : > { %p4653_p13 = por %p4652_p8, %p4651_p4 }
  0x6e   : > { %p4654_p6 = pnand %p4653_p13, %p4647_p0 }
  0x70   : > { %4657 = shalt.err (!%p4654_p6)
}
  0x71   : > { %s4658_s16 = scalar_lea.vmem %s4966_s14, 2048  ;;  %s4756_s11 = smov [#allocation3]  }
  0x72   : > { %p4659_p10 = scmp.ne.s32.totalorder %s4966_s14, %s4658_s16  ;;  %s4663_s12 = sshll.u32 %s4756_s11, 4  ;;  %s4664_s12 = int_to_ptr.vmem [resolvable:$false] %s4663_s12 }
  0x73   : > { %s4665_s19 = scalar_lea.vmem %s4664_s12, 4096  ;;  %p4666_p12 = scmp.lt.s32.totalorder %s4966_s14, %s4664_s12 }
  0x74   : > { %p4661_p3 = pnand %p4659_p10, %p4645_p9  ;;  %p4667_p2 = scmp.lt.s32.totalorder %s4665_s19, %s4658_s16 }
  0x76   : > { %p4662_p7 = pneg %p4661_p3  ;;  %p4668_p1 = por %p4667_p2, %p4666_p12 }
  0x78   : > { %p4669_p4 = pnand %p4668_p1, %p4662_p7 }
  0x7a   : > { %4672 = shalt.err (!%p4669_p4)
}
  0x7b   : > { %4382 = dma.hbm_to_vmem [thread:$0]  (!%p4962_p11), %s4960_s17, 2048, %s4966_s14, %s4968_s8, %s4753_s29, %s4753_s29, %s4754_s10  }
  0x7c   : > { %p5807_p9 = scmp.ne.s32.totalorder %s5800_s9, 0 }
  0x7e   : > { %292 = sbr.rel (%p5807_p9) target bundleno = 1210 (0x4ba), region = 48 }
  0x85   : > { %s5002_s20 = sand.u32 1, %s4739_s25   ;;  %p5808_p0 = scmp.ne.s32.totalorder %s5797_s30, 0 }
  0x86   : > { %s3427_s21 = sshll.u32 %s5002_s20, 7  ;;  %s295_s22 = scalar_lea.sflag [#allocation4], %s5002_s20 }
  0x87   : > { %s5006_s23 = scalar_lea.vmem [#allocation3], %s3427_s21 }
  0x88   : > { %4718 = dma.done.wait (%p5808_p0), %s295_s22, 2048  }
  0x89   : > { %4720 = vsyncadd (%p5808_p0), %s295_s22, 4294965248  ;;  %p5809_p11 = scmp.eq.s32.totalorder %s4824_s28, 0 }
  0x8b   : > { %4722 = dma.done.wait (%p5809_p11), [#allocation7], 11264   ;;  %p5810_p8 = pmov %p5809_p11 }
  0x8d   : > { %4724 = vsyncadd (%p5810_p8), [#allocation7], 4294956032  ;;  %p5811_p13 = pmov %p5810_p8 }
  0x8e   : > { %p5812_p6 = pmov %p5810_p8 }
  0x8f   : > { %4726 = dma.done.wait (%p5811_p13), [#allocation10], 1024  }
  0x90   : > { %4728 = vsyncadd (%p5812_p6), [#allocation10], 4294966272  ;;  %v4757_v0 = vmov 0   ;;  %v4438_v1 = vld [vmem:[#allocation6 + $0x4] ss:$8 sps:$4 sm:$0xff]   ;;  %v4484_v27 = vld [vmem:[#allocation8 + $0x110] sm:$0xff]   ;;  %v392_v60 = vlaneseq }
  0x91   : > { %610 = vmatprep.mubr.bf16.mxu0 %v4757_v0  ;;  %690 = vmatprep.mubr.bf16.mxu1 %v4757_v0  ;;  %v4440_v2 = vld [vmem:[#allocation6] ss:$8 sps:$4 sm:$0xff]   ;;  %v4441_v3 = vld [vmem:[#allocation6 + $0x14] ss:$8 sps:$4 sm:$0xff]   ;;  %v4443_v4 = vld [vmem:[#allocation6 + $0x10] ss:$8 sps:$4 sm:$0xff]  }
  0x92   : > { %578 = vmatprep.subr.bf16.mxu0 %v4438_v1  ;;  %4177 = vmatprep.subr.bf16.mxu1 %v4438_v1  ;;  %v4444_v5 = vld [vmem:[#allocation6 + $0x24] ss:$8 sps:$4 sm:$0xff]   ;;  %v4446_v6 = vld [vmem:[#allocation6 + $0x20] ss:$8 sps:$4 sm:$0xff]   ;;  %v4447_v7 = vld [vmem:[#allocation6 + $0x34] ss:$8 sps:$4 sm:$0xff]  }
  0x93   : > { %579 = vmatpush1.bf16.msra.mxu0 %v4440_v2  ;;  %4185 = vmatpush1.bf16.msra.mxu1 %v4440_v2  ;;  %v4449_v8 = vld [vmem:[#allocation6 + $0x30] ss:$8 sps:$4 sm:$0xff]   ;;  %v4450_v9 = vld [vmem:[#allocation6 + $0x44] ss:$8 sps:$4 sm:$0xff]   ;;  %v4452_v10 = vld [vmem:[#allocation6 + $0x40] ss:$8 sps:$4 sm:$0xff]  }
  0x94   : > { %580 = vmatprep.subr.bf16.mxu0 %v4441_v3  ;;  %4178 = vmatprep.subr.bf16.mxu1 %v4441_v3  ;;  %v4453_v11 = vld [vmem:[#allocation6 + $0x54] ss:$8 sps:$4 sm:$0xff]   ;;  %v4455_v12 = vld [vmem:[#allocation6 + $0x50] ss:$8 sps:$4 sm:$0xff]   ;;  %v4456_v13 = vld [vmem:[#allocation6 + $0x64] ss:$8 sps:$4 sm:$0xff]  }
  0x95   : > { %v4458_v14 = vld [vmem:[#allocation6 + $0x60] ss:$8 sps:$4 sm:$0xff]   ;;  %v4459_v15 = vld [vmem:[#allocation6 + $0x74] ss:$8 sps:$4 sm:$0xff]   ;;  %v4461_v16 = vld [vmem:[#allocation6 + $0x70] ss:$8 sps:$4 sm:$0xff]  }
  0x96   : > { %v4478_v17 = vld [vmem:[#allocation8 + $0x140] sm:$0xff]   ;;  %v4481_v22 = vld [vmem:[#allocation8 + $0x108] sm:$0xff]   ;;  %v4485_v28 = vld [vmem:[#allocation8 + $0xd0] sm:$0xff]   ;;  %v4758_v49 = vmov 0.0   ;;  %v5055_v61 = vshrl.u32 %v392_v60, 7  ;;  %s3431_s16 = sshll.u32 %s5002_s20, 8 }
  0x97   : > { %581 = vmatpush1.bf16.msra.mxu0 %v4443_v4  ;;  %4186 = vmatpush1.bf16.msra.mxu1 %v4443_v4  ;;  %v4479_v18 = vld [vmem:[#allocation8 + $0x100] sm:$0xff]   ;;  %v4483_v23 = vld [vmem:[#allocation8 + $0x148] sm:$0xff]   ;;  %v4486_v29 = vld [vmem:[#allocation8 + $0x118] sm:$0xff]   ;;  %829 = vst [vmem:[#allocation2 + $0x38] sm:$0x1] %v4758_v49  ;;  %s5615_s11 = scalar_lea.vmem [#allocation11], %s3431_s16 }
  0x98   : > { %582 = vmatprep.subr.bf16.mxu0 %v4444_v5  ;;  %4179 = vmatprep.subr.bf16.mxu1 %v4444_v5  ;;  %v4462_v19 = vld [vmem:[%s5006_s23] sm:$0xff]   ;;  %v4463_v24 = vld [vmem:[%s5006_s23 + $0x8] sm:$0xff]   ;;  %v4487_v30 = vld [vmem:[#allocation8 + $0xd8] sm:$0xff]   ;;  %803 = vst [vmem:[#allocation2] sm:$0xff] %v4758_v49  ;;  %v394_v62 = vsub.s32 0, %v5055_v61  ;;  %s3552_s12 = sshll.u32 %s4824_s28, 12 }
  0x99   : > { %v4466_v20 = vld [vmem:[%s5006_s23 + $0x40] sm:$0xff]   ;;  %v4468_v25 = vld [vmem:[%s5006_s23 + $0x48] sm:$0xff]   ;;  %v4464_v31 = vld [vmem:[%s5006_s23 + $0x10] sm:$0xff]   ;;  %804 = vst [vmem:[#allocation2 + $0x8] sm:$0xff] %v4758_v49  ;;  %s3315_s19 = sshll.u32 %s5615_s11, 4  ;;  %s3302_s28 = scalar_lea.sflag [#allocation5], %s5002_s20  ;;  %s5737_s19 = int_to_ptr.vmem [resolvable:$true] %s3315_s19 }
  0x9a   : > { %v4480_v21 = vld [vmem:[#allocation8 + $0xc0] sm:$0xff]   ;;  %v4482_v26 = vld [vmem:[#allocation8 + $0xc8] sm:$0xff]   ;;  %v4470_v32 = vld [vmem:[%s5006_s23 + $0x50] sm:$0xff]   ;;  %805 = vst [vmem:[#allocation2 + $0x10] sm:$0xff] %v4758_v49  ;;  %s4673_s30 = scalar_lea.vmem %s5737_s19, 4096  ;;  %s4760_s9 = smov [#allocation11]  }
  0x9b   : > { %583 = vmatpush1.bf16.msra.mxu0 %v4446_v6  ;;  %4187 = vmatpush1.bf16.msra.mxu1 %v4446_v6  ;;  %v4465_v33 = vld [vmem:[%s5006_s23 + $0x18] sm:$0xff]   ;;  %v4467_v35 = vld [vmem:[%s5006_s23 + $0x20] sm:$0xff]   ;;  %v4469_v37 = vld [vmem:[%s5006_s23 + $0x28] sm:$0xff]   ;;  %806 = vst [vmem:[#allocation2 + $0x18] sm:$0xff] %v4758_v49  ;;  %p4674_p10 = scmp.ne.s32.totalorder %s5737_s19, %s4673_s30  ;;  %s4677_s29 = sshll.u32 %s4760_s9, 4  ;;  %s4678_s29 = int_to_ptr.vmem [resolvable:$false] %s4677_s29 }
  0x9c   : > { %584 = vmatprep.subr.bf16.mxu0 %v4447_v7  ;;  %4180 = vmatprep.subr.bf16.mxu1 %v4447_v7  ;;  %v4472_v34 = vld [vmem:[%s5006_s23 + $0x58] sm:$0xff]   ;;  %v4474_v36 = vld [vmem:[%s5006_s23 + $0x60] sm:$0xff]   ;;  %v4475_v38 = vld [vmem:[%s5006_s23 + $0x68] sm:$0xff]   ;;  %808 = vst [vmem:[#allocation2 + $0x220] sm:$0xff] %v4758_v49  ;;  %s4679_s10 = scalar_lea.vmem %s4678_s29, 8192  ;;  %p4680_p12 = scmp.lt.s32.totalorder %s5737_s19, %s4678_s29 }
  0x9d   : > { %v4471_v39 = vld [vmem:[%s5006_s23 + $0x30] sm:$0xff]   ;;  %v4473_v41 = vld [vmem:[%s5006_s23 + $0x38] sm:$0xff]   ;;  %v4489_v44 = vld [vmem:[#allocation8 + $0x120] sm:$0xff]   ;;  %809 = vst [vmem:[#allocation2 + $0x228] sm:$0xff] %v4758_v49  ;;  %p4675_p3 = pnand %p4674_p10, %p4951_p5  ;;  %p4681_p2 = scmp.lt.s32.totalorder %s4679_s10, %s4673_s30 }
  0x9e   : > { %v4476_v40 = vld [vmem:[%s5006_s23 + $0x70] sm:$0xff]   ;;  %v4477_v42 = vld [vmem:[%s5006_s23 + $0x78] sm:$0xff]   ;;  %v4490_v45 = vld [vmem:[#allocation8 + $0xe0] sm:$0xff]   ;;  %810 = vst [vmem:[#allocation2 + $0x230] sm:$0xff] %v4758_v49  ;;  %s5735_s23 = scalar_lea.hbm %s5791_s7, %s3552_s12 }
  0x9f   : > { %585 = vmatpush1.bf16.msra.mxu0 %v4449_v8  ;;  %4188 = vmatpush1.bf16.msra.mxu1 %v4449_v8  ;;  %v4488_v43 = vld [vmem:[#allocation8 + $0x150] sm:$0xff]   ;;  %v4491_v46 = vld [vmem:[#allocation8 + $0x158] sm:$0xff]   ;;  %v4492_v47 = vld [vmem:[#allocation8 + $0x128] sm:$0xff]   ;;  %811 = vst [vmem:[#allocation2 + $0x238] sm:$0xff] %v4758_v49  ;;  %p4676_p7 = pneg %p4675_p3  ;;  %p4682_p1 = por %p4681_p2, %p4680_p12 }
  0xa0   : > { %586 = vmatprep.subr.bf16.mxu0 %v4450_v9  ;;  %4181 = vmatprep.subr.bf16.mxu1 %v4450_v9  ;;  %v4493_v48 = vld [vmem:[#allocation8 + $0xe8] sm:$0xff]   ;;  %813 = vst [vmem:[#allocation2 + $0x27] sm:$0x1] %v4758_v49  ;;  %814 = vst [vmem:[#allocation2 + $0x47] sm:$0x1] %v4758_v49  ;;  %v4494_v50 = vld [vmem:[#allocation8 + $0x160] sm:$0xff]  }
  0xa1   : > { %815 = vst [vmem:[#allocation2 + $0x67] sm:$0x1] %v4758_v49  ;;  %816 = vst [vmem:[#allocation2 + $0x87] sm:$0x1] %v4758_v49  ;;  %v4495_v51 = vld [vmem:[#allocation8 + $0x130] sm:$0xff]   ;;  %v4497_v53 = vld [vmem:[#allocation8 + $0x168] sm:$0xff]   ;;  %p4683_p4 = pnand %p4682_p1, %p4676_p7 }
  0xa2   : > { %817 = vst [vmem:[#allocation2 + $0xa7] sm:$0x1] %v4758_v49  ;;  %818 = vst [vmem:[#allocation2 + $0xc7] sm:$0x1] %v4758_v49  ;;  %v4496_v52 = vld [vmem:[#allocation8 + $0xf0] sm:$0xff]   ;;  %v4498_v54 = vld [vmem:[#allocation8 + $0x138] sm:$0xff]  }
  0xa3   : > { %587 = vmatpush1.bf16.msra.mxu0 %v4452_v10  ;;  %4189 = vmatpush1.bf16.msra.mxu1 %v4452_v10  ;;  %819 = vst [vmem:[#allocation2 + $0xe7] sm:$0x1] %v4758_v49  ;;  %820 = vst [vmem:[#allocation2 + $0x107] sm:$0x1] %v4758_v49  ;;  %v4499_v55 = vld [vmem:[#allocation8 + $0xf8] sm:$0xff]   ;;  %v4500_v56 = vld [vmem:[#allocation8 + $0x170] sm:$0xff]  }
  0xa4   : > { %588 = vmatprep.subr.bf16.mxu0 %v4453_v11  ;;  %4182 = vmatprep.subr.bf16.mxu1 %v4453_v11  ;;  %821 = vst [vmem:[#allocation2 + $0x127] sm:$0x1] %v4758_v49  ;;  %822 = vst [vmem:[#allocation2 + $0x147] sm:$0x1] %v4758_v49  ;;  %v4501_v57 = vld [vmem:[#allocation8 + $0x178] sm:$0xff]   ;;  %v5052_v58 = vld [vmem:[#allocation8 + $0x80] sm:$0xff]  }
  0xa5   : > { %823 = vst [vmem:[#allocation2 + $0x167] sm:$0x1] %v4758_v49  ;;  %824 = vst [vmem:[#allocation2 + $0x187] sm:$0x1] %v4758_v49  ;;  %v4510_v59 = vld [vmem:[#allocation8 + $0x40] sm:$0xff]  }
  0xa6   : > { %825 = vst [vmem:[#allocation2 + $0x1a7] sm:$0x1] %v4758_v49  ;;  %826 = vst [vmem:[#allocation2 + $0x1c7] sm:$0x1] %v4758_v49  ;;  %v390_v63 = vld [vmem:[%s5786_s2] sm:$0x3] }
  0xa7   : > { %589 = vmatpush1.bf16.msra.mxu0 %v4455_v12  ;;  %4190 = vmatpush1.bf16.msra.mxu1 %v4455_v12  ;;  %827 = vst [vmem:[#allocation2 + $0x1e7] sm:$0x1] %v4758_v49  ;;  %828 = vst [vmem:[#allocation2 + $0x207] sm:$0x1] %v4758_v49 }
  0xa8   : > { %590 = vmatprep.subr.bf16.mxu0 %v4456_v13  ;;  %4183 = vmatprep.subr.bf16.mxu1 %v4456_v13  ;;  %830 = vst [vmem:[#allocation2 + $0x58] sm:$0x1] %v4758_v49  ;;  %831 = vst [vmem:[#allocation2 + $0x78] sm:$0x1] %v4758_v49 }
  0xa9   : > { %832 = vst [vmem:[#allocation2 + $0x98] sm:$0x1] %v4758_v49  ;;  %833 = vst [vmem:[#allocation2 + $0xb8] sm:$0x1] %v4758_v49 }
  0xaa   : > { %834 = vst [vmem:[#allocation2 + $0xd8] sm:$0x1] %v4758_v49  ;;  %835 = vst [vmem:[#allocation2 + $0xf8] sm:$0x1] %v4758_v49 }
  0xab   : > { %591 = vmatpush1.bf16.msra.mxu0 %v4458_v14  ;;  %4191 = vmatpush1.bf16.msra.mxu1 %v4458_v14  ;;  %836 = vst [vmem:[#allocation2 + $0x118] sm:$0x1] %v4758_v49  ;;  %837 = vst [vmem:[#allocation2 + $0x138] sm:$0x1] %v4758_v49 }
  0xac   : > { %592 = vmatprep.subr.bf16.mxu0 %v4459_v15  ;;  %4184 = vmatprep.subr.bf16.mxu1 %v4459_v15  ;;  %838 = vst [vmem:[#allocation2 + $0x158] sm:$0x1] %v4758_v49  ;;  %839 = vst [vmem:[#allocation2 + $0x178] sm:$0x1] %v4758_v49 }
  0xad   : > { %840 = vst [vmem:[#allocation2 + $0x198] sm:$0x1] %v4758_v49  ;;  %841 = vst [vmem:[#allocation2 + $0x1b8] sm:$0x1] %v4758_v49 }
  0xae   : > { %842 = vst [vmem:[#allocation2 + $0x1d8] sm:$0x1] %v4758_v49  ;;  %843 = vst [vmem:[#allocation2 + $0x1f8] sm:$0x1] %v4758_v49 }
  0xaf   : > { %593 = vmatpush1.bf16.msra.mxu0 %v4461_v16  ;;  %4192 = vmatpush1.bf16.msra.mxu1 %v4461_v16  ;;  %844 = vst [vmem:[#allocation2 + $0x218] sm:$0x1] %v4758_v49 }
  0xb0   : > { %3985 = vmatprep.subr.bf16.mxu0 %v4478_v17  ;;  %3553 = vmatprep.subr.bf16.mxu1 %v4479_v18 }
  0xb2   : > { %611 = vmatmul.mubr.bf16.vlgmr.msra.gmra.mrb[0].mxu0 %v4462_v19  ;;  %691 = vmatmul.mubr.bf16.vlgmr.msra.gmra.mrb[0].mxu1 %v4466_v20 }
  0xb3   : > { %620 = vmatprep.mubr.bf16.mxu0 %v4757_v0  ;;  %700 = vmatprep.mubr.bf16.mxu1 %v4757_v0 }
  0xb4   : > { %3986 = vmatpush3.bf16.msra.mxu0 %v4478_v17  ;;  %3554 = vmatpush3.bf16.msra.mxu1 %v4480_v21 }
  0xb5   : > { %3555 = vmatprep.subr.bf16.mxu1 %v4481_v22  ;;  %3987 = vmatprep.subr.bf16.mxu0 %v4483_v23 }
  0xb8   : > { %3556 = vmatpush3.bf16.msra.mxu1 %v4482_v26  ;;  %3988 = vmatpush3.bf16.msra.mxu0 %v4483_v23 }
  0xb9   : > { %3557 = vmatprep.subr.bf16.mxu1 %v4484_v27  ;;  %3989 = vmatprep.subr.bf16.mxu0 %v4488_v43 }
  0xba   : > { %621 = vmatmul.mubr.bf16.gmra.mrb[4].mxu0 %v4463_v24  ;;  %701 = vmatmul.mubr.bf16.gmra.mrb[4].mxu1 %v4468_v25 }
  0xbb   : > { %630 = vmatprep.mubr.bf16.mxu0 %v4757_v0  ;;  %710 = vmatprep.mubr.bf16.mxu1 %v4757_v0 }
  0xbc   : > { %3558 = vmatpush3.bf16.msra.mxu1 %v4485_v28  ;;  %3990 = vmatpush3.bf16.msra.mxu0 %v4488_v43 }
  0xbd   : > { %3559 = vmatprep.subr.bf16.mxu1 %v4486_v29  ;;  %3991 = vmatprep.subr.bf16.mxu0 %v4491_v46 }
  0xc0   : > { %3560 = vmatpush3.bf16.msra.mxu1 %v4487_v30  ;;  %3992 = vmatpush3.bf16.msra.mxu0 %v4491_v46 }
  0xc1   : > { %3561 = vmatprep.subr.bf16.mxu1 %v4489_v44  ;;  %3993 = vmatprep.subr.bf16.mxu0 %v4494_v50  ;;  %v4514_v44 = vld [vmem:[#allocation8 + $0x48] sm:$0xff]  }
  0xc2   : > { %631 = vmatmul.mubr.bf16.gmra.mrb[8].mxu0 %v4464_v31  ;;  %711 = vmatmul.mubr.bf16.gmra.mrb[8].mxu1 %v4470_v32 }
  0xc3   : > { %640 = vmatprep.mubr.bf16.mxu0 %v4757_v0  ;;  %720 = vmatprep.mubr.bf16.mxu1 %v4757_v0 }
  0xc4   : > { %3562 = vmatpush3.bf16.msra.mxu1 %v4490_v45  ;;  %3994 = vmatpush3.bf16.msra.mxu0 %v4494_v50 }
  0xc5   : > { %3563 = vmatprep.subr.bf16.mxu1 %v4492_v47  ;;  %3995 = vmatprep.subr.bf16.mxu0 %v4497_v53 }
  0xc8   : > { %3564 = vmatpush3.bf16.msra.mxu1 %v4493_v48  ;;  %3996 = vmatpush3.bf16.msra.mxu0 %v4497_v53  ;;  %v4515_v53 = vld [vmem:[#allocation8 + $0x8] sm:$0xff]  }
  0xc9   : > { %3565 = vmatprep.subr.bf16.mxu1 %v4495_v51  ;;  %3997 = vmatprep.subr.bf16.mxu0 %v4500_v56 }
  0xca   : > { %641 = vmatmul.mubr.bf16.gmra.mrb[12].mxu0 %v4465_v33  ;;  %721 = vmatmul.mubr.bf16.gmra.mrb[12].mxu1 %v4472_v34 }
  0xcb   : > { %650 = vmatprep.mubr.bf16.mxu0 %v4757_v0  ;;  %730 = vmatprep.mubr.bf16.mxu1 %v4757_v0 }
  0xcc   : > { %3566 = vmatpush3.bf16.msra.mxu1 %v4496_v52  ;;  %3998 = vmatpush3.bf16.msra.mxu0 %v4500_v56 }
  0xcd   : > { %3567 = vmatprep.subr.bf16.mxu1 %v4498_v54  ;;  %3999 = vmatprep.subr.bf16.mxu0 %v4501_v57 }
  0xd0   : > { %3568 = vmatpush3.bf16.msra.mxu1 %v4499_v55  ;;  %4000 = vmatpush3.bf16.msra.mxu0 %v4501_v57 }
  0xd1   : > { %4033 = vmatprep.subr.bf16.mxu0 %v5052_v58  ;;  %3689 = vmatprep.subr.bf16.mxu1 %v4510_v59 }
  0xd2   : > { %651 = vmatmul.mubr.bf16.gmra.mrb[16].mxu0 %v4467_v35  ;;  %731 = vmatmul.mubr.bf16.gmra.mrb[16].mxu1 %v4474_v36  ;;  %v4511_v36 = vld [vmem:[#allocation8] sm:$0xff]  }
  0xd3   : > { %660 = vmatprep.mubr.bf16.mxu0 %v4757_v0  ;;  %740 = vmatprep.mubr.bf16.mxu1 %v4757_v0 }
  0xda   : > { %661 = vmatmul.mubr.bf16.gmra.mrb[20].mxu0 %v4469_v37  ;;  %741 = vmatmul.mubr.bf16.gmra.mrb[20].mxu1 %v4475_v38 }
  0xdb   : > { %670 = vmatprep.mubr.bf16.mxu0 %v4757_v0  ;;  %750 = vmatprep.mubr.bf16.mxu1 %v4757_v0 }
  0xe2   : > { %671 = vmatmul.mubr.bf16.gmra.mrb[24].mxu0 %v4471_v39  ;;  %751 = vmatmul.mubr.bf16.gmra.mrb[24].mxu1 %v4476_v40 }
  0xe3   : > { %680 = vmatprep.mubr.bf16.mxu0 %v4757_v0  ;;  %760 = vmatprep.mubr.bf16.mxu1 %v4757_v0  ;;  %v5061_v0 = vrot.slane %v390_v63, %v394_v62  ;;  %v4518_v62 = vld [vmem:[#allocation8 + $0x50] sm:$0xff]  }
  0xea   : > { %681 = vmatmul.mubr.bf16.gmra.mrb[28].mxu0 %v4473_v41  ;;  %761 = vmatmul.mubr.bf16.gmra.mrb[28].mxu1 %v4477_v42 }
 0x185   : > { %v612_v1 = vpop.f32.mrb[0].mxu0  ;;  %v692_v2 = vpop.f32.mrb[0].mxu1 }
 0x186   : > { %v613_v3 = vadd.f32 %v612_v1, %v5061_v0  ;;  %v5064_v4 = vpop.f32.mrb[1].mxu0  ;;  %v693_v5 = vadd.f32 %v692_v2, %v5061_v0  ;;  %v5067_v6 = vpop.f32.mrb[1].mxu1 }
 0x187   : > { %5813 = vst [vmem:[#allocation17_spill] sm:$0xff] %v5067_v6  ;;  %v616_v7 = vpop.f32.mrb[2].mxu0  ;;  %v696_v8 = vpop.f32.mrb[2].mxu1 }
 0x188   : > { %v771_v9 = vmax.f32 %v613_v3, 0.0  ;;  %v617_v10 = vadd.f32 %v616_v7, %v5061_v0  ;;  %v5070_v11 = vpop.f32.mrb[3].mxu0  ;;  %v787_v12 = vmax.f32 %v693_v5, 0.0  ;;  %v697_v13 = vadd.f32 %v696_v8, %v5061_v0  ;;  %v5073_v14 = vpop.f32.mrb[3].mxu1 }
 0x189   : > { %5814 = vst [vmem:[#allocation18_spill] sm:$0xff] %v5073_v14 }
 0x18a   : > { %845 = vst [vmem:[#allocation2 + $0x28] sm:$0xff] %v771_v9  ;;  %v772_v15 = vmax.f32 %v617_v10, 0.0  ;;  %861 = vst [vmem:[#allocation2 + $0x128] sm:$0xff] %v787_v12  ;;  %v788_v16 = vmax.f32 %v697_v13, 0.0 }
 0x18c   : > { %846 = vst [vmem:[#allocation2 + $0x30] sm:$0xff] %v772_v15  ;;  %v1166_v17 = vpack.c.bf16 %v772_v15, %v771_v9  ;;  %862 = vst [vmem:[#allocation2 + $0x130] sm:$0xff] %v788_v16  ;;  %v5075_v18 = vpack.c.bf16 %v788_v16, %v787_v12  ;;  %v4503_v12 = vld [vmem:[#allocation8 + $0x88] sm:$0xff]   ;;  %v4519_v15 = vld [vmem:[#allocation8 + $0x10] sm:$0xff]  }
 0x18d   : > { %v622_v19 = vpop.f32.mrb[4].mxu0  ;;  %v702_v20 = vpop.f32.mrb[4].mxu1 }
 0x18e   : > { %v623_v21 = vadd.f32 %v622_v19, %v5061_v0  ;;  %v5078_v22 = vpop.f32.mrb[5].mxu0  ;;  %1438 = vmatprep.mubr.bf16.mxu1 %v1166_v17  ;;  %v703_v23 = vadd.f32 %v702_v20, %v5061_v0  ;;  %v5081_v24 = vpop.f32.mrb[5].mxu1  ;;  %v4520_v19 = vld [vmem:[#allocation8 + $0x58] sm:$0xff]  }
 0x18f   : > { %5815 = vst [vmem:[#allocation19_spill] sm:$0xff] %v5081_v24  ;;  %v626_v25 = vpop.f32.mrb[6].mxu0  ;;  %v706_v26 = vpop.f32.mrb[6].mxu1 }
 0x190   : > { %v773_v27 = vmax.f32 %v623_v21, 0.0  ;;  %v627_v28 = vadd.f32 %v626_v25, %v5061_v0  ;;  %v5084_v29 = vpop.f32.mrb[7].mxu0  ;;  %v789_v30 = vmax.f32 %v703_v23, 0.0  ;;  %v707_v31 = vadd.f32 %v706_v26, %v5061_v0  ;;  %v5087_v32 = vpop.f32.mrb[7].mxu1 }
 0x191   : > { %5816 = vst [vmem:[#allocation20_spill] sm:$0xff] %v5087_v32  ;;  %v1069_v34 = vld [vmem:[#allocation2 + $0x27] sm:$0xff] }
 0x192   : > { %847 = vst [vmem:[#allocation2 + $0x48] sm:$0xff] %v773_v27  ;;  %v774_v33 = vmax.f32 %v627_v28, 0.0  ;;  %863 = vst [vmem:[#allocation2 + $0x148] sm:$0xff] %v789_v30  ;;  %v790_v35 = vmax.f32 %v707_v31, 0.0 }
 0x193   : > { %v1133_v37 = vld [vmem:[#allocation2 + $0x29] sm:$0xff]  ;;  %v1134_v38 = vld [vmem:[#allocation2 + $0x31] sm:$0xff] }
 0x194   : > { %v1070_v39 = vld [vmem:[#allocation2 + $0x2f] sm:$0xff]  ;;  %848 = vst [vmem:[#allocation2 + $0x50] sm:$0xff] %v774_v33  ;;  %v5089_v40 = vpack.c.bf16 %v1134_v38, %v1133_v37  ;;  %v1169_v42 = vpack.c.bf16 %v774_v33, %v773_v27  ;;  %864 = vst [vmem:[#allocation2 + $0x150] sm:$0xff] %v790_v35  ;;  %v5091_v43 = vpack.c.bf16 %v790_v35, %v789_v30  ;;  %v4521_v37 = vld [vmem:[#allocation8 + $0x18] sm:$0xff]  }
 0x195   : > { %v1165_v41 = vpack.c.bf16 %v1070_v39, %v1069_v34  ;;  %v632_v45 = vpop.f32.mrb[8].mxu0  ;;  %v712_v46 = vpop.f32.mrb[8].mxu1 }
 0x196   : > { %v633_v47 = vadd.f32 %v632_v45, %v5061_v0  ;;  %v5094_v48 = vpop.f32.mrb[9].mxu0  ;;  %4001 = vmatprep.mubr.bf16.mxu0 %v5089_v40  ;;  %v713_v49 = vadd.f32 %v712_v46, %v5061_v0  ;;  %v5098_v50 = vpop.f32.mrb[9].mxu1 }
 0x197   : > { %1439 = vmatmul.mubr.bf16.vlgmr.msra.gmra.mrb[32].mxu1 %v1165_v41  ;;  %5817 = vst [vmem:[#allocation21_spill] sm:$0xff] %v5098_v50  ;;  %v636_v51 = vpop.f32.mrb[10].mxu0  ;;  %v716_v52 = vpop.f32.mrb[10].mxu1 }
 0x198   : > { %1446 = vmatprep.mubr.bf16.mxu1 %v1169_v42  ;;  %3690 = vmatpush3.bf16.msra.mxu1 %v4511_v36  ;;  %v775_v54 = vmax.f32 %v633_v47, 0.0  ;;  %v637_v55 = vadd.f32 %v636_v51, %v5061_v0  ;;  %v5101_v56 = vpop.f32.mrb[11].mxu0  ;;  %v791_v57 = vmax.f32 %v713_v49, 0.0  ;;  %v717_v59 = vadd.f32 %v716_v52, %v5061_v0  ;;  %v5104_v60 = vpop.f32.mrb[11].mxu1  ;;  %v4504_v36 = vld [vmem:[#allocation8 + $0x90] sm:$0xff]   ;;  %v4505_v49 = vld [vmem:[#allocation8 + $0x98] sm:$0xff]  }
 0x199   : > { %5818 = vst [vmem:[#allocation22_spill] sm:$0xff] %v5104_v60  ;;  %3691 = vmatprep.subr.bf16.mxu1 %v4514_v44  ;;  %v1071_v1 = vld [vmem:[#allocation2 + $0x47] sm:$0xff] }
 0x19a   : > { %849 = vst [vmem:[#allocation2 + $0x68] sm:$0xff] %v775_v54  ;;  %v776_v63 = vmax.f32 %v637_v55, 0.0  ;;  %865 = vst [vmem:[#allocation2 + $0x168] sm:$0xff] %v791_v57  ;;  %v792_v2 = vmax.f32 %v717_v59, 0.0  ;;  %v4524_v52 = vld [vmem:[#allocation8 + $0x60] sm:$0xff]  }
 0x19b   : > { %v1135_v3 = vld [vmem:[#allocation2 + $0x49] sm:$0xff]  ;;  %v1136_v5 = vld [vmem:[#allocation2 + $0x51] sm:$0xff]  ;;  %v4525_v55 = vld [vmem:[#allocation8 + $0x20] sm:$0xff]  }
 0x19c   : > { %v1072_v7 = vld [vmem:[#allocation2 + $0x4f] sm:$0xff]  ;;  %3692 = vmatpush3.bf16.msra.mxu1 %v4515_v53  ;;  %850 = vst [vmem:[#allocation2 + $0x70] sm:$0xff] %v776_v63  ;;  %v5106_v8 = vpack.c.bf16 %v1136_v5, %v1135_v3  ;;  %v1172_v10 = vpack.c.bf16 %v776_v63, %v775_v54  ;;  %866 = vst [vmem:[#allocation2 + $0x170] sm:$0xff] %v792_v2  ;;  %v5108_v13 = vpack.c.bf16 %v792_v2, %v791_v57 }
 0x19d   : > { %v1168_v9 = vpack.c.bf16 %v1072_v7, %v1071_v1  ;;  %3693 = vmatprep.subr.bf16.mxu1 %v4518_v62  ;;  %v642_v16 = vpop.f32.mrb[12].mxu0  ;;  %v722_v17 = vpop.f32.mrb[12].mxu1  ;;  %v4526_v1 = vld [vmem:[#allocation8 + $0x68] sm:$0xff]  }
 0x19e   : > { %v643_v20 = vadd.f32 %v642_v16, %v5061_v0  ;;  %v5111_v21 = vpop.f32.mrb[13].mxu0  ;;  %4002 = vmatmul.mubr.bf16.vlgmr.msra.gmra.mrb[32].mxu0 %v5106_v8  ;;  %v723_v23 = vadd.f32 %v722_v17, %v5061_v0  ;;  %v5115_v25 = vpop.f32.mrb[13].mxu1  ;;  %v4506_v16 = vld [vmem:[#allocation8 + $0xa0] sm:$0xff]   ;;  %v4527_v17 = vld [vmem:[#allocation8 + $0x28] sm:$0xff]  }
 0x19f   : > { %1447 = vmatmul.mubr.bf16.gmra.mrb[36].mxu1 %v1168_v9  ;;  %5819 = vst [vmem:[#allocation23_spill] sm:$0xff] %v5115_v25  ;;  %v646_v26 = vpop.f32.mrb[14].mxu0  ;;  %4034 = vmatpush3.bf16.msra.mxu0 %v5052_v58  ;;  %v726_v27 = vpop.f32.mrb[14].mxu1 }
 0x1a0   : > { %1454 = vmatprep.mubr.bf16.mxu1 %v1172_v10  ;;  %v777_v28 = vmax.f32 %v643_v20, 0.0  ;;  %v647_v30 = vadd.f32 %v646_v26, %v5061_v0  ;;  %v5119_v31 = vpop.f32.mrb[15].mxu0  ;;  %v793_v33 = vmax.f32 %v723_v23, 0.0  ;;  %v727_v34 = vadd.f32 %v726_v27, %v5061_v0  ;;  %v5122_v35 = vpop.f32.mrb[15].mxu1  ;;  %4035 = vmatprep.subr.bf16.mxu0 %v4503_v12 }
 0x1a1   : > { %5820 = vst [vmem:[#allocation24_spill] sm:$0xff] %v5122_v35  ;;  %3694 = vmatpush3.bf16.msra.mxu1 %v4519_v15  ;;  %v1073_v39 = vld [vmem:[#allocation2 + $0x67] sm:$0xff] }
 0x1a2   : > { %3695 = vmatprep.subr.bf16.mxu1 %v4520_v19  ;;  %851 = vst [vmem:[#allocation2 + $0x88] sm:$0xff] %v777_v28  ;;  %v778_v38 = vmax.f32 %v647_v30, 0.0  ;;  %867 = vst [vmem:[#allocation2 + $0x188] sm:$0xff] %v793_v33  ;;  %v794_v58 = vmax.f32 %v727_v34, 0.0  ;;  %v4516_v35 = vld [vmem:[#allocation8 + $0x1c8] sm:$0xff]  }
 0x1a3   : > { %v1137_v41 = vld [vmem:[#allocation2 + $0x69] sm:$0xff]  ;;  %v1138_v42 = vld [vmem:[#allocation2 + $0x71] sm:$0xff]  ;;  %4036 = vmatpush3.bf16.msra.mxu0 %v4503_v12 }
 0x1a4   : > { %v1074_v44 = vld [vmem:[#allocation2 + $0x6f] sm:$0xff]  ;;  %852 = vst [vmem:[#allocation2 + $0x90] sm:$0xff] %v778_v38  ;;  %v5124_v45 = vpack.c.bf16 %v1138_v42, %v1137_v41  ;;  %v1175_v47 = vpack.c.bf16 %v778_v38, %v777_v28  ;;  %868 = vst [vmem:[#allocation2 + $0x190] sm:$0xff] %v794_v58  ;;  %4037 = vmatprep.subr.bf16.mxu0 %v4504_v36  ;;  %v5126_v51 = vpack.c.bf16 %v794_v58, %v793_v33 }
 0x1a5   : > { %v1171_v46 = vpack.c.bf16 %v1074_v44, %v1073_v39  ;;  %v652_v53 = vpop.f32.mrb[16].mxu0  ;;  %v732_v54 = vpop.f32.mrb[16].mxu1  ;;  %3696 = vmatpush3.bf16.msra.mxu1 %v4521_v37  ;;  %v4530_v38 = vld [vmem:[#allocation8 + $0x70] sm:$0xff]  }
 0x1a6   : > { %v653_v57 = vadd.f32 %v652_v53, %v5061_v0  ;;  %v5129_v59 = vpop.f32.mrb[17].mxu0  ;;  %4005 = vmatprep.mubr.bf16.mxu0 %v5124_v45  ;;  %v733_v62 = vadd.f32 %v732_v54, %v5061_v0  ;;  %v5133_v63 = vpop.f32.mrb[17].mxu1  ;;  %3697 = vmatprep.subr.bf16.mxu1 %v4524_v52  ;;  %v4531_v41 = vld [vmem:[#allocation8 + $0x30] sm:$0xff]  }
 0x1a7   : > { %1455 = vmatmul.mubr.bf16.gmra.mrb[40].mxu1 %v1171_v46  ;;  %5821 = vst [vmem:[#allocation25_spill] sm:$0xff] %v5133_v63  ;;  %v656_v2 = vpop.f32.mrb[18].mxu0  ;;  %v736_v3 = vpop.f32.mrb[18].mxu1  ;;  %4038 = vmatpush3.bf16.msra.mxu0 %v4504_v36  ;;  %v4507_v36 = vld [vmem:[#allocation8 + $0xa8] sm:$0xff]  }
 0x1a8   : > { %1462 = vmatprep.mubr.bf16.mxu1 %v1175_v47  ;;  %v779_v5 = vmax.f32 %v653_v57, 0.0  ;;  %v657_v7 = vadd.f32 %v656_v2, %v5061_v0  ;;  %v5136_v9 = vpop.f32.mrb[19].mxu0  ;;  %v795_v10 = vmax.f32 %v733_v62, 0.0  ;;  %v737_v12 = vadd.f32 %v736_v3, %v5061_v0  ;;  %v5139_v15 = vpop.f32.mrb[19].mxu1  ;;  %4039 = vmatprep.subr.bf16.mxu0 %v4505_v49  ;;  %v4508_v3 = vld [vmem:[#allocation8 + $0xb0] sm:$0xff]  }
 0x1a9   : > { %5822 = vst [vmem:[#allocation26_spill] sm:$0xff] %v5136_v9  ;;  %5823 = vst [vmem:[#allocation27_spill] sm:$0xff] %v5139_v15  ;;  %3698 = vmatpush3.bf16.msra.mxu1 %v4525_v55  ;;  %v1075_v20 = vld [vmem:[#allocation2 + $0x87] sm:$0xff]  ;;  %v4556_v9 = vld [vmem:[#allocation9 + $0x30] sm:$0xff]  }
 0x1aa   : > { %853 = vst [vmem:[#allocation2 + $0xa8] sm:$0xff] %v779_v5  ;;  %v780_v19 = vmax.f32 %v657_v7, 0.0  ;;  %869 = vst [vmem:[#allocation2 + $0x1a8] sm:$0xff] %v795_v10  ;;  %v796_v23 = vmax.f32 %v737_v12, 0.0  ;;  %3699 = vmatprep.subr.bf16.mxu1 %v4526_v1 }
 0x1ab   : > { %v1139_v26 = vld [vmem:[#allocation2 + $0x89] sm:$0xff]  ;;  %v1140_v27 = vld [vmem:[#allocation2 + $0x91] sm:$0xff]  ;;  %4040 = vmatpush3.bf16.msra.mxu0 %v4505_v49 }
 0x1ac   : > { %v1076_v28 = vld [vmem:[#allocation2 + $0x8f] sm:$0xff]  ;;  %854 = vst [vmem:[#allocation2 + $0xb0] sm:$0xff] %v780_v19  ;;  %v5141_v30 = vpack.c.bf16 %v1140_v27, %v1139_v26  ;;  %v1178_v34 = vpack.c.bf16 %v780_v19, %v779_v5  ;;  %870 = vst [vmem:[#allocation2 + $0x1b0] sm:$0xff] %v796_v23  ;;  %4041 = vmatprep.subr.bf16.mxu0 %v4506_v16  ;;  %v5143_v37 = vpack.c.bf16 %v796_v23, %v795_v10  ;;  %v4532_v49 = vld [vmem:[#allocation8 + $0x78] sm:$0xff]  }
 0x1ad   : > { %v1174_v33 = vpack.c.bf16 %v1076_v28, %v1075_v20  ;;  %v662_v39 = vpop.f32.mrb[20].mxu0  ;;  %v742_v58 = vpop.f32.mrb[20].mxu1  ;;  %3700 = vmatpush3.bf16.msra.mxu1 %v4527_v17  ;;  %v4533_v5 = vld [vmem:[#allocation8 + $0x38] sm:$0xff]   ;;  %v1092_v60 = vld [vmem:[#allocation2 + $0x18f] sm:$0xff] }
 0x1ae   : > { %v663_v42 = vadd.f32 %v662_v39, %v5061_v0  ;;  %v5146_v44 = vpop.f32.mrb[21].mxu0  ;;  %4006 = vmatmul.mubr.bf16.gmra.mrb[36].mxu0 %v5141_v30  ;;  %v743_v46 = vadd.f32 %v742_v58, %v5061_v0  ;;  %v5150_v47 = vpop.f32.mrb[21].mxu1  ;;  %3701 = vmatprep.subr.bf16.mxu1 %v4530_v38  ;;  %v4509_v27 = vld [vmem:[#allocation8 + $0xb8] sm:$0xff]  }
 0x1af   : > { %1463 = vmatmul.mubr.bf16.gmra.mrb[44].mxu1 %v1174_v33  ;;  %5824 = vst [vmem:[#allocation28_spill] sm:$0xff] %v5150_v47  ;;  %v666_v52 = vpop.f32.mrb[22].mxu0  ;;  %v746_v53 = vpop.f32.mrb[22].mxu1  ;;  %4042 = vmatpush3.bf16.msra.mxu0 %v4506_v16 }
 0x1b0   : > { %1470 = vmatprep.mubr.bf16.mxu1 %v1178_v34  ;;  %v781_v54 = vmax.f32 %v663_v42, 0.0  ;;  %v667_v55 = vadd.f32 %v666_v52, %v5061_v0  ;;  %v5153_v57 = vpop.f32.mrb[23].mxu0  ;;  %v797_v62 = vmax.f32 %v743_v46, 0.0  ;;  %v747_v1 = vadd.f32 %v746_v53, %v5061_v0  ;;  %v5156_v2 = vpop.f32.mrb[23].mxu1  ;;  %4043 = vmatprep.subr.bf16.mxu0 %v4507_v36 }
 0x1b1   : > { %5825 = vst [vmem:[#allocation29_spill] sm:$0xff] %v5153_v57  ;;  %5826 = vst [vmem:[#allocation30_spill] sm:$0xff] %v5156_v2  ;;  %3702 = vmatpush3.bf16.msra.mxu1 %v4531_v41  ;;  %v1077_v10 = vld [vmem:[#allocation2 + $0xa7] sm:$0xff] }
 0x1b2   : > { %855 = vst [vmem:[#allocation2 + $0xc8] sm:$0xff] %v781_v54  ;;  %v782_v7 = vmax.f32 %v667_v55, 0.0  ;;  %871 = vst [vmem:[#allocation2 + $0x1c8] sm:$0xff] %v797_v62  ;;  %v798_v12 = vmax.f32 %v747_v1, 0.0  ;;  %3703 = vmatprep.subr.bf16.mxu1 %v4532_v49 }
 0x1b3   : > { %v1141_v16 = vld [vmem:[#allocation2 + $0xa9] sm:$0xff]  ;;  %v1142_v17 = vld [vmem:[#allocation2 + $0xb1] sm:$0xff]  ;;  %4044 = vmatpush3.bf16.msra.mxu0 %v4507_v36 }
 0x1b4   : > { %v1078_v19 = vld [vmem:[#allocation2 + $0xaf] sm:$0xff]  ;;  %856 = vst [vmem:[#allocation2 + $0xd0] sm:$0xff] %v782_v7  ;;  %v5158_v20 = vpack.c.bf16 %v1142_v17, %v1141_v16  ;;  %v1181_v26 = vpack.c.bf16 %v782_v7, %v781_v54  ;;  %872 = vst [vmem:[#allocation2 + $0x1d0] sm:$0xff] %v798_v12  ;;  %4045 = vmatprep.subr.bf16.mxu0 %v4508_v3  ;;  %v5162_v28 = vpack.c.bf16 %v798_v12, %v797_v62  ;;  %v4512_v62 = vld [vmem:[#allocation8 + $0x1c0] sm:$0xff]  }
 0x1b5   : > { %v5160_v23 = vpack.c.bf16 %v1078_v19, %v1077_v10  ;;  %v672_v33 = vpop.f32.mrb[24].mxu0  ;;  %v752_v34 = vpop.f32.mrb[24].mxu1  ;;  %3704 = vmatpush3.bf16.msra.mxu1 %v4533_v5  ;;  %v1158_v15 = vld [vmem:[#allocation2 + $0x1b1] sm:$0xff] }
 0x1b6   : > { %v673_v38 = vadd.f32 %v672_v33, %v5061_v0  ;;  %v5165_v39 = vpop.f32.mrb[25].mxu0  ;;  %4009 = vmatprep.mubr.bf16.mxu0 %v5158_v20  ;;  %v753_v36 = vadd.f32 %v752_v34, %v5061_v0  ;;  %v5170_v58 = vpop.f32.mrb[25].mxu1 }
 0x1b7   : > { %5827 = vst [vmem:[#allocation31_spill] sm:$0xff] %v5165_v39  ;;  %1471 = vmatmul.mubr.bf16.gmra.mrb[48].mxu1 %v5160_v23  ;;  %5828 = vst [vmem:[#allocation32_spill] sm:$0xff] %v5170_v58  ;;  %v676_v41 = vpop.f32.mrb[26].mxu0  ;;  %v756_v42 = vpop.f32.mrb[26].mxu1  ;;  %4046 = vmatpush3.bf16.msra.mxu0 %v4508_v3  ;;  %v1154_v58 = vld [vmem:[#allocation2 + $0x171] sm:$0xff] }
 0x1b8   : > { %1478 = vmatprep.mubr.bf16.mxu1 %v1181_v26  ;;  %v783_v46 = vmax.f32 %v673_v38, 0.0  ;;  %v677_v49 = vadd.f32 %v676_v41, %v5061_v0  ;;  %v5173_v52 = vpop.f32.mrb[27].mxu0  ;;  %v799_v53 = vmax.f32 %v753_v36, 0.0  ;;  %v757_v54 = vadd.f32 %v756_v42, %v5061_v0  ;;  %v5176_v55 = vpop.f32.mrb[27].mxu1  ;;  %4047 = vmatprep.subr.bf16.mxu0 %v4509_v27 }
 0x1b9   : > { %5829 = vst [vmem:[#allocation33_spill] sm:$0xff] %v5173_v52  ;;  %5830 = vst [vmem:[#allocation34_spill] sm:$0xff] %v5176_v55  ;;  %v1079_v5 = vld [vmem:[#allocation2 + $0xc7] sm:$0xff] }
 0x1ba   : > { %857 = vst [vmem:[#allocation2 + $0xe8] sm:$0xff] %v783_v46  ;;  %v784_v1 = vmax.f32 %v677_v49, 0.0  ;;  %873 = vst [vmem:[#allocation2 + $0x1e8] sm:$0xff] %v799_v53  ;;  %v800_v7 = vmax.f32 %v757_v54, 0.0 }
 0x1bb   : > { %v1143_v10 = vld [vmem:[#allocation2 + $0xc9] sm:$0xff]  ;;  %v1144_v12 = vld [vmem:[#allocation2 + $0xd1] sm:$0xff]  ;;  %4048 = vmatpush3.bf16.msra.mxu0 %v4509_v27 }
 0x1bc   : > { %v1080_v3 = vld [vmem:[#allocation2 + $0xcf] sm:$0xff]  ;;  %858 = vst [vmem:[#allocation2 + $0xf0] sm:$0xff] %v784_v1  ;;  %v5178_v16 = vpack.c.bf16 %v1144_v12, %v1143_v10  ;;  %v1184_v19 = vpack.c.bf16 %v784_v1, %v783_v46  ;;  %874 = vst [vmem:[#allocation2 + $0x1f0] sm:$0xff] %v800_v7  ;;  %3825 = vmatprep.subr.bf16.mxu0 %v4512_v62  ;;  %v5182_v26 = vpack.c.bf16 %v800_v7, %v799_v53 }
 0x1bd   : > { %v5180_v17 = vpack.c.bf16 %v1080_v3, %v1079_v5  ;;  %v682_v33 = vpop.f32.mrb[28].mxu0  ;;  %v762_v34 = vpop.f32.mrb[28].mxu1 }
 0x1be   : > { %v683_v38 = vadd.f32 %v682_v33, %v5061_v0  ;;  %v5185_v36 = vpop.f32.mrb[29].mxu0  ;;  %4010 = vmatmul.mubr.bf16.gmra.mrb[40].mxu0 %v5178_v16  ;;  %v763_v27 = vadd.f32 %v762_v34, %v5061_v0  ;;  %v5190_v41 = vpop.f32.mrb[29].mxu1 }
 0x1bf   : > { %5831 = vst [vmem:[#allocation35_spill] sm:$0xff] %v5185_v36  ;;  %1479 = vmatmul.mubr.bf16.gmra.mrb[52].mxu1 %v5180_v17  ;;  %5832 = vst [vmem:[#allocation36_spill] sm:$0xff] %v5190_v41  ;;  %v686_v42 = vpop.f32.mrb[30].mxu0  ;;  %v766_v46 = vpop.f32.mrb[30].mxu1  ;;  %v1157_v41 = vld [vmem:[#allocation2 + $0x1a9] sm:$0xff] }
 0x1c0   : > { %1486 = vmatprep.mubr.bf16.mxu1 %v1184_v19  ;;  %v785_v49 = vmax.f32 %v683_v38, 0.0  ;;  %v687_v53 = vadd.f32 %v686_v42, %v5061_v0  ;;  %v5193_v54 = vpop.f32.mrb[31].mxu0  ;;  %v801_v62 = vmax.f32 %v763_v27, 0.0  ;;  %v767_v1 = vadd.f32 %v766_v46, %v5061_v0  ;;  %v5196_v5 = vpop.f32.mrb[31].mxu1  ;;  %v1149_v46 = vld [vmem:[#allocation2 + $0x129] sm:$0xff] }
 0x1c1   : > { %5833 = vst [vmem:[#allocation37_spill] sm:$0xff] %v5193_v54  ;;  %5834 = vst [vmem:[#allocation38_spill] sm:$0xff] %v5196_v5  ;;  %v1081_v10 = vld [vmem:[#allocation2 + $0xe7] sm:$0xff] }
 0x1c2   : > { %859 = vst [vmem:[#allocation2 + $0x108] sm:$0xff] %v785_v49  ;;  %v5198_v7 = vmax.f32 %v687_v53, 0.0  ;;  %875 = vst [vmem:[#allocation2 + $0x208] sm:$0xff] %v801_v62  ;;  %v802_v12 = vmax.f32 %v767_v1, 0.0  ;;  %v1150_v53 = vld [vmem:[#allocation2 + $0x131] sm:$0xff] }
 0x1c3   : > { %v1145_v3 = vld [vmem:[#allocation2 + $0xe9] sm:$0xff]  ;;  %v1146_v33 = vld [vmem:[#allocation2 + $0xf1] sm:$0xff] }
 0x1c4   : > { %v1082_v19 = vld [vmem:[#allocation2 + $0xef] sm:$0xff]  ;;  %860 = vst [vmem:[#allocation2 + $0x110] sm:$0xff] %v5198_v7  ;;  %v5201_v34 = vpack.c.bf16 %v1146_v33, %v1145_v3  ;;  %v1187_v27 = vpack.c.bf16 %v5198_v7, %v785_v49  ;;  %876 = vst [vmem:[#allocation2 + $0x210] sm:$0xff] %v802_v12  ;;  %v5206_v0 = vpack.c.bf16 %v802_v12, %v801_v62  ;;  %v1085_v49 = vld [vmem:[#allocation2 + $0x127] sm:$0xff] }
 0x1c5   : > { %v5203_v38 = vpack.c.bf16 %v1082_v19, %v1081_v10  ;;  %v5214_v33 = vpack.c.bf16 %v1150_v53, %v1149_v46  ;;  %v1151_v62 = vld [vmem:[#allocation2 + $0x149] sm:$0xff]  ;;  %v1152_v12 = vld [vmem:[#allocation2 + $0x151] sm:$0xff] }
 0x1c6   : > { %4013 = vmatprep.mubr.bf16.mxu0 %v5201_v34  ;;  %v1086_v19 = vld [vmem:[#allocation2 + $0x12f] sm:$0xff] }
 0x1c7   : > { %1487 = vmatmul.mubr.bf16.gmra.mrb[56].mxu1 %v5203_v38  ;;  %v1155_v46 = vld [vmem:[#allocation2 + $0x189] sm:$0xff]  ;;  %v1156_v53 = vld [vmem:[#allocation2 + $0x191] sm:$0xff] }
 0x1c8   : > { %1494 = vmatprep.mubr.bf16.mxu1 %v1187_v27  ;;  %v1153_v27 = vld [vmem:[#allocation2 + $0x169] sm:$0xff]  ;;  %v1162_v63 = vld [vmem:[#allocation2 + $0x1f1] sm:$0xff] }
 0x1c9   : > { %v1083_v42 = vld [vmem:[#allocation2 + $0x107] sm:$0xff] }
 0x1ca   : > { %v1161_v2 = vld [vmem:[#allocation2 + $0x1e9] sm:$0xff] }
 0x1cb   : > { %v1147_v1 = vld [vmem:[#allocation2 + $0x109] sm:$0xff]  ;;  %v1148_v55 = vld [vmem:[#allocation2 + $0x111] sm:$0xff] }
 0x1cc   : > { %v1084_v5 = vld [vmem:[#allocation2 + $0x10f] sm:$0xff]  ;;  %v5210_v3 = vpack.c.bf16 %v1148_v55, %v1147_v1  ;;  %v5220_v55 = vpack.c.bf16 %v1152_v12, %v1151_v62  ;;  %v5230_v62 = vpack.c.bf16 %v1156_v53, %v1155_v46 }
 0x1cd   : > { %v5212_v10 = vpack.c.bf16 %v1084_v5, %v1083_v42  ;;  %v5222_v5 = vpack.c.bf16 %v1086_v19, %v1085_v49  ;;  %v5224_v42 = vpack.c.bf16 %v1154_v58, %v1153_v27  ;;  %v1088_v1 = vld [vmem:[#allocation2 + $0x14f] sm:$0xff]  ;;  %v5234_v58 = vpack.c.bf16 %v1158_v15, %v1157_v41 }
 0x1ce   : > { %4014 = vmatmul.mubr.bf16.gmra.mrb[44].mxu0 %v5210_v3  ;;  %v1159_v12 = vld [vmem:[#allocation2 + $0x1c9] sm:$0xff]  ;;  %v1160_v19 = vld [vmem:[#allocation2 + $0x1d1] sm:$0xff]  ;;  %v5244_v15 = vpack.c.bf16 %v1162_v63, %v1161_v2 }
 0x1cf   : > { %1495 = vmatmul.mubr.bf16.gmra.mrb[60].mxu1 %v5212_v10  ;;  %4017 = vmatprep.mubr.bf16.mxu0 %v5214_v33  ;;  %v1090_v27 = vld [vmem:[#allocation2 + $0x16f] sm:$0xff]  ;;  %v5240_v46 = vpack.c.bf16 %v1160_v19, %v1159_v12  ;;  %v1093_v63 = vld [vmem:[#allocation2 + $0x1a7] sm:$0xff] }
 0x1d0   : > { %1502 = vmatprep.mubr.bf16.mxu1 %v5075_v18  ;;  %v1087_v18 = vld [vmem:[#allocation2 + $0x147] sm:$0xff]  ;;  %v942_v53 = vld [vmem:[#allocation2 + $0x11] sm:$0xff] }
 0x1d1   : > { %v5232_v49 = vpack.c.bf16 %v1088_v1, %v1087_v18  ;;  %v941_v41 = vld [vmem:[#allocation2 + $0x9] sm:$0xff]  ;;  %v1164_v47 = vld [vmem:[#allocation2 + $0x211] sm:$0xff] }
 0x1d2   : > { %v1163_v1 = vld [vmem:[#allocation2 + $0x209] sm:$0xff]  ;;  %v975_v12 = vpack.c.bf16 %v942_v53, %v941_v41 }
 0x1d3   : > { %v1212_v19 = vpack.c.bf16 %v1164_v47, %v1163_v1  ;;  %v1094_v2 = vld [vmem:[#allocation2 + $0x1af] sm:$0xff]  ;;  %v4528_v1 = vld [vmem:[#allocation8 + $0x1d8] sm:$0xff]  }
 0x1d4   : > { %v4522_v47 = vld [vmem:[#allocation8 + $0x1d0] sm:$0xff]  }
 0x1d5   : > { %v4523_v53 = vld [vmem:[#allocation8 + $0x190] sm:$0xff]  }
 0x1d6   : > { %4018 = vmatmul.mubr.bf16.gmra.mrb[48].mxu0 %v5220_v55 }
 0x1d7   : > { %1503 = vmatmul.mubr.bf16.gmra.mrb[64].mxu1 %v5222_v5  ;;  %4021 = vmatprep.mubr.bf16.mxu0 %v5224_v42 }
 0x1d8   : > { %1510 = vmatprep.mubr.bf16.mxu1 %v5091_v43  ;;  %v1089_v43 = vld [vmem:[#allocation2 + $0x167] sm:$0xff] }
 0x1d9   : > { %v5242_v18 = vpack.c.bf16 %v1090_v27, %v1089_v43  ;;  %v4513_v27 = vld [vmem:[#allocation8 + $0x180] sm:$0xff]  }
 0x1de   : > { %4022 = vmatmul.mubr.bf16.gmra.mrb[52].mxu0 %v5230_v62 }
 0x1df   : > { %1511 = vmatmul.mubr.bf16.gmra.mrb[68].mxu1 %v5232_v49  ;;  %4025 = vmatprep.mubr.bf16.mxu0 %v5234_v58 }
 0x1e0   : > { %1518 = vmatprep.mubr.bf16.mxu1 %v5108_v13  ;;  %v1091_v13 = vld [vmem:[#allocation2 + $0x187] sm:$0xff] }
 0x1e1   : > { %v5250_v43 = vpack.c.bf16 %v1092_v60, %v1091_v13  ;;  %v4517_v60 = vld [vmem:[#allocation8 + $0x188] sm:$0xff]  }
 0x1e2   : > { %v1096_v13 = vld [vmem:[#allocation2 + $0x1cf] sm:$0xff] }
 0x1e6   : > { %4026 = vmatmul.mubr.bf16.gmra.mrb[56].mxu0 %v5240_v46 }
 0x1e7   : > { %1519 = vmatmul.mubr.bf16.gmra.mrb[72].mxu1 %v5242_v18  ;;  %4029 = vmatprep.mubr.bf16.mxu0 %v5244_v15 }
 0x1e8   : > { %1526 = vmatprep.mubr.bf16.mxu1 %v5126_v51  ;;  %v5254_v51 = vpack.c.bf16 %v1094_v2, %v1093_v63  ;;  %v4536_v63 = vld [vmem:[#allocation8 + $0x1e8] sm:$0xff]   ;;  %v4538_v2 = vld [vmem:[#allocation8 + $0x1f0] sm:$0xff]  }
 0x1ee   : > { %4030 = vmatmul.mubr.bf16.gmra.mrb[60].mxu0 %v1212_v19  ;;  %v4535_v19 = vld [vmem:[#allocation8 + $0x1a0] sm:$0xff]  }
 0x1ef   : > { %1527 = vmatmul.mubr.bf16.gmra.mrb[76].mxu1 %v5250_v43  ;;  %4049 = vmatprep.mubr.bf16.mxu0 %v975_v12 }
 0x1f0   : > { %1534 = vmatprep.mubr.bf16.mxu1 %v5143_v37  ;;  %v1095_v37 = vld [vmem:[#allocation2 + $0x1c7] sm:$0xff] }
 0x1f1   : > { %v5260_v41 = vpack.c.bf16 %v1096_v13, %v1095_v37  ;;  %v4541_v37 = vld [vmem:[#allocation8 + $0x1b8] sm:$0xff]   ;;  %v4542_v13 = vld [vmem:[#allocation8 + $0x200] sm:$0xff]  }
 0x1f6   : > { %4050 = vmatmul.mubr.bf16.vlgmr.msra.gmra.mrb[32].mxu0 %v5089_v40  ;;  %v4529_v40 = vld [vmem:[#allocation8 + $0x198] sm:$0xff]  }
 0x1f7   : > { %1535 = vmatmul.mubr.bf16.gmra.mrb[80].mxu1 %v5254_v51  ;;  %3826 = vmatpush3.bf16.msra.mxu0 %v4513_v27 }
 0x1f8   : > { %4053 = vmatprep.mubr.bf16.mxu0 %v5106_v8  ;;  %1542 = vmatprep.mubr.bf16.mxu1 %v5162_v28  ;;  %v1097_v8 = vld [vmem:[#allocation2 + $0x1e7] sm:$0xff] }
 0x1f9   : > { %3827 = vmatprep.subr.bf16.mxu0 %v4516_v35  ;;  %v1098_v35 = vld [vmem:[#allocation2 + $0x1ef] sm:$0xff]  ;;  %v4534_v28 = vld [vmem:[#allocation8 + $0x1e0] sm:$0xff]  }
 0x1fa   : > { %v5266_v12 = vpack.c.bf16 %v1098_v35, %v1097_v8  ;;  %v879_v35 = vld [vmem:[#allocation2 + $0x27] sm:$0xff] }
 0x1fb   : > { %3828 = vmatpush3.bf16.msra.mxu0 %v4517_v60  ;;  %v4539_v60 = vld [vmem:[#allocation8 + $0x1b0] sm:$0xff]  }
 0x1fc   : > { %3829 = vmatprep.subr.bf16.mxu0 %v4522_v47  ;;  %v4540_v47 = vld [vmem:[#allocation8 + $0x1f8] sm:$0xff]  }
 0x1fe   : > { %4054 = vmatmul.mubr.bf16.gmra.mrb[36].mxu0 %v5124_v45  ;;  %v4537_v45 = vld [vmem:[#allocation8 + $0x1a8] sm:$0xff]  }
 0x1ff   : > { %1543 = vmatmul.mubr.bf16.gmra.mrb[84].mxu1 %v5260_v41  ;;  %4057 = vmatprep.mubr.bf16.mxu0 %v5141_v30  ;;  %v1099_v30 = vld [vmem:[#allocation2 + $0x207] sm:$0xff] }
 0x200   : > { %1550 = vmatprep.mubr.bf16.mxu1 %v5182_v26  ;;  %3830 = vmatpush3.bf16.msra.mxu0 %v4523_v53  ;;  %v1100_v26 = vld [vmem:[#allocation2 + $0x20f] sm:$0xff] }
 0x201   : > { %3831 = vmatprep.subr.bf16.mxu0 %v4528_v1  ;;  %v5272_v27 = vpack.c.bf16 %v1100_v26, %v1099_v30  ;;  %v912_v1 = vld [vmem:[#allocation2 + $0x30] sm:$0xff]  ;;  %v881_v26 = vld [vmem:[#allocation2 + $0x47] sm:$0xff] }
 0x202   : > { %v916_v30 = vld [vmem:[#allocation2 + $0x70] sm:$0xff] }
 0x204   : > { %3832 = vmatpush3.bf16.msra.mxu0 %v4529_v40  ;;  %v911_v40 = vld [vmem:[#allocation2 + $0x28] sm:$0xff] }
 0x205   : > { %3833 = vmatprep.subr.bf16.mxu0 %v4534_v28  ;;  %v977_v8 = vpack.c.bf16 %v912_v1, %v911_v40  ;;  %v920_v1 = vld [vmem:[#allocation2 + $0xb0] sm:$0xff] }
 0x206   : > { %4058 = vmatmul.mubr.bf16.gmra.mrb[40].mxu0 %v5158_v20  ;;  %v4759_v20 = vmov 0.0|0.0  }
 0x207   : > { %1551 = vmatmul.mubr.bf16.gmra.mrb[88].mxu1 %v5266_v12  ;;  %4061 = vmatprep.mubr.bf16.mxu0 %v5178_v16  ;;  %v877_v16 = vld [vmem:[#allocation2 + $0x7] sm:$0xff] }
 0x208   : > { %1558 = vmatprep.mubr.bf16.mxu1 %v5206_v0  ;;  %3834 = vmatpush3.bf16.msra.mxu0 %v4535_v19  ;;  %v878_v0 = vld [vmem:[#allocation2 + $0xf] sm:$0xff] }
 0x209   : > { %3835 = vmatprep.subr.bf16.mxu0 %v4536_v63  ;;  %v973_v53 = vpack.c.bf16 %v878_v0, %v877_v16  ;;  %v913_v19 = vld [vmem:[#allocation2 + $0x48] sm:$0xff] }
 0x20a   : > { %v883_v16 = vld [vmem:[#allocation2 + $0x67] sm:$0xff] }
 0x20b   : > { %v917_v0 = vld [vmem:[#allocation2 + $0x88] sm:$0xff] }
 0x20c   : > { %3836 = vmatpush3.bf16.msra.mxu0 %v4537_v45  ;;  %v882_v45 = vld [vmem:[#allocation2 + $0x4f] sm:$0xff] }
 0x20d   : > { %3837 = vmatprep.subr.bf16.mxu0 %v4538_v2  ;;  %v915_v2 = vld [vmem:[#allocation2 + $0x68] sm:$0xff] }
 0x20e   : > { %4062 = vmatmul.mubr.bf16.gmra.mrb[44].mxu0 %v5201_v34  ;;  %v880_v34 = vld [vmem:[#allocation2 + $0x2f] sm:$0xff] }
 0x20f   : > { %1559 = vmatmul.mubr.bf16.gmra.mrb[92].mxu1 %v5272_v27  ;;  %4065 = vmatprep.mubr.bf16.mxu0 %v5210_v3  ;;  %v914_v3 = vld [vmem:[#allocation2 + $0x50] sm:$0xff]  ;;  %v976_v28 = vpack.c.bf16 %v880_v34, %v879_v35 }
 0x210   : > { %1904 = vmatprep.mubr.bf16.mxu1 %v4759_v20  ;;  %3838 = vmatpush3.bf16.msra.mxu0 %v4539_v60  ;;  %v980_v63 = vpack.c.bf16 %v914_v3, %v913_v19  ;;  %v983_v60 = vpack.c.bf16 %v916_v30, %v915_v2  ;;  %v4544_v34 = vld [vmem:[#allocation8 + $0x210] sm:$0xff]   ;;  %v4546_v19 = vld [vmem:[#allocation8 + $0x220] sm:$0xff]   ;;  %v4547_v30 = vld [vmem:[#allocation8 + $0x228] sm:$0xff]  }
 0x211   : > { %3839 = vmatprep.subr.bf16.mxu0 %v4540_v47  ;;  %v918_v47 = vld [vmem:[#allocation2 + $0x90] sm:$0xff]  ;;  %v2201_v2 = vld [vmem:[#allocation2 + $0xa7] sm:$0xff] }
 0x212   : > { %v922_v3 = vld [vmem:[#allocation2 + $0xd0] sm:$0xff] }
 0x214   : > { %3840 = vmatpush3.bf16.msra.mxu0 %v4541_v37  ;;  %v986_v37 = vpack.c.bf16 %v918_v47, %v917_v0  ;;  %v4549_v47 = vld [vmem:[#allocation8 + $0x238] sm:$0xff]   ;;  %v2203_v0 = vld [vmem:[#allocation2 + $0xc7] sm:$0xff] }
 0x215   : > { %4081 = vmatprep.subr.bf16.mxu0 %v4542_v13 }
 0x216   : > { %4066 = vmatmul.mubr.bf16.gmra.mrb[48].mxu0 %v5214_v33  ;;  %v979_v33 = vpack.c.bf16 %v882_v45, %v881_v26  ;;  %v2202_v26 = vld [vmem:[#allocation2 + $0xaf] sm:$0xff] }
 0x217   : > { %1905 = vmatmul.mubr.bf16.vlgmr.msra.gmra.mrb[96].mxu1 %v973_v53  ;;  %4069 = vmatprep.mubr.bf16.mxu0 %v5220_v55  ;;  %v884_v55 = vld [vmem:[#allocation2 + $0x6f] sm:$0xff]  ;;  %v885_v53 = vld [vmem:[#allocation2 + $0x87] sm:$0xff] }
 0x218   : > { %1912 = vmatprep.mubr.bf16.mxu1 %v977_v8  ;;  %v919_v8 = vld [vmem:[#allocation2 + $0xa8] sm:$0xff] }
 0x21e   : > { %4070 = vmatmul.mubr.bf16.gmra.mrb[52].mxu0 %v5224_v42  ;;  %v982_v42 = vpack.c.bf16 %v884_v55, %v883_v16  ;;  %v927_v16 = vld [vmem:[#allocation2 + $0x128] sm:$0xff] }
 0x21f   : > { %1913 = vmatmul.mubr.bf16.gmra.mrb[100].mxu1 %v976_v28  ;;  %4073 = vmatprep.mubr.bf16.mxu0 %v5230_v62  ;;  %v886_v62 = vld [vmem:[#allocation2 + $0x8f] sm:$0xff]  ;;  %v4545_v28 = vld [vmem:[#allocation8 + $0x218] sm:$0xff]  }
 0x220   : > { %1920 = vmatprep.mubr.bf16.mxu1 %v980_v63  ;;  %v985_v40 = vpack.c.bf16 %v886_v62, %v885_v53  ;;  %v929_v53 = vld [vmem:[#allocation2 + $0x148] sm:$0xff] }
 0x226   : > { %4074 = vmatmul.mubr.bf16.gmra.mrb[56].mxu0 %v5234_v58  ;;  %v4543_v58 = vld [vmem:[#allocation8 + $0x208] sm:$0xff]  }
 0x227   : > { %1921 = vmatmul.mubr.bf16.gmra.mrb[104].mxu1 %v979_v33  ;;  %4077 = vmatprep.mubr.bf16.mxu0 %v5240_v46  ;;  %v989_v46 = vpack.c.bf16 %v920_v1, %v919_v8  ;;  %v930_v1 = vld [vmem:[#allocation2 + $0x150] sm:$0xff]  ;;  %v931_v8 = vld [vmem:[#allocation2 + $0x168] sm:$0xff] }
 0x228   : > { %1928 = vmatprep.mubr.bf16.mxu1 %v983_v60 }
 0x22e   : > { %4078 = vmatmul.mubr.bf16.gmra.mrb[60].mxu0 %v5244_v15  ;;  %v921_v15 = vld [vmem:[#allocation2 + $0xc8] sm:$0xff] }
 0x22f   : > { %1929 = vmatmul.mubr.bf16.gmra.mrb[108].mxu1 %v982_v42  ;;  %2564 = vmatprep.mubr.bf16.mxu0 %v980_v63  ;;  %v992_v35 = vpack.c.bf16 %v922_v3, %v921_v15  ;;  %v924_v63 = vld [vmem:[#allocation2 + $0xf0] sm:$0xff] }
 0x230   : > { %1936 = vmatprep.mubr.bf16.mxu1 %v986_v37 }
 0x236   : > { %2565 = vmatmul.mubr.bf16.vlgmr.msra.gmra.mrb[64].mxu0 %v979_v33  ;;  %v925_v33 = vld [vmem:[#allocation2 + $0x108] sm:$0xff] }
 0x237   : > { %1937 = vmatmul.mubr.bf16.gmra.mrb[112].mxu1 %v985_v40  ;;  %4082 = vmatpush3.bf16.msra.mxu0 %v4542_v13  ;;  %v923_v13 = vld [vmem:[#allocation2 + $0xe8] sm:$0xff]  ;;  %v998_v55 = vpack.c.bf16 %v5198_v7, %v925_v33  ;;  %v2240_v7 = vld [vmem:[#allocation2 + $0x110] sm:$0xff] }
 0x238   : > { %2572 = vmatprep.mubr.bf16.mxu0 %v983_v60  ;;  %1944 = vmatprep.mubr.bf16.mxu1 %v989_v46  ;;  %v995_v45 = vpack.c.bf16 %v924_v63, %v923_v13  ;;  %v2300_v60 = vpack.c.bf16 %v2202_v26, %v2201_v2  ;;  %v935_v26 = vld [vmem:[#allocation2 + $0x1a8] sm:$0xff] }
 0x239   : > { %4083 = vmatprep.subr.bf16.mxu0 %v4543_v58 }
 0x23b   : > { %4084 = vmatpush3.bf16.msra.mxu0 %v4543_v58  ;;  %v1004_v58 = vpack.c.bf16 %v930_v1, %v929_v53 }
 0x23c   : > { %4085 = vmatprep.subr.bf16.mxu0 %v4544_v34 }
 0x23e   : > { %2573 = vmatmul.mubr.bf16.gmra.mrb[68].mxu0 %v982_v42  ;;  %v928_v42 = vld [vmem:[#allocation2 + $0x130] sm:$0xff] }
 0x23f   : > { %1945 = vmatmul.mubr.bf16.gmra.mrb[116].mxu1 %v5160_v23  ;;  %2580 = vmatprep.mubr.bf16.mxu0 %v986_v37  ;;  %v4548_v23 = vld [vmem:[#allocation8 + $0x230] sm:$0xff]   ;;  %v1001_v62 = vpack.c.bf16 %v928_v42, %v927_v16  ;;  %v937_v16 = vld [vmem:[#allocation2 + $0x1c8] sm:$0xff] }
 0x240   : > { %1952 = vmatprep.mubr.bf16.mxu1 %v992_v35  ;;  %4086 = vmatpush3.bf16.msra.mxu0 %v4544_v34  ;;  %v938_v42 = vld [vmem:[#allocation2 + $0x1d0] sm:$0xff] }
 0x241   : > { %4087 = vmatprep.subr.bf16.mxu0 %v4545_v28  ;;  %v1016_v53 = vpack.c.bf16 %v938_v42, %v937_v16 }
 0x244   : > { %4088 = vmatpush3.bf16.msra.mxu0 %v4545_v28  ;;  %v934_v28 = vld [vmem:[#allocation2 + $0x190] sm:$0xff] }
 0x245   : > { %4089 = vmatprep.subr.bf16.mxu0 %v4546_v19 }
 0x246   : > { %2581 = vmatmul.mubr.bf16.gmra.mrb[72].mxu0 %v985_v40  ;;  %v2310_v40 = vpack.c.bf16 %v2240_v7, %v925_v33 }
 0x247   : > { %1953 = vmatmul.mubr.bf16.gmra.mrb[120].mxu1 %v5180_v17  ;;  %2588 = vmatprep.mubr.bf16.mxu0 %v989_v46  ;;  %v2204_v17 = vld [vmem:[#allocation2 + $0xcf] sm:$0xff] }
 0x248   : > { %1960 = vmatprep.mubr.bf16.mxu1 %v995_v45  ;;  %4090 = vmatpush3.bf16.msra.mxu0 %v4546_v19  ;;  %v2303_v37 = vpack.c.bf16 %v2204_v17, %v2203_v0  ;;  %v932_v46 = vld [vmem:[#allocation2 + $0x170] sm:$0xff] }
 0x249   : > { %4091 = vmatprep.subr.bf16.mxu0 %v4547_v30  ;;  %v1007_v34 = vpack.c.bf16 %v932_v46, %v931_v8 }
 0x24c   : > { %4092 = vmatpush3.bf16.msra.mxu0 %v4547_v30 }
 0x24d   : > { %4093 = vmatprep.subr.bf16.mxu0 %v4548_v23 }
 0x24e   : > { %2589 = vmatmul.mubr.bf16.gmra.mrb[76].mxu0 %v2300_v60 }
 0x24f   : > { %1961 = vmatmul.mubr.bf16.gmra.mrb[124].mxu1 %v5203_v38  ;;  %2596 = vmatprep.mubr.bf16.mxu0 %v992_v35  ;;  %v933_v35 = vld [vmem:[#allocation2 + $0x188] sm:$0xff] }
 0x250   : > { %1968 = vmatprep.mubr.bf16.mxu1 %v998_v55  ;;  %4094 = vmatpush3.bf16.msra.mxu0 %v4548_v23  ;;  %v936_v23 = vld [vmem:[#allocation2 + $0x1b0] sm:$0xff] }
 0x251   : > { %4095 = vmatprep.subr.bf16.mxu0 %v4549_v47 }
 0x254   : > { %4096 = vmatpush3.bf16.msra.mxu0 %v4549_v47  ;;  %v1013_v47 = vpack.c.bf16 %v936_v23, %v935_v26 }
 0x256   : > { %2597 = vmatmul.mubr.bf16.gmra.mrb[80].mxu0 %v2303_v37 }
 0x257   : > { %1969 = vmatmul.mubr.bf16.gmra.mrb[128].mxu1 %v5212_v10  ;;  %2604 = vmatprep.mubr.bf16.mxu0 %v995_v45  ;;  %v1010_v45 = vpack.c.bf16 %v934_v28, %v933_v35 }
 0x258   : > { %1976 = vmatprep.mubr.bf16.mxu1 %v1001_v62 }
 0x25e   : > { %2605 = vmatmul.mubr.bf16.gmra.mrb[84].mxu0 %v5203_v38 }
 0x25f   : > { %1977 = vmatmul.mubr.bf16.gmra.mrb[132].mxu1 %v5222_v5  ;;  %2612 = vmatprep.mubr.bf16.mxu0 %v2310_v40  ;;  %v939_v40 = vld [vmem:[#allocation2 + $0x1e8] sm:$0xff] }
 0x260   : > { %1984 = vmatprep.mubr.bf16.mxu1 %v1004_v58 }
 0x266   : > { %2613 = vmatmul.mubr.bf16.gmra.mrb[88].mxu0 %v5212_v10 }
 0x267   : > { %1985 = vmatmul.mubr.bf16.gmra.mrb[136].mxu1 %v5232_v49  ;;  %2620 = vmatprep.mubr.bf16.mxu0 %v1001_v62 }
 0x268   : > { %1992 = vmatprep.mubr.bf16.mxu1 %v1007_v34 }
 0x26a   : > { %v3569_v3 = vpop.f32.mrb[32].mxu1 }
 0x26b   : > { %v3570_v15 = vpop.f32.mrb[33].mxu1 }
 0x26c   : > { %v5294_v19 = vadd.f32 %v3570_v15, %v3569_v3  ;;  %v3572_v38 = vpop.f32.mrb[34].mxu1 }
 0x26d   : > { %v3573_v63 = vpop.f32.mrb[35].mxu1 }
 0x26e   : > { %v5296_v13 = vadd.f32 %v3573_v63, %v3572_v38  ;;  %2621 = vmatmul.mubr.bf16.gmra.mrb[92].mxu0 %v5222_v5 }
 0x26f   : > { %1993 = vmatmul.mubr.bf16.gmra.mrb[140].mxu1 %v5242_v18  ;;  %2628 = vmatprep.mubr.bf16.mxu0 %v1004_v58  ;;  %v940_v58 = vld [vmem:[#allocation2 + $0x1f0] sm:$0xff] }
 0x270   : > { %2000 = vmatprep.mubr.bf16.mxu1 %v1010_v45  ;;  %v1019_v15 = vpack.c.bf16 %v940_v58, %v939_v40 }
 0x272   : > { %v3575_v10 = vpop.f32.mrb[36].mxu1 }
 0x273   : > { %v3576_v30 = vpop.f32.mrb[37].mxu1 }
 0x274   : > { %v5300_v33 = vadd.f32 %v3576_v30, %v3575_v10  ;;  %v3578_v2 = vpop.f32.mrb[38].mxu1 }
 0x275   : > { %v3579_v60 = vpop.f32.mrb[39].mxu1 }
 0x276   : > { %v5302_v55 = vadd.f32 %v3579_v60, %v3578_v2  ;;  %2629 = vmatmul.mubr.bf16.gmra.mrb[96].mxu0 %v5232_v49  ;;  %v4550_v60 = vld [vmem:[#allocation9] sm:$0xff]  }
 0x277   : > { %2001 = vmatmul.mubr.bf16.gmra.mrb[144].mxu1 %v5250_v43  ;;  %2636 = vmatprep.mubr.bf16.mxu0 %v1007_v34 }
 0x278   : > { %2008 = vmatprep.mubr.bf16.mxu1 %v1013_v47  ;;  %4129 = vmatprep.subr.bf16.mxu1 %v4550_v60 }
 0x279   : > { %4130 = vmatpush3.bf16.msra.mxu1 %v4550_v60 }
 0x27a   : > { %v3581_v5 = vpop.f32.mrb[40].mxu1 }
 0x27b   : > { %v3582_v17 = vpop.f32.mrb[41].mxu1 }
 0x27c   : > { %v5306_v0 = vadd.f32 %v3582_v17, %v3581_v5  ;;  %v3584_v37 = vpop.f32.mrb[42].mxu1  ;;  %v2255_v17 = vld [vmem:[#allocation2 + $0x208] sm:$0xff] }
 0x27d   : > { %v3585_v62 = vpop.f32.mrb[43].mxu1 }
 0x27e   : > { %v5308_v7 = vadd.f32 %v3585_v62, %v3584_v37  ;;  %2637 = vmatmul.mubr.bf16.gmra.mrb[100].mxu0 %v5242_v18 }
 0x27f   : > { %2009 = vmatmul.mubr.bf16.gmra.mrb[148].mxu1 %v5254_v51  ;;  %2644 = vmatprep.mubr.bf16.mxu0 %v1010_v45 }
 0x280   : > { %2016 = vmatprep.mubr.bf16.mxu1 %v1016_v53 }
 0x282   : > { %v3587_v49 = vpop.f32.mrb[44].mxu1 }
 0x283   : > { %v3588_v1 = vpop.f32.mrb[45].mxu1 }
 0x284   : > { %v5312_v8 = vadd.f32 %v3588_v1, %v3587_v49  ;;  %v3590_v46 = vpop.f32.mrb[46].mxu1 }
 0x285   : > { %v3591_v34 = vpop.f32.mrb[47].mxu1 }
 0x286   : > { %v5314_v3 = vadd.f32 %v3591_v34, %v3590_v46  ;;  %2645 = vmatmul.mubr.bf16.gmra.mrb[104].mxu0 %v5250_v43  ;;  %v2225_v34 = vld [vmem:[#allocation2 + $0x227] sm:$0xff] }
 0x287   : > { %2017 = vmatmul.mubr.bf16.gmra.mrb[152].mxu1 %v5260_v41  ;;  %2652 = vmatprep.mubr.bf16.mxu0 %v1013_v47 }
 0x288   : > { %2024 = vmatprep.mubr.bf16.mxu1 %v1019_v15 }
 0x28a   : > { %v3593_v18 = vpop.f32.mrb[48].mxu1 }
 0x28b   : > { %v3594_v35 = vpop.f32.mrb[49].mxu1 }
 0x28c   : > { %v5318_v28 = vadd.f32 %v3594_v35, %v3593_v18  ;;  %v3596_v38 = vpop.f32.mrb[50].mxu1  ;;  %v4551_v18 = vld [vmem:[#allocation9 + $0x8] sm:$0xff]  }
 0x28d   : > { %v3597_v63 = vpop.f32.mrb[51].mxu1  ;;  %4131 = vmatprep.subr.bf16.mxu1 %v4551_v18 }
 0x28e   : > { %v5320_v45 = vadd.f32 %v3597_v63, %v3596_v38  ;;  %2653 = vmatmul.mubr.bf16.gmra.mrb[108].mxu0 %v5254_v51  ;;  %v2256_v51 = vld [vmem:[#allocation2 + $0x210] sm:$0xff]  ;;  %4132 = vmatpush3.bf16.msra.mxu1 %v4551_v18 }
 0x28f   : > { %2025 = vmatmul.mubr.bf16.gmra.mrb[156].mxu1 %v5266_v12  ;;  %2660 = vmatprep.mubr.bf16.mxu0 %v1016_v53  ;;  %v2334_v53 = vpack.c.bf16 %v2256_v51, %v2255_v17  ;;  %v2259_v63 = vld [vmem:[#allocation2 + $0x49] sm:$0xff] }
 0x290   : > { %v2263_v51 = vld [vmem:[#allocation2 + $0x89] sm:$0xff] }
 0x291   : > { %v2265_v18 = vld [vmem:[#allocation2 + $0xa9] sm:$0xff] }
 0x292   : > { %v3599_v10 = vpop.f32.mrb[52].mxu1 }
 0x293   : > { %v3600_v30 = vpop.f32.mrb[53].mxu1 }
 0x294   : > { %v5324_v43 = vadd.f32 %v3600_v30, %v3599_v10  ;;  %v3602_v26 = vpop.f32.mrb[54].mxu1  ;;  %v2260_v10 = vld [vmem:[#allocation2 + $0x51] sm:$0xff] }
 0x295   : > { %v3603_v23 = vpop.f32.mrb[55].mxu1 }
 0x296   : > { %v5326_v2 = vadd.f32 %v3603_v23, %v3602_v26  ;;  %2661 = vmatmul.mubr.bf16.gmra.mrb[112].mxu0 %v5260_v41 }
 0x297   : > { %2668 = vmatprep.mubr.bf16.mxu0 %v1019_v15  ;;  %v2226_v15 = vld [vmem:[#allocation2 + $0x22f] sm:$0xff] }
 0x29a   : > { %v3605_v47 = vpop.f32.mrb[56].mxu1 }
 0x29b   : > { %v3606_v5 = vpop.f32.mrb[57].mxu1 }
 0x29c   : > { %v5329_v16 = vadd.f32 %v3606_v5, %v3605_v47  ;;  %v3608_v42 = vpop.f32.mrb[58].mxu1  ;;  %v2293_v47 = vpack.c.bf16 %v2260_v10, %v2259_v63  ;;  %v2262_v5 = vld [vmem:[#allocation2 + $0x71] sm:$0xff] }
 0x29d   : > { %v3609_v37 = vpop.f32.mrb[59].mxu1  ;;  %v2268_v63 = vld [vmem:[#allocation2 + $0xd1] sm:$0xff] }
 0x29e   : > { %v5331_v62 = vadd.f32 %v3609_v37, %v3608_v42  ;;  %2669 = vmatmul.mubr.bf16.gmra.mrb[116].mxu0 %v5266_v12  ;;  %v2336_v12 = vpack.c.bf16 %v2226_v15, %v2225_v34  ;;  %v2264_v42 = vld [vmem:[#allocation2 + $0x91] sm:$0xff] }
 0x29f   : > { %2676 = vmatprep.mubr.bf16.mxu0 %v2334_v53  ;;  %v4552_v34 = vld [vmem:[#allocation9 + $0x10] sm:$0xff]  }
 0x2a0   : > { %4133 = vmatprep.subr.bf16.mxu1 %v4552_v34 }
 0x2a1   : > { %4134 = vmatpush3.bf16.msra.mxu1 %v4552_v34 }
 0x2a2   : > { %v3611_v49 = vpop.f32.mrb[60].mxu1 }
 0x2a3   : > { %v3612_v41 = vpop.f32.mrb[61].mxu1 }
 0x2a4   : > { %v5334_v1 = vadd.f32 %v3612_v41, %v3611_v49  ;;  %v3614_v40 = vpop.f32.mrb[62].mxu1 }
 0x2a5   : > { %v3615_v58 = vpop.f32.mrb[63].mxu1 }
 0x2a6   : > { %v5336_v46 = vadd.f32 %v3615_v58, %v3614_v40  ;;  %2677 = vmatmul.mubr.bf16.gmra.mrb[120].mxu0 %v5272_v27  ;;  %v2299_v58 = vpack.c.bf16 %v2264_v42, %v2263_v51  ;;  %v2270_v51 = vld [vmem:[#allocation2 + $0xf1] sm:$0xff] }
 0x2a7   : > { %2684 = vmatprep.mubr.bf16.mxu0 %v4759_v20  ;;  %v2261_v20 = vld [vmem:[#allocation2 + $0x69] sm:$0xff] }
 0x2a8   : > { %v2296_v41 = vpack.c.bf16 %v2262_v5, %v2261_v20 }
 0x2aa   : > { %v3617_v35 = vpop.f32.mrb[64].mxu1 }
 0x2ab   : > { %v3618_v38 = vpop.f32.mrb[65].mxu1 }
 0x2ac   : > { %v5340_v30 = vadd.f32 %v3618_v38, %v3617_v35  ;;  %v3620_v26 = vpop.f32.mrb[66].mxu1  ;;  %v2266_v35 = vld [vmem:[#allocation2 + $0xb1] sm:$0xff] }
 0x2ad   : > { %v3621_v23 = vpop.f32.mrb[67].mxu1 }
 0x2ae   : > { %v5342_v60 = vadd.f32 %v3621_v23, %v3620_v26  ;;  %2685 = vmatmul.mubr.bf16.gmra.mrb[124].mxu0 %v2336_v12  ;;  %v2267_v12 = vld [vmem:[#allocation2 + $0xc9] sm:$0xff] }
 0x2af   : > { %4097 = vmatprep.mubr.bf16.mxu0 %v2293_v47  ;;  %v2302_v47 = vpack.c.bf16 %v2266_v35, %v2265_v18  ;;  %v2305_v20 = vpack.c.bf16 %v2268_v63, %v2267_v12  ;;  %v4553_v18 = vld [vmem:[#allocation9 + $0x18] sm:$0xff]   ;;  %v2273_v12 = vld [vmem:[#allocation2 + $0x129] sm:$0xff] }
 0x2b0   : > { %v2274_v63 = vld [vmem:[#allocation2 + $0x131] sm:$0xff]  ;;  %4135 = vmatprep.subr.bf16.mxu1 %v4553_v18 }
 0x2b1   : > { %4136 = vmatpush3.bf16.msra.mxu1 %v4553_v18  ;;  %v2314_v25 = vpack.c.bf16 %v2274_v63, %v2273_v12  ;;  %v4554_v12 = vld [vmem:[#allocation9 + $0x20] sm:$0xff]  }
 0x2b2   : > { %v3623_v27 = vpop.f32.mrb[68].mxu1  ;;  %4137 = vmatprep.subr.bf16.mxu1 %v4554_v12 }
 0x2b3   : > { %v3624_v17 = vpop.f32.mrb[69].mxu1 }
 0x2b4   : > { %v5344_v37 = vadd.f32 %v3624_v17, %v3623_v27  ;;  %v3626_v53 = vpop.f32.mrb[70].mxu1  ;;  %v2269_v17 = vld [vmem:[#allocation2 + $0xe9] sm:$0xff] }
 0x2b5   : > { %v3627_v49 = vpop.f32.mrb[71].mxu1  ;;  %4138 = vmatpush3.bf16.msra.mxu1 %v4554_v12 }
 0x2b6   : > { %v5346_v40 = vadd.f32 %v3627_v49, %v3626_v53  ;;  %4098 = vmatmul.mubr.bf16.vlgmr.msra.gmra.mrb[32].mxu0 %v2296_v41  ;;  %v2271_v53 = vld [vmem:[#allocation2 + $0x109] sm:$0xff]  ;;  %v2272_v49 = vld [vmem:[#allocation2 + $0x111] sm:$0xff] }
 0x2b7   : > { %4101 = vmatprep.mubr.bf16.mxu0 %v2299_v58  ;;  %v2311_v50 = vpack.c.bf16 %v2272_v49, %v2271_v53  ;;  %v2277_v53 = vld [vmem:[#allocation2 + $0x169] sm:$0xff]  ;;  %v2278_v49 = vld [vmem:[#allocation2 + $0x171] sm:$0xff] }
 0x2ba   : > { %v3629_v15 = vpop.f32.mrb[72].mxu1 }
 0x2bb   : > { %v3630_v38 = vpop.f32.mrb[73].mxu1 }
 0x2bc   : > { %v5348_v10 = vadd.f32 %v3630_v38, %v3629_v15  ;;  %v3632_v26 = vpop.f32.mrb[74].mxu1  ;;  %v2308_v15 = vpack.c.bf16 %v2270_v51, %v2269_v17 }
 0x2bd   : > { %v3633_v23 = vpop.f32.mrb[75].mxu1 }
 0x2be   : > { %v5350_v27 = vadd.f32 %v3633_v23, %v3632_v26  ;;  %4102 = vmatmul.mubr.bf16.gmra.mrb[36].mxu0 %v2302_v47  ;;  %v2275_v23 = vld [vmem:[#allocation2 + $0x149] sm:$0xff]  ;;  %v2276_v47 = vld [vmem:[#allocation2 + $0x151] sm:$0xff] }
 0x2bf   : > { %4105 = vmatprep.mubr.bf16.mxu0 %v2305_v20  ;;  %v2317_v51 = vpack.c.bf16 %v2276_v47, %v2275_v23  ;;  %v2282_v23 = vld [vmem:[#allocation2 + $0x1b1] sm:$0xff] }
 0x2c2   : > { %v3635_v5 = vpop.f32.mrb[76].mxu1 }
 0x2c3   : > { %v3636_v42 = vpop.f32.mrb[77].mxu1 }
 0x2c4   : > { %v5352_v41 = vadd.f32 %v3636_v42, %v3635_v5  ;;  %v3638_v58 = vpop.f32.mrb[78].mxu1 }
 0x2c5   : > { %v3639_v34 = vpop.f32.mrb[79].mxu1 }
 0x2c6   : > { %v5354_v38 = vadd.f32 %v3639_v34, %v3638_v58  ;;  %4106 = vmatmul.mubr.bf16.gmra.mrb[40].mxu0 %v2308_v15  ;;  %v2279_v34 = vld [vmem:[#allocation2 + $0x189] sm:$0xff]  ;;  %v2280_v15 = vld [vmem:[#allocation2 + $0x191] sm:$0xff] }
 0x2c7   : > { %4109 = vmatprep.mubr.bf16.mxu0 %v2311_v50  ;;  %v2323_v6 = vpack.c.bf16 %v2280_v15, %v2279_v34  ;;  %v2286_v34 = vld [vmem:[#allocation2 + $0x1f1] sm:$0xff] }
 0x2ca   : > { %v3641_v35 = vpop.f32.mrb[80].mxu1 }
 0x2cb   : > { %v3642_v26 = vpop.f32.mrb[81].mxu1 }
 0x2cc   : > { %v5356_v20 = vadd.f32 %v3642_v26, %v3641_v35  ;;  %v3644_v5 = vpop.f32.mrb[82].mxu1  ;;  %v2320_v35 = vpack.c.bf16 %v2278_v49, %v2277_v53  ;;  %v2285_v49 = vld [vmem:[#allocation2 + $0x1e9] sm:$0xff] }
 0x2cd   : > { %v3645_v42 = vpop.f32.mrb[83].mxu1 }
 0x2ce   : > { %v5358_v17 = vadd.f32 %v3645_v42, %v3644_v5  ;;  %4110 = vmatmul.mubr.bf16.gmra.mrb[44].mxu0 %v2314_v25  ;;  %v2281_v25 = vld [vmem:[#allocation2 + $0x1a9] sm:$0xff]  ;;  %v2284_v42 = vld [vmem:[#allocation2 + $0x1d1] sm:$0xff] }
 0x2cf   : > { %4113 = vmatprep.mubr.bf16.mxu0 %v2317_v51  ;;  %v2283_v5 = vld [vmem:[#allocation2 + $0x1c9] sm:$0xff]  ;;  %v2326_v24 = vpack.c.bf16 %v2282_v23, %v2281_v25  ;;  %v2290_v23 = vld [vmem:[#allocation2 + $0x231] sm:$0xff] }
 0x2d0   : > { %v2289_v25 = vld [vmem:[#allocation2 + $0x229] sm:$0xff] }
 0x2d2   : > { %v3647_v50 = vpop.f32.mrb[84].mxu1 }
 0x2d3   : > { %v3648_v58 = vpop.f32.mrb[85].mxu1 }
 0x2d4   : > { %v5360_v14 = vadd.f32 %v3648_v58, %v3647_v50  ;;  %v3650_v32 = vpop.f32.mrb[86].mxu1 }
 0x2d5   : > { %v3651_v18 = vpop.f32.mrb[87].mxu1 }
 0x2d6   : > { %v5362_v26 = vadd.f32 %v3651_v18, %v3650_v32  ;;  %4114 = vmatmul.mubr.bf16.gmra.mrb[48].mxu0 %v2320_v35  ;;  %v2329_v32 = vpack.c.bf16 %v2284_v42, %v2283_v5  ;;  %v2287_v18 = vld [vmem:[#allocation2 + $0x209] sm:$0xff]  ;;  %v2288_v35 = vld [vmem:[#allocation2 + $0x211] sm:$0xff] }
 0x2d7   : > { %4117 = vmatprep.mubr.bf16.mxu0 %v2323_v6  ;;  %v2335_v39 = vpack.c.bf16 %v2288_v35, %v2287_v18 }
 0x2da   : > { %v3653_v63 = vpop.f32.mrb[88].mxu1 }
 0x2db   : > { %v3654_v47 = vpop.f32.mrb[89].mxu1 }
 0x2dc   : > { %v5364_v51 = vadd.f32 %v3654_v47, %v3653_v63  ;;  %v3656_v50 = vpop.f32.mrb[90].mxu1  ;;  %v2332_v63 = vpack.c.bf16 %v2286_v34, %v2285_v49 }
 0x2dd   : > { %v3657_v58 = vpop.f32.mrb[91].mxu1 }
 0x2de   : > { %v5366_v53 = vadd.f32 %v3657_v58, %v3656_v50  ;;  %4118 = vmatmul.mubr.bf16.gmra.mrb[52].mxu0 %v2326_v24  ;;  %v4555_v24 = vld [vmem:[#allocation9 + $0x28] sm:$0xff]   ;;  %v2338_v50 = vpack.c.bf16 %v2290_v23, %v2289_v25 }
 0x2df   : > { %4121 = vmatprep.mubr.bf16.mxu0 %v2329_v32  ;;  %4139 = vmatprep.subr.bf16.mxu1 %v4555_v24 }
 0x2e0   : > { %4140 = vmatpush3.bf16.msra.mxu1 %v4555_v24 }
 0x2e1   : > { %4141 = vmatprep.subr.bf16.mxu1 %v4556_v9 }
 0x2e2   : > { %v3659_v6 = vpop.f32.mrb[92].mxu1 }
 0x2e3   : > { %v3660_v15 = vpop.f32.mrb[93].mxu1 }
 0x2e4   : > { %v5368_v52 = vadd.f32 %v3660_v15, %v3659_v6  ;;  %v3662_v54 = vpop.f32.mrb[94].mxu1  ;;  %4142 = vmatpush3.bf16.msra.mxu1 %v4556_v9  ;;  %v4557_v9 = vld [vmem:[#allocation9 + $0x38] sm:$0xff]  }
 0x2e5   : > { %v3663_v12 = vpop.f32.mrb[95].mxu1  ;;  %4143 = vmatprep.subr.bf16.mxu1 %v4557_v9 }
 0x2e6   : > { %v5370_v47 = vadd.f32 %v3663_v12, %v3662_v54  ;;  %4122 = vmatmul.mubr.bf16.gmra.mrb[56].mxu0 %v2332_v63 }
 0x2e7   : > { %4125 = vmatprep.mubr.bf16.mxu0 %v2335_v39 }
 0x2e8   : > { %4144 = vmatpush3.bf16.msra.mxu1 %v4557_v9 }
 0x2ea   : > { %v3705_v5 = vpop.f32.mrb[96].mxu1 }
 0x2eb   : > { %v3706_v42 = vpop.f32.mrb[97].mxu1 }
 0x2ec   : > { %v3707_v58 = vadd.f32 %v3706_v42, %v3705_v5  ;;  %v3708_v32 = vpop.f32.mrb[98].mxu1 }
 0x2ed   : > { %v3709_v6 = vpop.f32.mrb[99].mxu1 }
 0x2ee   : > { %v4196_v15 = vadd.f32 %v3707_v58, %v5294_v19  ;;  %v3710_v36 = vadd.f32 %v3709_v6, %v3708_v32  ;;  %4126 = vmatmul.mubr.bf16.gmra.mrb[60].mxu0 %v2338_v50 }
 0x2f0   : > { %v4202_v54 = vadd.f32 %v3710_v36, %v5296_v13 }
 0x2f2   : > { %v3711_v49 = vpop.f32.mrb[100].mxu1 }
 0x2f3   : > { %v3712_v34 = vpop.f32.mrb[101].mxu1 }
 0x2f4   : > { %v3713_v39 = vadd.f32 %v3712_v34, %v3711_v49  ;;  %v3714_v18 = vpop.f32.mrb[102].mxu1 }
 0x2f5   : > { %v3715_v35 = vpop.f32.mrb[103].mxu1 }
 0x2f6   : > { %v4193_v12 = vadd.f32 %v3713_v39, %v5300_v33  ;;  %v3716_v63 = vadd.f32 %v3715_v35, %v3714_v18 }
 0x2f8   : > { %v4199_v25 = vadd.f32 %v3716_v63, %v5302_v55 }
 0x2fa   : > { %v3717_v23 = vpop.f32.mrb[104].mxu1 }
 0x2fb   : > { %v3718_v24 = vpop.f32.mrb[105].mxu1 }
 0x2fc   : > { %v3719_v19 = vadd.f32 %v3718_v24, %v3717_v23  ;;  %v3720_v5 = vpop.f32.mrb[106].mxu1 }
 0x2fd   : > { %v3721_v42 = vpop.f32.mrb[107].mxu1 }
 0x2fe   : > { %v4208_v36 = vadd.f32 %v3719_v19, %v5306_v0  ;;  %v3722_v13 = vadd.f32 %v3721_v42, %v3720_v5 }
 0x300   : > { %v4214_v50 = vadd.f32 %v3722_v13, %v5308_v7 }
 0x302   : > { %v3723_v58 = vpop.f32.mrb[108].mxu1 }
 0x303   : > { %v3724_v32 = vpop.f32.mrb[109].mxu1 }
 0x304   : > { %v3725_v6 = vadd.f32 %v3724_v32, %v3723_v58  ;;  %v3726_v33 = vpop.f32.mrb[110].mxu1 }
 0x305   : > { %v3727_v49 = vpop.f32.mrb[111].mxu1 }
 0x306   : > { %v5379_v34 = vadd.f32 %v3725_v6, %v5312_v8  ;;  %v3728_v55 = vadd.f32 %v3727_v49, %v3726_v33 }
 0x308   : > { %v5382_v39 = vadd.f32 %v3728_v55, %v5314_v3 }
 0x309   : > { %v3841_v18 = vpop.f32.mrb[64].mxu0 }
 0x30a   : > { %v3729_v0 = vpop.f32.mrb[112].mxu1  ;;  %v3842_v35 = vpop.f32.mrb[65].mxu0 }
 0x30b   : > { %v3730_v63 = vpop.f32.mrb[113].mxu1  ;;  %v3843_v7 = vadd.f32 %v3842_v35, %v3841_v18  ;;  %v3844_v24 = vpop.f32.mrb[66].mxu0 }
 0x30c   : > { %v3731_v23 = vadd.f32 %v3730_v63, %v3729_v0  ;;  %v3732_v19 = vpop.f32.mrb[114].mxu1  ;;  %v3845_v5 = vpop.f32.mrb[67].mxu0 }
 0x30d   : > { %v3733_v42 = vpop.f32.mrb[115].mxu1  ;;  %v3846_v13 = vadd.f32 %v3845_v5, %v3844_v24  ;;  %v5387_v32 = vadd.f32 %v4196_v15, %v3843_v7 }
 0x30e   : > { %v5385_v8 = vadd.f32 %v3731_v23, %v5318_v28  ;;  %v3734_v58 = vadd.f32 %v3733_v42, %v3732_v19 }
 0x30f   : > { %v5392_v6 = vadd.f32 %v4202_v54, %v3846_v13 }
 0x310   : > { %v5390_v3 = vadd.f32 %v3734_v58, %v5320_v45 }
 0x311   : > { %v3847_v33 = vpop.f32.mrb[68].mxu0 }
 0x312   : > { %v3735_v49 = vpop.f32.mrb[116].mxu1  ;;  %v3848_v55 = vpop.f32.mrb[69].mxu0 }
 0x313   : > { %v3736_v9 = vpop.f32.mrb[117].mxu1  ;;  %v3849_v18 = vadd.f32 %v3848_v55, %v3847_v33  ;;  %v3850_v35 = vpop.f32.mrb[70].mxu0 }
 0x314   : > { %v3737_v0 = vadd.f32 %v3736_v9, %v3735_v49  ;;  %v3738_v63 = vpop.f32.mrb[118].mxu1  ;;  %v3851_v57 = vpop.f32.mrb[71].mxu0 }
 0x315   : > { %v3739_v28 = vpop.f32.mrb[119].mxu1  ;;  %v3852_v15 = vadd.f32 %v3851_v57, %v3850_v35  ;;  %v5397_v24 = vadd.f32 %v4193_v12, %v3849_v18 }
 0x316   : > { %v5395_v23 = vadd.f32 %v3737_v0, %v5324_v43  ;;  %v3740_v7 = vadd.f32 %v3739_v28, %v3738_v63 }
 0x317   : > { %v5402_v54 = vadd.f32 %v4199_v25, %v3852_v15 }
 0x318   : > { %v5400_v45 = vadd.f32 %v3740_v7, %v5326_v2 }
 0x319   : > { %v3853_v19 = vpop.f32.mrb[72].mxu0 }
 0x31a   : > { %v3741_v5 = vpop.f32.mrb[120].mxu1  ;;  %v3854_v42 = vpop.f32.mrb[73].mxu0 }
 0x31b   : > { %v3742_v13 = vpop.f32.mrb[121].mxu1  ;;  %v3855_v58 = vadd.f32 %v3854_v42, %v3853_v19  ;;  %v3856_v49 = vpop.f32.mrb[74].mxu0 }
 0x31c   : > { %v3743_v33 = vadd.f32 %v3742_v13, %v3741_v5  ;;  %v3744_v55 = vpop.f32.mrb[122].mxu1  ;;  %v3857_v9 = vpop.f32.mrb[75].mxu0 }
 0x31d   : > { %v3745_v43 = vpop.f32.mrb[123].mxu1  ;;  %v3858_v12 = vadd.f32 %v3857_v9, %v3856_v49  ;;  %v5407_v0 = vadd.f32 %v4208_v36, %v3855_v58 }
 0x31e   : > { %v5405_v57 = vadd.f32 %v3743_v33, %v5329_v16  ;;  %v3746_v18 = vadd.f32 %v3745_v43, %v3744_v55 }
 0x31f   : > { %v5412_v25 = vadd.f32 %v4214_v50, %v3858_v12 }
 0x320   : > { %v5410_v2 = vadd.f32 %v3746_v18, %v5331_v62 }
 0x321   : > { %v3859_v35 = vpop.f32.mrb[76].mxu0 }
 0x322   : > { %v3747_v63 = vpop.f32.mrb[124].mxu1  ;;  %v3860_v28 = vpop.f32.mrb[77].mxu0 }
 0x323   : > { %v3748_v15 = vpop.f32.mrb[125].mxu1  ;;  %v3861_v7 = vadd.f32 %v3860_v28, %v3859_v35  ;;  %v3862_v5 = vpop.f32.mrb[78].mxu0 }
 0x324   : > { %v3749_v19 = vadd.f32 %v3748_v15, %v3747_v63  ;;  %v3750_v42 = vpop.f32.mrb[126].mxu1  ;;  %v3863_v13 = vpop.f32.mrb[79].mxu0 }
 0x325   : > { %v3751_v16 = vpop.f32.mrb[127].mxu1  ;;  %v3864_v36 = vadd.f32 %v3863_v13, %v3862_v5  ;;  %v5418_v62 = vadd.f32 %v5379_v34, %v3861_v7 }
 0x326   : > { %v5415_v33 = vadd.f32 %v3749_v19, %v5334_v1  ;;  %v3752_v58 = vadd.f32 %v3751_v16, %v3750_v42 }
 0x327   : > { %v5424_v49 = vadd.f32 %v5382_v39, %v3864_v36 }
 0x328   : > { %v5421_v50 = vadd.f32 %v3752_v58, %v5336_v46 }
 0x329   : > { %v3865_v55 = vpop.f32.mrb[80].mxu0 }
 0x32a   : > { %v3753_v9 = vpop.f32.mrb[128].mxu1  ;;  %v3866_v43 = vpop.f32.mrb[81].mxu0 }
 0x32b   : > { %v3754_v12 = vpop.f32.mrb[129].mxu1  ;;  %v3867_v18 = vadd.f32 %v3866_v43, %v3865_v55  ;;  %v3868_v63 = vpop.f32.mrb[82].mxu0 }
 0x32c   : > { %v3755_v35 = vadd.f32 %v3754_v12, %v3753_v9  ;;  %v3756_v1 = vpop.f32.mrb[130].mxu1  ;;  %v3869_v28 = vpop.f32.mrb[83].mxu0 }
 0x32d   : > { %v3757_v15 = vpop.f32.mrb[131].mxu1  ;;  %v3870_v34 = vadd.f32 %v3869_v28, %v3868_v63  ;;  %v5430_v46 = vadd.f32 %v5385_v8, %v3867_v18 }
 0x32e   : > { %v5427_v19 = vadd.f32 %v3755_v35, %v5340_v30  ;;  %v3758_v7 = vadd.f32 %v3757_v15, %v3756_v1 }
 0x32f   : > { %v5436_v5 = vadd.f32 %v5390_v3, %v3870_v34 }
 0x330   : > { %v5433_v39 = vadd.f32 %v3758_v7, %v5342_v60 }
 0x331   : > { %v3871_v42 = vpop.f32.mrb[84].mxu0 }
 0x332   : > { %v3759_v13 = vpop.f32.mrb[132].mxu1  ;;  %v3872_v16 = vpop.f32.mrb[85].mxu0 }
 0x333   : > { %v3760_v36 = vpop.f32.mrb[133].mxu1  ;;  %v3873_v58 = vadd.f32 %v3872_v16, %v3871_v42  ;;  %v3874_v9 = vpop.f32.mrb[86].mxu0 }
 0x334   : > { %v3761_v55 = vadd.f32 %v3760_v36, %v3759_v13  ;;  %v3762_v30 = vpop.f32.mrb[134].mxu1  ;;  %v3875_v43 = vpop.f32.mrb[87].mxu0 }
 0x335   : > { %v3763_v12 = vpop.f32.mrb[135].mxu1  ;;  %v3876_v8 = vadd.f32 %v3875_v43, %v3874_v9  ;;  %v5442_v60 = vadd.f32 %v5395_v23, %v3873_v58 }
 0x336   : > { %v5439_v35 = vadd.f32 %v3761_v55, %v5344_v37  ;;  %v3764_v18 = vadd.f32 %v3763_v12, %v3762_v30 }
 0x337   : > { %v5448_v63 = vadd.f32 %v5400_v45, %v3876_v8 }
 0x338   : > { %v5445_v3 = vadd.f32 %v3764_v18, %v5346_v40 }
 0x339   : > { %v3877_v1 = vpop.f32.mrb[88].mxu0 }
 0x33a   : > { %v3765_v28 = vpop.f32.mrb[136].mxu1  ;;  %v3878_v15 = vpop.f32.mrb[89].mxu0 }
 0x33b   : > { %v3766_v34 = vpop.f32.mrb[137].mxu1  ;;  %v3879_v7 = vadd.f32 %v3878_v15, %v3877_v1  ;;  %v3880_v13 = vpop.f32.mrb[90].mxu0 }
 0x33c   : > { %v3767_v42 = vadd.f32 %v3766_v34, %v3765_v28  ;;  %v3768_v37 = vpop.f32.mrb[138].mxu1  ;;  %v3881_v16 = vpop.f32.mrb[91].mxu0 }
 0x33d   : > { %v3769_v36 = vpop.f32.mrb[139].mxu1  ;;  %v3882_v23 = vadd.f32 %v3881_v16, %v3880_v13  ;;  %v5454_v40 = vadd.f32 %v5405_v57, %v3879_v7 }
 0x33e   : > { %v5451_v55 = vadd.f32 %v3767_v42, %v5348_v10  ;;  %v3770_v58 = vadd.f32 %v3769_v36, %v3768_v37 }
 0x33f   : > { %v5460_v9 = vadd.f32 %v5410_v2, %v3882_v23 }
 0x340   : > { %v5457_v45 = vadd.f32 %v3770_v58, %v5350_v27 }
 0x341   : > { %v3883_v30 = vpop.f32.mrb[92].mxu0 }
 0x342   : > { %v3771_v43 = vpop.f32.mrb[140].mxu1  ;;  %v3884_v12 = vpop.f32.mrb[93].mxu0 }
 0x343   : > { %v3772_v8 = vpop.f32.mrb[141].mxu1  ;;  %v3885_v18 = vadd.f32 %v3884_v12, %v3883_v30  ;;  %v3886_v28 = vpop.f32.mrb[94].mxu0 }
 0x344   : > { %v3773_v1 = vadd.f32 %v3772_v8, %v3771_v43  ;;  %v3774_v10 = vpop.f32.mrb[142].mxu1  ;;  %v3887_v15 = vpop.f32.mrb[95].mxu0 }
 0x345   : > { %v3775_v34 = vpop.f32.mrb[143].mxu1  ;;  %v3888_v57 = vadd.f32 %v3887_v15, %v3886_v28  ;;  %v5466_v27 = vadd.f32 %v5415_v33, %v3885_v18 }
 0x346   : > { %v5463_v42 = vadd.f32 %v3773_v1, %v5352_v41  ;;  %v3776_v7 = vadd.f32 %v3775_v34, %v3774_v10 }
 0x347   : > { %v5472_v13 = vadd.f32 %v5421_v50, %v3888_v57 }
 0x348   : > { %v5469_v2 = vadd.f32 %v3776_v7, %v5354_v38 }
 0x349   : > { %v3889_v37 = vpop.f32.mrb[96].mxu0 }
 0x34a   : > { %v3777_v16 = vpop.f32.mrb[144].mxu1  ;;  %v3890_v36 = vpop.f32.mrb[97].mxu0 }
 0x34b   : > { %v3778_v23 = vpop.f32.mrb[145].mxu1  ;;  %v3891_v58 = vadd.f32 %v3890_v36, %v3889_v37  ;;  %v3892_v43 = vpop.f32.mrb[98].mxu0 }
 0x34c   : > { %v3779_v30 = vadd.f32 %v3778_v23, %v3777_v16  ;;  %v3780_v41 = vpop.f32.mrb[146].mxu1  ;;  %v3893_v12 = vpop.f32.mrb[99].mxu0 }
 0x34d   : > { %v3781_v8 = vpop.f32.mrb[147].mxu1  ;;  %v3894_v33 = vadd.f32 %v3893_v12, %v3892_v43  ;;  %v5476_v38 = vadd.f32 %v5427_v19, %v3891_v58 }
 0x34e   : > { %v4268_v1 = vadd.f32 %v3779_v30, %v5356_v20  ;;  %v3782_v18 = vadd.f32 %v3781_v8, %v3780_v41 }
 0x34f   : > { %v5480_v28 = vadd.f32 %v5433_v39, %v3894_v33 }
 0x350   : > { %v4274_v50 = vadd.f32 %v3782_v18, %v5358_v17 }
 0x351   : > { %v3895_v10 = vpop.f32.mrb[100].mxu0 }
 0x352   : > { %v3783_v15 = vpop.f32.mrb[148].mxu1  ;;  %v3896_v34 = vpop.f32.mrb[101].mxu0 }
 0x353   : > { %v3784_v57 = vpop.f32.mrb[149].mxu1  ;;  %v3897_v7 = vadd.f32 %v3896_v34, %v3895_v10  ;;  %v3898_v16 = vpop.f32.mrb[102].mxu0 }
 0x354   : > { %v3785_v37 = vadd.f32 %v3784_v57, %v3783_v15  ;;  %v3786_v36 = vpop.f32.mrb[150].mxu1  ;;  %v3899_v23 = vpop.f32.mrb[103].mxu0 }
 0x355   : > { %v3787_v20 = vpop.f32.mrb[151].mxu1  ;;  %v3900_v43 = vadd.f32 %v3899_v23, %v3898_v16  ;;  %v5484_v58 = vadd.f32 %v5439_v35, %v3897_v7 }
 0x356   : > { %v4265_v30 = vadd.f32 %v3785_v37, %v5360_v14  ;;  %v3788_v19 = vadd.f32 %v3787_v20, %v3786_v36 }
 0x357   : > { %v5488_v39 = vadd.f32 %v5445_v3, %v3900_v43 }
 0x358   : > { %v4271_v17 = vadd.f32 %v3788_v19, %v5362_v26 }
 0x359   : > { %v3901_v41 = vpop.f32.mrb[104].mxu0 }
 0x35a   : > { %v3789_v12 = vpop.f32.mrb[152].mxu1  ;;  %v3902_v8 = vpop.f32.mrb[105].mxu0 }
 0x35b   : > { %v3790_v33 = vpop.f32.mrb[153].mxu1  ;;  %v3903_v18 = vadd.f32 %v3902_v8, %v3901_v41  ;;  %v3904_v15 = vpop.f32.mrb[106].mxu0 }
 0x35c   : > { %v3791_v10 = vadd.f32 %v3790_v33, %v3789_v12  ;;  %v3792_v34 = vpop.f32.mrb[154].mxu1  ;;  %v3905_v57 = vpop.f32.mrb[107].mxu0 }
 0x35d   : > { %v3793_v14 = vpop.f32.mrb[155].mxu1  ;;  %v3906_v16 = vadd.f32 %v3905_v57, %v3904_v15  ;;  %v5492_v7 = vadd.f32 %v5451_v55, %v3903_v18 }
 0x35e   : > { %v4280_v37 = vadd.f32 %v3791_v10, %v5364_v51  ;;  %v3794_v35 = vadd.f32 %v3793_v14, %v3792_v34 }
 0x35f   : > { %v5496_v3 = vadd.f32 %v5457_v45, %v3906_v16 }
 0x360   : > { %v4286_v26 = vadd.f32 %v3794_v35, %v5366_v53 }
 0x361   : > { %v3907_v36 = vpop.f32.mrb[108].mxu0 }
 0x362   : > { %v3795_v23 = vpop.f32.mrb[156].mxu1  ;;  %v3908_v20 = vpop.f32.mrb[109].mxu0 }
 0x363   : > { %v3796_v43 = vpop.f32.mrb[157].mxu1  ;;  %v3909_v19 = vadd.f32 %v3908_v20, %v3907_v36  ;;  %v3910_v12 = vpop.f32.mrb[110].mxu0 }
 0x364   : > { %v3797_v41 = vadd.f32 %v3796_v43, %v3795_v23  ;;  %v3798_v8 = vpop.f32.mrb[158].mxu1  ;;  %v3911_v33 = vpop.f32.mrb[111].mxu0 }
 0x365   : > { %v3799_v51 = vpop.f32.mrb[159].mxu1  ;;  %v3912_v15 = vadd.f32 %v3911_v33, %v3910_v12  ;;  %v5500_v18 = vadd.f32 %v5463_v42, %v3909_v19 }
 0x366   : > { %v4277_v10 = vadd.f32 %v3797_v41, %v5368_v52  ;;  %v3800_v55 = vadd.f32 %v3799_v51, %v3798_v8 }
 0x367   : > { %v5504_v45 = vadd.f32 %v5469_v2, %v3912_v15 }
 0x368   : > { %v4283_v53 = vadd.f32 %v3800_v55, %v5370_v47 }
 0x369   : > { %v3913_v34 = vpop.f32.mrb[112].mxu0 }
 0x36a   : > { %v3914_v57 = vpop.f32.mrb[113].mxu0 }
 0x36b   : > { %v3915_v14 = vadd.f32 %v3914_v57, %v3913_v34  ;;  %v3916_v16 = vpop.f32.mrb[114].mxu0 }
 0x36c   : > { %v3917_v35 = vpop.f32.mrb[115].mxu0 }
 0x36d   : > { %v3918_v36 = vadd.f32 %v3917_v35, %v3916_v16  ;;  %v5506_v23 = vadd.f32 %v4268_v1, %v3915_v14 }
 0x36f   : > { %v5508_v20 = vadd.f32 %v4274_v50, %v3918_v36 }
 0x371   : > { %v3919_v52 = vpop.f32.mrb[116].mxu0 }
 0x372   : > { %v3920_v43 = vpop.f32.mrb[117].mxu0 }
 0x373   : > { %v3921_v41 = vadd.f32 %v3920_v43, %v3919_v52  ;;  %v3922_v42 = vpop.f32.mrb[118].mxu0 }
 0x374   : > { %v3923_v19 = vpop.f32.mrb[119].mxu0 }
 0x375   : > { %v3924_v12 = vadd.f32 %v3923_v19, %v3922_v42  ;;  %v5510_v47 = vadd.f32 %v4265_v30, %v3921_v41  ;;  %v5525_v41 = vld [vmem:[%s5788_s4] ss:$0 sm:$0xff] }
 0x377   : > { %v5512_v2 = vadd.f32 %v4271_v17, %v3924_v12 }
 0x379   : > { %v3925_v8 = vpop.f32.mrb[120].mxu0 }
 0x37a   : > { %v3926_v33 = vpop.f32.mrb[121].mxu0 }
 0x37b   : > { %v3927_v51 = vadd.f32 %v3926_v33, %v3925_v8  ;;  %v3928_v15 = vpop.f32.mrb[122].mxu0 }
 0x37c   : > { %v3929_v55 = vpop.f32.mrb[123].mxu0 }
 0x37d   : > { %v3930_v34 = vadd.f32 %v3929_v55, %v3928_v15  ;;  %v5514_v1 = vadd.f32 %v4280_v37, %v3927_v51 }
 0x37f   : > { %v5516_v50 = vadd.f32 %v4286_v26, %v3930_v34 }
 0x381   : > { %v3931_v57 = vpop.f32.mrb[124].mxu0 }
 0x382   : > { %v3932_v14 = vpop.f32.mrb[125].mxu0 }
 0x383   : > { %v3933_v16 = vadd.f32 %v3932_v14, %v3931_v57  ;;  %v3934_v35 = vpop.f32.mrb[126].mxu0 }
 0x384   : > { %v3935_v36 = vpop.f32.mrb[127].mxu0 }
 0x385   : > { %v3936_v52 = vadd.f32 %v3935_v36, %v3934_v35  ;;  %v5518_v30 = vadd.f32 %v4277_v10, %v3933_v16 }
 0x387   : > { %v5520_v17 = vadd.f32 %v4283_v53, %v3936_v52 }
 0x389   : > { %v4099_v43 = vpop.f32.mrb[32].mxu0 }
 0x38a   : > { %v4195_v37 = vadd.f32 %v5397_v24, %v4099_v43  ;;  %v2727_v26 = vpop.f32.mrb[33].mxu0 }
 0x38b   : > { %v4198_v42 = vadd.f32 %v5387_v32, %v2727_v26  ;;  %v4100_v19 = vpop.f32.mrb[34].mxu0 }
 0x38c   : > { %v2895_v12 = vadd.f32 %v4195_v37, %v5525_v41  ;;  %v4201_v8 = vadd.f32 %v5402_v54, %v4100_v19  ;;  %v2730_v10 = vpop.f32.mrb[35].mxu0 }
 0x38d   : > { %v2893_v53 = vadd.f32 %v4198_v42, %v5525_v41  ;;  %v4204_v33 = vadd.f32 %v5392_v6, %v2730_v10 }
 0x38e   : > { %v2896_v51 = vadd.f32 %v4201_v8, %v5525_v41  ;;  %v2927_v55 = vmax.f32 %v2895_v12, 0.0 }
 0x38f   : > { %v2894_v15 = vadd.f32 %v4204_v33, %v5525_v41  ;;  %v2925_v24 = vmax.f32 %v2893_v53, 0.0 }
 0x390   : > { %v2928_v34 = vmax.f32 %v2896_v51, 0.0 }
 0x391   : > { %v2926_v57 = vmax.f32 %v2894_v15, 0.0  ;;  %v4103_v14 = vpop.f32.mrb[36].mxu0 }
 0x392   : > { %v2958_v32 = vpack.c.bf16 %v2928_v34, %v2927_v55  ;;  %v4207_v16 = vadd.f32 %v5418_v62, %v4103_v14  ;;  %v2743_v35 = vpop.f32.mrb[37].mxu0 }
 0x393   : > { %v4210_v54 = vadd.f32 %v5407_v0, %v2743_v35  ;;  %v4104_v36 = vpop.f32.mrb[38].mxu0  ;;  %v2957_v52 = vpack.c.bf16 %v2926_v57, %v2925_v24 }
 0x394   : > { %v2899_v43 = vadd.f32 %v4207_v16, %v5525_v41  ;;  %v4213_v6 = vadd.f32 %v5424_v49, %v4104_v36  ;;  %v2746_v37 = vpop.f32.mrb[39].mxu0 }
 0x395   : > { %v2897_v26 = vadd.f32 %v4210_v54, %v5525_v41  ;;  %v4216_v42 = vadd.f32 %v5412_v25, %v2746_v37  ;;  %4145 = vmatprep.mubr.bf16.mxu1 %v2957_v52 }
 0x396   : > { %v2900_v19 = vadd.f32 %v4213_v6, %v5525_v41  ;;  %4146 = vmatmul.mubr.bf16.vlgmr.msra.gmra.mrb[160].mxu1 %v2958_v32  ;;  %v2931_v12 = vmax.f32 %v2899_v43, 0.0 }
 0x397   : > { %v2898_v62 = vadd.f32 %v4216_v42, %v5525_v41  ;;  %v2929_v0 = vmax.f32 %v2897_v26, 0.0 }
 0x398   : > { %v2932_v8 = vmax.f32 %v2900_v19, 0.0 }
 0x399   : > { %v2930_v10 = vmax.f32 %v2898_v62, 0.0  ;;  %v4107_v53 = vpop.f32.mrb[40].mxu0 }
 0x39a   : > { %v4219_v33 = vadd.f32 %v5442_v60, %v4107_v53  ;;  %v2759_v51 = vpop.f32.mrb[41].mxu0  ;;  %v2960_v49 = vpack.c.bf16 %v2932_v8, %v2931_v12 }
 0x39b   : > { %v4222_v15 = vadd.f32 %v5430_v46, %v2759_v51  ;;  %v4108_v55 = vpop.f32.mrb[42].mxu0  ;;  %v2959_v34 = vpack.c.bf16 %v2930_v10, %v2929_v0 }
 0x39c   : > { %v2903_v25 = vadd.f32 %v4219_v33, %v5525_v41  ;;  %v4225_v24 = vadd.f32 %v5448_v63, %v4108_v55  ;;  %v2762_v57 = vpop.f32.mrb[43].mxu0 }
 0x39d   : > { %v2901_v14 = vadd.f32 %v4222_v15, %v5525_v41  ;;  %v4228_v32 = vadd.f32 %v5436_v5, %v2762_v57  ;;  %4149 = vmatprep.mubr.bf16.mxu1 %v2959_v34 }
 0x39e   : > { %v2904_v16 = vadd.f32 %v4225_v24, %v5525_v41  ;;  %4150 = vmatmul.mubr.bf16.gmra.mrb[164].mxu1 %v2960_v49  ;;  %v2935_v35 = vmax.f32 %v2903_v25, 0.0 }
 0x39f   : > { %v2902_v60 = vadd.f32 %v4228_v32, %v5525_v41  ;;  %v2933_v46 = vmax.f32 %v2901_v14, 0.0 }
 0x3a0   : > { %v2936_v54 = vmax.f32 %v2904_v16, 0.0 }
 0x3a1   : > { %v2934_v36 = vmax.f32 %v2902_v60, 0.0  ;;  %v4111_v52 = vpop.f32.mrb[44].mxu0 }
 0x3a2   : > { %v4231_v43 = vadd.f32 %v5466_v27, %v4111_v52  ;;  %v2775_v6 = vpop.f32.mrb[45].mxu0  ;;  %v2962_v63 = vpack.c.bf16 %v2936_v54, %v2935_v35 }
 0x3a3   : > { %v4234_v37 = vadd.f32 %v5454_v40, %v2775_v6  ;;  %v4112_v26 = vpop.f32.mrb[46].mxu0  ;;  %v2961_v42 = vpack.c.bf16 %v2934_v36, %v2933_v46 }
 0x3a4   : > { %v2907_v5 = vadd.f32 %v4231_v43, %v5525_v41  ;;  %v4237_v19 = vadd.f32 %v5472_v13, %v4112_v26  ;;  %v2778_v62 = vpop.f32.mrb[47].mxu0 }
 0x3a5   : > { %v2905_v12 = vadd.f32 %v4234_v37, %v5525_v41  ;;  %v4240_v8 = vadd.f32 %v5460_v9, %v2778_v62  ;;  %4153 = vmatprep.mubr.bf16.mxu1 %v2961_v42 }
 0x3a6   : > { %v2908_v0 = vadd.f32 %v4237_v19, %v5525_v41  ;;  %4154 = vmatmul.mubr.bf16.gmra.mrb[168].mxu1 %v2962_v63  ;;  %v2939_v10 = vmax.f32 %v2907_v5, 0.0 }
 0x3a7   : > { %v2906_v27 = vadd.f32 %v4240_v8, %v5525_v41  ;;  %v2937_v40 = vmax.f32 %v2905_v12, 0.0 }
 0x3a8   : > { %v2940_v53 = vmax.f32 %v2908_v0, 0.0 }
 0x3a9   : > { %v2938_v33 = vmax.f32 %v2906_v27, 0.0  ;;  %v4115_v51 = vpop.f32.mrb[48].mxu0 }
 0x3aa   : > { %v4243_v49 = vadd.f32 %v5484_v58, %v4115_v51  ;;  %v2791_v15 = vpop.f32.mrb[49].mxu0  ;;  %v2964_v13 = vpack.c.bf16 %v2940_v53, %v2939_v10 }
 0x3ab   : > { %v4246_v55 = vadd.f32 %v5476_v38, %v2791_v15  ;;  %v4116_v34 = vpop.f32.mrb[50].mxu0  ;;  %v2963_v25 = vpack.c.bf16 %v2938_v33, %v2937_v40 }
 0x3ac   : > { %v2911_v9 = vadd.f32 %v4243_v49, %v5525_v41  ;;  %v4249_v24 = vadd.f32 %v5488_v39, %v4116_v34  ;;  %v2794_v57 = vpop.f32.mrb[51].mxu0 }
 0x3ad   : > { %v2909_v14 = vadd.f32 %v4246_v55, %v5525_v41  ;;  %v4252_v32 = vadd.f32 %v5480_v28, %v2794_v57  ;;  %4157 = vmatprep.mubr.bf16.mxu1 %v2963_v25 }
 0x3ae   : > { %v2912_v16 = vadd.f32 %v4249_v24, %v5525_v41  ;;  %4158 = vmatmul.mubr.bf16.gmra.mrb[172].mxu1 %v2964_v13  ;;  %v2943_v60 = vmax.f32 %v2911_v9, 0.0 }
 0x3af   : > { %v2910_v58 = vadd.f32 %v4252_v32, %v5525_v41  ;;  %v2941_v38 = vmax.f32 %v2909_v14, 0.0 }
 0x3b0   : > { %v2944_v35 = vmax.f32 %v2912_v16, 0.0 }
 0x3b1   : > { %v2942_v54 = vmax.f32 %v2910_v58, 0.0  ;;  %v4119_v46 = vpop.f32.mrb[52].mxu0 }
 0x3b2   : > { %v4255_v36 = vadd.f32 %v5500_v18, %v4119_v46  ;;  %v2807_v52 = vpop.f32.mrb[53].mxu0  ;;  %v2966_v39 = vpack.c.bf16 %v2944_v35, %v2943_v60 }
 0x3b3   : > { %v4258_v43 = vadd.f32 %v5492_v7, %v2807_v52  ;;  %v4120_v6 = vpop.f32.mrb[54].mxu0  ;;  %v2965_v63 = vpack.c.bf16 %v2942_v54, %v2941_v38 }
 0x3b4   : > { %v2915_v28 = vadd.f32 %v4255_v36, %v5525_v41  ;;  %v4261_v37 = vadd.f32 %v5504_v45, %v4120_v6  ;;  %v2810_v26 = vpop.f32.mrb[55].mxu0 }
 0x3b5   : > { %v2913_v42 = vadd.f32 %v4258_v43, %v5525_v41  ;;  %v4264_v5 = vadd.f32 %v5496_v3, %v2810_v26  ;;  %4161 = vmatprep.mubr.bf16.mxu1 %v2965_v63 }
 0x3b6   : > { %v2916_v19 = vadd.f32 %v4261_v37, %v5525_v41  ;;  %4162 = vmatmul.mubr.bf16.gmra.mrb[176].mxu1 %v2966_v39  ;;  %v2947_v62 = vmax.f32 %v2915_v28, 0.0 }
 0x3b7   : > { %v2914_v18 = vadd.f32 %v4264_v5, %v5525_v41  ;;  %v2945_v7 = vmax.f32 %v2913_v42, 0.0 }
 0x3b8   : > { %v2948_v12 = vmax.f32 %v2916_v19, 0.0 }
 0x3b9   : > { %v2946_v8 = vmax.f32 %v2914_v18, 0.0  ;;  %v4123_v0 = vpop.f32.mrb[56].mxu0 }
 0x3ba   : > { %v4267_v27 = vadd.f32 %v5510_v47, %v4123_v0  ;;  %v2823_v10 = vpop.f32.mrb[57].mxu0  ;;  %v2968_v45 = vpack.c.bf16 %v2948_v12, %v2947_v62 }
 0x3bb   : > { %v4270_v53 = vadd.f32 %v5506_v23, %v2823_v10  ;;  %v4124_v40 = vpop.f32.mrb[58].mxu0  ;;  %v2967_v33 = vpack.c.bf16 %v2946_v8, %v2945_v7 }
 0x3bc   : > { %v2919_v3 = vadd.f32 %v4267_v27, %v5525_v41  ;;  %v4273_v51 = vadd.f32 %v5512_v2, %v4124_v40  ;;  %v2826_v49 = vpop.f32.mrb[59].mxu0 }
 0x3bd   : > { %v2917_v15 = vadd.f32 %v4270_v53, %v5525_v41  ;;  %v4276_v13 = vadd.f32 %v5508_v20, %v2826_v49  ;;  %4165 = vmatprep.mubr.bf16.mxu1 %v2967_v33 }
 0x3be   : > { %v2920_v55 = vadd.f32 %v4273_v51, %v5525_v41  ;;  %4166 = vmatmul.mubr.bf16.gmra.mrb[180].mxu1 %v2968_v45  ;;  %v2951_v34 = vmax.f32 %v2919_v3, 0.0 }
 0x3bf   : > { %v2918_v47 = vadd.f32 %v4276_v13, %v5525_v41  ;;  %v2949_v23 = vmax.f32 %v2917_v15, 0.0 }
 0x3c0   : > { %v2952_v25 = vmax.f32 %v2920_v55, 0.0 }
 0x3c1   : > { %v2950_v9 = vmax.f32 %v2918_v47, 0.0  ;;  %v4127_v24 = vpop.f32.mrb[60].mxu0 }
 0x3c2   : > { %v4279_v57 = vadd.f32 %v5518_v30, %v4127_v24  ;;  %v2839_v14 = vpop.f32.mrb[61].mxu0  ;;  %v2970_v2 = vpack.c.bf16 %v2952_v25, %v2951_v34 }
 0x3c3   : > { %v4282_v32 = vadd.f32 %v5514_v1, %v2839_v14  ;;  %v4128_v16 = vpop.f32.mrb[62].mxu0  ;;  %v2969_v58 = vpack.c.bf16 %v2950_v9, %v2949_v23 }
 0x3c4   : > { %v2923_v20 = vadd.f32 %v4279_v57, %v5525_v41  ;;  %v4285_v60 = vadd.f32 %v5520_v17, %v4128_v16  ;;  %v2842_v35 = vpop.f32.mrb[63].mxu0  ;;  %v398_v17 = vsub.s32 1, %v5055_v61 }
 0x3c5   : > { %v2921_v38 = vadd.f32 %v4282_v32, %v5525_v41  ;;  %v4288_v54 = vadd.f32 %v5516_v50, %v2842_v35  ;;  %4169 = vmatprep.mubr.bf16.mxu1 %v2969_v58  ;;  %v4558_v50 = vld [vmem:[%s5786_s2] sm:$0x3] }
 0x3c6   : > { %v2924_v46 = vadd.f32 %v4285_v60, %v5525_v41  ;;  %4170 = vmatmul.mubr.bf16.gmra.mrb[184].mxu1 %v2970_v2  ;;  %v2955_v36 = vmax.f32 %v2923_v20, 0.0  ;;  %v5595_v63 = vrot.slane %v4558_v50, %v398_v17  ;;  %v5835_v35 = vld [vmem:[#allocation29_spill] sm:$0xff] }
 0x3c7   : > { %v2922_v30 = vadd.f32 %v4288_v54, %v5525_v41  ;;  %v2953_v52 = vmax.f32 %v2921_v38, 0.0  ;;  %v5600_v41 = vld [vmem:[%s5790_s6] ss:$0 sm:$0xff] }
 0x3c8   : > { %v2956_v1 = vmax.f32 %v2924_v46, 0.0  ;;  %v625_v37 = vadd.f32 %v5078_v22, %v5595_v63  ;;  %v615_v61 = vadd.f32 %v5064_v4, %v5595_v63  ;;  %v629_v18 = vadd.f32 %v5084_v29, %v5595_v63 }
 0x3c9   : > { %v2954_v39 = vmax.f32 %v2922_v30, 0.0  ;;  %v619_v22 = vadd.f32 %v5070_v11, %v5595_v63  ;;  %v645_v11 = vadd.f32 %v5111_v21, %v5595_v63  ;;  %v635_v51 = vadd.f32 %v5094_v48, %v5595_v63  ;;  %v5836_v30 = vld [vmem:[#allocation26_spill] sm:$0xff] }
 0x3ca   : > { %v2972_v43 = vpack.c.bf16 %v2956_v1, %v2955_v36  ;;  %v649_v13 = vadd.f32 %v5119_v31, %v5595_v63  ;;  %v639_v34 = vadd.f32 %v5101_v56, %v5595_v63  ;;  %v665_v32 = vadd.f32 %v5146_v44, %v5595_v63 }
 0x3cb   : > { %v2971_v6 = vpack.c.bf16 %v2954_v39, %v2953_v52  ;;  %v655_v58 = vadd.f32 %v5129_v59, %v5595_v63  ;;  %v669_v38 = vadd.f32 %v5835_v35, %v5595_v63  ;;  %v659_v36 = vadd.f32 %v5836_v30, %v5595_v63 }
 0x3cd   : > { %4173 = vmatprep.mubr.bf16.mxu1 %v2971_v6 }
 0x3ce   : > { %4174 = vmatmul.mubr.bf16.gmra.mrb[188].mxu1 %v2972_v43 }
 0x469   : > { %v4147_v28 = vpop.f32.mrb[160].mxu1 }
 0x46a   : > { %v3087_v26 = vadd.f32 %v4147_v28, %v5600_v41  ;;  %v3078_v42 = vpop.f32.mrb[161].mxu1 }
 0x46b   : > { %v3079_v5 = vadd.f32 %v5600_v41, %v3078_v42  ;;  %v4148_v19 = vpop.f32.mrb[162].mxu1 }
 0x46c   : > { %v3207_v62 = vadd.f32 %v3087_v26, %v625_v37  ;;  %v3090_v12 = vadd.f32 %v4148_v19, %v5600_v41  ;;  %v3081_v7 = vpop.f32.mrb[163].mxu1  ;;  %v5837_v37 = vld [vmem:[#allocation35_spill] sm:$0xff] }
 0x46d   : > { %v3205_v8 = vadd.f32 %v3079_v5, %v615_v61  ;;  %v3082_v0 = vadd.f32 %v5600_v41, %v3081_v7  ;;  %v685_v26 = vadd.f32 %v5837_v37, %v5595_v63  ;;  %v5838_v5 = vld [vmem:[#allocation31_spill] sm:$0xff] }
 0x46e   : > { %v3239_v27 = vmax.f32 %v3207_v62, 0.0  ;;  %v3208_v10 = vadd.f32 %v3090_v12, %v629_v18  ;;  %v675_v19 = vadd.f32 %v5838_v5, %v5595_v63  ;;  %v5839_v12 = vld [vmem:[#allocation37_spill] sm:$0xff] }
 0x46f   : > { %v3237_v45 = vmax.f32 %v3205_v8, 0.0  ;;  %v3206_v4 = vadd.f32 %v3082_v0, %v619_v22  ;;  %v689_v7 = vadd.f32 %v5839_v12, %v5595_v63 }
 0x470   : > { %3271 = vst [vmem:[%s5615_s11 + $0x10] sm:$0xff] %v3239_v27  ;;  %v3240_v29 = vmax.f32 %v3208_v10, 0.0  ;;  %v5840_v27 = vld [vmem:[#allocation33_spill] sm:$0xff] }
 0x471   : > { %3269 = vst [vmem:[%s5615_s11] sm:$0xff] %v3237_v45  ;;  %v3238_v53 = vmax.f32 %v3206_v4, 0.0  ;;  %v4151_v40 = vpop.f32.mrb[164].mxu1  ;;  %v679_v10 = vadd.f32 %v5840_v27, %v5595_v63 }
 0x472   : > { %3272 = vst [vmem:[%s5615_s11 + $0x18] sm:$0xff] %v3240_v29  ;;  %v3103_v33 = vadd.f32 %v4151_v40, %v5600_v41  ;;  %v3094_v3 = vpop.f32.mrb[165].mxu1 }
 0x473   : > { %3270 = vst [vmem:[%s5615_s11 + $0x8] sm:$0xff] %v3238_v53  ;;  %v3095_v49 = vadd.f32 %v5600_v41, %v3094_v3  ;;  %v4152_v15 = vpop.f32.mrb[166].mxu1 }
 0x474   : > { %v3211_v55 = vadd.f32 %v3103_v33, %v645_v11  ;;  %v3106_v21 = vadd.f32 %v4152_v15, %v5600_v41  ;;  %v3097_v47 = vpop.f32.mrb[167].mxu1 }
 0x475   : > { %v3209_v25 = vadd.f32 %v3095_v49, %v635_v51  ;;  %v3098_v48 = vadd.f32 %v5600_v41, %v3097_v47  ;;  %v5841_v49 = vld [vmem:[#allocation19_spill] sm:$0xff] }
 0x476   : > { %v3243_v23 = vmax.f32 %v3211_v55, 0.0  ;;  %v3212_v9 = vadd.f32 %v3106_v21, %v649_v13  ;;  %v705_v15 = vadd.f32 %v5841_v49, %v5595_v63  ;;  %v5842_v21 = vld [vmem:[#allocation17_spill] sm:$0xff] }
 0x477   : > { %v3241_v24 = vmax.f32 %v3209_v25, 0.0  ;;  %v3210_v57 = vadd.f32 %v3098_v48, %v639_v34  ;;  %v695_v47 = vadd.f32 %v5842_v21, %v5595_v63  ;;  %v5843_v48 = vld [vmem:[#allocation20_spill] sm:$0xff] }
 0x478   : > { %3275 = vst [vmem:[%s5615_s11 + $0x30] sm:$0xff] %v3243_v23  ;;  %v3244_v14 = vmax.f32 %v3212_v9, 0.0  ;;  %v709_v23 = vadd.f32 %v5843_v48, %v5595_v63 }
 0x479   : > { %3273 = vst [vmem:[%s5615_s11 + $0x20] sm:$0xff] %v3241_v24  ;;  %v3242_v31 = vmax.f32 %v3210_v57, 0.0  ;;  %v4155_v2 = vpop.f32.mrb[168].mxu1 }
 0x47a   : > { %3276 = vst [vmem:[%s5615_s11 + $0x38] sm:$0xff] %v3244_v14  ;;  %v3119_v16 = vadd.f32 %v4155_v2, %v5600_v41  ;;  %v3110_v56 = vpop.f32.mrb[169].mxu1  ;;  %v5844_v14 = vld [vmem:[#allocation18_spill] sm:$0xff] }
 0x47b   : > { %3274 = vst [vmem:[%s5615_s11 + $0x28] sm:$0xff] %v3242_v31  ;;  %v3111_v20 = vadd.f32 %v5600_v41, %v3110_v56  ;;  %v4156_v60 = vpop.f32.mrb[170].mxu1  ;;  %v699_v31 = vadd.f32 %v5844_v14, %v5595_v63 }
 0x47c   : > { %v3215_v54 = vadd.f32 %v3119_v16, %v665_v32  ;;  %v3122_v44 = vadd.f32 %v4156_v60, %v5600_v41  ;;  %v3113_v46 = vpop.f32.mrb[171].mxu1 }
 0x47d   : > { %v3213_v1 = vadd.f32 %v3111_v20, %v655_v58  ;;  %v3114_v59 = vadd.f32 %v5600_v41, %v3113_v46 }
 0x47e   : > { %v3247_v52 = vmax.f32 %v3215_v54, 0.0  ;;  %v3216_v39 = vadd.f32 %v3122_v44, %v669_v38  ;;  %v5845_v54 = vld [vmem:[#allocation23_spill] sm:$0xff] }
 0x47f   : > { %v3245_v43 = vmax.f32 %v3213_v1, 0.0  ;;  %v3214_v6 = vadd.f32 %v3114_v59, %v659_v36  ;;  %v725_v44 = vadd.f32 %v5845_v54, %v5595_v63  ;;  %v5846_v36 = vld [vmem:[#allocation21_spill] sm:$0xff] }
 0x480   : > { %3279 = vst [vmem:[%s5615_s11 + $0x50] sm:$0xff] %v3247_v52  ;;  %v3248_v17 = vmax.f32 %v3216_v39, 0.0  ;;  %v715_v1 = vadd.f32 %v5846_v36, %v5595_v63  ;;  %v5847_v39 = vld [vmem:[#allocation24_spill] sm:$0xff] }
 0x481   : > { %3277 = vst [vmem:[%s5615_s11 + $0x40] sm:$0xff] %v3245_v43  ;;  %v3246_v50 = vmax.f32 %v3214_v6, 0.0  ;;  %v4159_v28 = vpop.f32.mrb[172].mxu1  ;;  %v729_v43 = vadd.f32 %v5847_v39, %v5595_v63 }
 0x482   : > { %3280 = vst [vmem:[%s5615_s11 + $0x58] sm:$0xff] %v3248_v17  ;;  %v3135_v42 = vadd.f32 %v4159_v28, %v5600_v41  ;;  %v3126_v61 = vpop.f32.mrb[173].mxu1  ;;  %v5848_v28 = vld [vmem:[#allocation22_spill] sm:$0xff] }
 0x483   : > { %3278 = vst [vmem:[%s5615_s11 + $0x48] sm:$0xff] %v3246_v50  ;;  %v3127_v18 = vadd.f32 %v5600_v41, %v3126_v61  ;;  %v4160_v62 = vpop.f32.mrb[174].mxu1  ;;  %v719_v37 = vadd.f32 %v5848_v28, %v5595_v63 }
 0x484   : > { %v3219_v22 = vadd.f32 %v3135_v42, %v685_v26  ;;  %v3138_v8 = vadd.f32 %v4160_v62, %v5600_v41  ;;  %v3129_v0 = vpop.f32.mrb[175].mxu1 }
 0x485   : > { %v3217_v45 = vadd.f32 %v3127_v18, %v675_v19  ;;  %v3130_v4 = vadd.f32 %v5600_v41, %v3129_v0 }
 0x486   : > { %v3251_v29 = vmax.f32 %v3219_v22, 0.0  ;;  %v3220_v53 = vadd.f32 %v3138_v8, %v689_v7  ;;  %v5849_v22 = vld [vmem:[#allocation28_spill] sm:$0xff] }
 0x487   : > { %v3249_v40 = vmax.f32 %v3217_v45, 0.0  ;;  %v3218_v11 = vadd.f32 %v3130_v4, %v679_v10  ;;  %v745_v8 = vadd.f32 %v5849_v22, %v5595_v63  ;;  %v5850_v10 = vld [vmem:[#allocation25_spill] sm:$0xff] }
 0x488   : > { %3283 = vst [vmem:[%s5615_s11 + $0x70] sm:$0xff] %v3251_v29  ;;  %v3252_v33 = vmax.f32 %v3220_v53, 0.0  ;;  %v735_v45 = vadd.f32 %v5850_v10, %v5595_v63  ;;  %v5851_v53 = vld [vmem:[#allocation30_spill] sm:$0xff] }
 0x489   : > { %3281 = vst [vmem:[%s5615_s11 + $0x60] sm:$0xff] %v3249_v40  ;;  %v3250_v3 = vmax.f32 %v3218_v11, 0.0  ;;  %v4163_v51 = vpop.f32.mrb[176].mxu1  ;;  %v749_v40 = vadd.f32 %v5851_v53, %v5595_v63 }
 0x48a   : > { %3284 = vst [vmem:[%s5615_s11 + $0x78] sm:$0xff] %v3252_v33  ;;  %v3151_v13 = vadd.f32 %v4163_v51, %v5600_v41  ;;  %v3142_v55 = vpop.f32.mrb[177].mxu1  ;;  %v5852_v51 = vld [vmem:[#allocation27_spill] sm:$0xff] }
 0x48b   : > { %3282 = vst [vmem:[%s5615_s11 + $0x68] sm:$0xff] %v3250_v3  ;;  %v3143_v34 = vadd.f32 %v5600_v41, %v3142_v55  ;;  %v4164_v25 = vpop.f32.mrb[178].mxu1  ;;  %v739_v49 = vadd.f32 %v5852_v51, %v5595_v63 }
 0x48c   : > { %v3223_v9 = vadd.f32 %v3151_v13, %v705_v15  ;;  %v3154_v24 = vadd.f32 %v4164_v25, %v5600_v41  ;;  %v3145_v57 = vpop.f32.mrb[179].mxu1 }
 0x48d   : > { %v3221_v2 = vadd.f32 %v3143_v34, %v695_v47  ;;  %v3146_v32 = vadd.f32 %v5600_v41, %v3145_v57 }
 0x48e   : > { %v3255_v16 = vmax.f32 %v3223_v9, 0.0  ;;  %v3224_v56 = vadd.f32 %v3154_v24, %v709_v23  ;;  %v5853_v9 = vld [vmem:[#allocation36_spill] sm:$0xff] }
 0x48f   : > { %v3253_v58 = vmax.f32 %v3221_v2, 0.0  ;;  %v3222_v20 = vadd.f32 %v3146_v32, %v699_v31  ;;  %v765_v24 = vadd.f32 %v5853_v9, %v5595_v63  ;;  %v5854_v31 = vld [vmem:[#allocation32_spill] sm:$0xff] }
 0x490   : > { %3287 = vst [vmem:[%s5615_s11 + $0x90] sm:$0xff] %v3255_v16  ;;  %v3256_v60 = vmax.f32 %v3224_v56, 0.0  ;;  %v755_v2 = vadd.f32 %v5854_v31, %v5595_v63  ;;  %v5855_v56 = vld [vmem:[#allocation38_spill] sm:$0xff] }
 0x491   : > { %3285 = vst [vmem:[%s5615_s11 + $0x80] sm:$0xff] %v3253_v58  ;;  %v3254_v35 = vmax.f32 %v3222_v20, 0.0  ;;  %v4167_v38 = vpop.f32.mrb[180].mxu1  ;;  %v769_v58 = vadd.f32 %v5855_v56, %v5595_v63 }
 0x492   : > { %3288 = vst [vmem:[%s5615_s11 + $0x98] sm:$0xff] %v3256_v60  ;;  %v3167_v46 = vadd.f32 %v4167_v38, %v5600_v41  ;;  %v3158_v30 = vpop.f32.mrb[181].mxu1  ;;  %v5856_v38 = vld [vmem:[#allocation34_spill] sm:$0xff] }
 0x493   : > { %3286 = vst [vmem:[%s5615_s11 + $0x88] sm:$0xff] %v3254_v35  ;;  %v3159_v59 = vadd.f32 %v5600_v41, %v3158_v30  ;;  %v4168_v52 = vpop.f32.mrb[182].mxu1  ;;  %v759_v54 = vadd.f32 %v5856_v38, %v5595_v63 }
 0x494   : > { %v3227_v6 = vadd.f32 %v3167_v46, %v725_v44  ;;  %v3170_v17 = vadd.f32 %v4168_v52, %v5600_v41  ;;  %v3161_v50 = vpop.f32.mrb[183].mxu1 }
 0x495   : > { %v3225_v26 = vadd.f32 %v3159_v59, %v715_v1  ;;  %v3162_v42 = vadd.f32 %v5600_v41, %v3161_v50 }
 0x496   : > { %v3259_v61 = vmax.f32 %v3227_v6, 0.0  ;;  %v3228_v5 = vadd.f32 %v3170_v17, %v729_v43 }
 0x497   : > { %v3257_v19 = vmax.f32 %v3225_v26, 0.0  ;;  %v3226_v18 = vadd.f32 %v3162_v42, %v719_v37 }
 0x498   : > { %3291 = vst [vmem:[%s5615_s11 + $0xb0] sm:$0xff] %v3259_v61  ;;  %v3260_v62 = vmax.f32 %v3228_v5, 0.0 }
 0x499   : > { %3289 = vst [vmem:[%s5615_s11 + $0xa0] sm:$0xff] %v3257_v19  ;;  %v3258_v12 = vmax.f32 %v3226_v18, 0.0  ;;  %v4171_v7 = vpop.f32.mrb[184].mxu1 }
 0x49a   : > { %3292 = vst [vmem:[%s5615_s11 + $0xb8] sm:$0xff] %v3260_v62  ;;  %v3183_v0 = vadd.f32 %v4171_v7, %v5600_v41  ;;  %v3174_v27 = vpop.f32.mrb[185].mxu1 }
 0x49b   : > { %3290 = vst [vmem:[%s5615_s11 + $0xa8] sm:$0xff] %v3258_v12  ;;  %v3175_v4 = vadd.f32 %v5600_v41, %v3174_v27  ;;  %v4172_v29 = vpop.f32.mrb[186].mxu1 }
 0x49c   : > { %v3231_v11 = vadd.f32 %v3183_v0, %v745_v8  ;;  %v3186_v33 = vadd.f32 %v4172_v29, %v5600_v41  ;;  %v3177_v3 = vpop.f32.mrb[187].mxu1 }
 0x49d   : > { %v3229_v15 = vadd.f32 %v3175_v4, %v735_v45  ;;  %v3178_v13 = vadd.f32 %v5600_v41, %v3177_v3 }
 0x49e   : > { %v3263_v55 = vmax.f32 %v3231_v11, 0.0  ;;  %v3232_v21 = vadd.f32 %v3186_v33, %v749_v40 }
 0x49f   : > { %v3261_v47 = vmax.f32 %v3229_v15, 0.0  ;;  %v3230_v34 = vadd.f32 %v3178_v13, %v739_v49 }
 0x4a0   : > { %3295 = vst [vmem:[%s5615_s11 + $0xd0] sm:$0xff] %v3263_v55  ;;  %v3264_v25 = vmax.f32 %v3232_v21, 0.0 }
 0x4a1   : > { %3293 = vst [vmem:[%s5615_s11 + $0xc0] sm:$0xff] %v3261_v47  ;;  %v3262_v48 = vmax.f32 %v3230_v34, 0.0  ;;  %v4175_v23 = vpop.f32.mrb[188].mxu1 }
 0x4a2   : > { %3296 = vst [vmem:[%s5615_s11 + $0xd8] sm:$0xff] %v3264_v25  ;;  %v3199_v57 = vadd.f32 %v4175_v23, %v5600_v41  ;;  %v3190_v14 = vpop.f32.mrb[189].mxu1 }
 0x4a3   : > { %3294 = vst [vmem:[%s5615_s11 + $0xc8] sm:$0xff] %v3262_v48  ;;  %v3191_v32 = vadd.f32 %v5600_v41, %v3190_v14  ;;  %v4176_v16 = vpop.f32.mrb[190].mxu1 }
 0x4a4   : > { %v3235_v20 = vadd.f32 %v3199_v57, %v765_v24  ;;  %v3202_v60 = vadd.f32 %v4176_v16, %v5600_v41  ;;  %v3193_v35 = vpop.f32.mrb[191].mxu1 }
 0x4a5   : > { %v3233_v44 = vadd.f32 %v3191_v32, %v755_v2  ;;  %v3194_v46 = vadd.f32 %v5600_v41, %v3193_v35 }
 0x4a6   : > { %v3267_v30 = vmax.f32 %v3235_v20, 0.0  ;;  %v3236_v36 = vadd.f32 %v3202_v60, %v769_v58 }
 0x4a7   : > { %v3265_v1 = vmax.f32 %v3233_v44, 0.0  ;;  %v3234_v59 = vadd.f32 %v3194_v46, %v759_v54 }
 0x4a8   : > { %3299 = vst [vmem:[%s5615_s11 + $0xf0] sm:$0xff] %v3267_v30  ;;  %v3268_v52 = vmax.f32 %v3236_v36, 0.0 }
 0x4a9   : > { %3297 = vst [vmem:[%s5615_s11 + $0xe0] sm:$0xff] %v3265_v1  ;;  %v3266_v63 = vmax.f32 %v3234_v59, 0.0 }
 0x4aa   : > { %3300 = vst [vmem:[%s5615_s11 + $0xf8] sm:$0xff] %v3268_v52 }
 0x4ab   : > { %3298 = vst [vmem:[%s5615_s11 + $0xe8] sm:$0xff] %v3266_v63 }
 0x4ac   : > { %4686 = shalt.err (!%p4683_p4)
}
 0x4ad   : > { %s4687_s17 = scalar_lea.hbm %s5735_s23, 4096  ;;  %s4691_s8 = scalar_lea.hbm %s5791_s7, 8192 }
 0x4ae   : > { %p4688_p9 = scmp.ne.s32.totalorder %s5735_s23, %s4687_s17  ;;  %p4692_p8 = scmp.lt.u32.totalorder %s5735_s23, %s5791_s7 }
 0x4af   : > { %p4693_p13 = scmp.lt.u32.totalorder %s4691_s8, %s4687_s17  ;;  %p4695_p10 = scmp.lt.u32.totalorder %s4687_s17, %s5735_s23 }
 0x4b0   : > { %p4689_p0 = pnand %p4688_p9, %p4951_p5 }
 0x4b1   : > { %p4694_p6 = por %p4693_p13, %p4692_p8 }
 0x4b2   : > { %p4690_p11 = pneg %p4689_p0 }
 0x4b3   : > { %p4696_p3 = por %p4695_p10, %p4694_p6 }
 0x4b5   : > { %p4697_p7 = pnand %p4696_p3, %p4690_p11 }
 0x4b7   : > { %4700 = shalt.err (!%p4697_p7)
}
 0x4b8   : > { %s4761_s12 = smov 128   ;;  %s4762_s21 = smov 8  }
 0x4b9   : > { %4367 = dma.vmem_to_hbm [thread:$0]  (%p4951_p5), %s5737_s19, 4096, %s5735_s23, %s3302_s28, %s4761_s12, %s4761_s12, %s4762_s21  }
 0x4ba PF: > { %s5857_s22 = sld [smem:[#allocation16_spill]]  ;;  %s3330_s30 = sand.u32 1, %s4735_s24  }
 0x4bb   : > { %p5859_p2 = scmp.ge.s32.totalorder %s4747_s27, 2  ;;  %s3331_s9 = scalar_lea.sflag [#allocation5], %s3330_s30 }
 0x4c0   : > { %p5858_p12 = scmp.ne.s32.totalorder %s5857_s22, 0 }
 0x4c2   : > { %p4384_p1 = pnand %p5859_p2, %p5858_p12 }
 0x4c4   : > { %4730 = dma.done.wait (!%p4384_p1), %s3331_s9, 4096  }
 0x4c5   : > { %4732 = vsyncadd (!%p4384_p1), %s3331_s9, 4294963200  ;;  %p22_p4 = scmp.ge.s32.totalorder %s4916_s18, 4   ;;  %s5860_s24 = smov %s4739_s25 }
 0x4c6   : > { %s5861_s25 = smov %s4743_s26  ;;  %s5862_s26 = smov %s4947_s13 }
 0x4c7   : > { %s5863_s27 = smov %s4916_s18  ;;  %24 = sbr.rel (!%p22_p4) target bundleno = 9 (0x9), region = 110 }
 0x4ce   :  { %3336 = vsyncpa [#allocation4], 1 }
 0x4cf   :  { %3338 = vsyncpa [#allocation4 + $0x1], 1 }
 0x4d0   :  { %3339 = vsyncpa [#allocation7], 1 }
 0x4d1   :  { %3340 = vsyncpa [#allocation10], 1 }
 0x4d2   :  { %3341 = vsyncpa [#allocation5], 1 }
 0x4d3   :  { %3343 = vsyncpa [#allocation5 + $0x1], 1 }

</bundles_post_ra>
